<compile_context>
chip_gen: v5e
topology: v5e:2x2
jax: 0.10.0
libtpu: 0.0.40
codegen_flags: <defaults>
</compile_context>

<pallas_src>
import jax
import jax.numpy as jnp
from jax.experimental import pallas as pl
from jax.experimental.pallas import tpu as pltpu

# ---------------- module constants (from the PyTorch source) -----------------
DEPTH = 1
N_QUBITS = 2                 # qubit_dict['pure_multi']; kernel_size == n_qubits
KERNEL_SIZE = N_QUBITS       # kernel_size = n_qubits in the module
DIM = 1 << N_QUBITS          # statevector dimension

SUB_R = 8                    # sublane rows per compute sub-tile -> full (8,128) vregs
MAX_BLOCK_R = 512            # at most 512*128 = 65536 patch instances per grid step


# ---------------- trace-time sparse helpers -----------------------------------
# Amplitude components are either a (SUB_R, 128) plane, None (identically 0),
# or the Python float 1.0 (identity plane of the initial |0..0> state).

def _mul(coef, val):
    if val is None:
        return None
    if isinstance(val, float):
        return coef if val == 1.0 else coef * val
    return coef * val


def _add(a, b):
    if a is None:
        return b
    if b is None:
        return a
    return a + b


def _sub(a, b):
    if b is None:
        return a
    if a is None:
        return -b
    return a - b


def _sq(v):
    return None if v is None else v * v


def _qbit(q):
    # PennyLane convention: wire 0 is the most-significant bit of the basis index.
    return 1 << (N_QUBITS - 1 - q)


# ---------------- fused sincos (shared range reduction, parity-only select) ----
_TWO_OVER_PI = 0.6366197723675814
_PIO2_HI = 1.5707963705062866      # float32(pi/2)
_PIO2_LO = -4.371139000186243e-08  # pi/2 - float32(pi/2)


def _sincos_half_upto_sign(theta):
    """Return (c, s) = +/-(cos(theta/2), sin(theta/2)) with a common per-element sign.

    One range reduction feeds both polynomials.  The common sign is harmless:
    a rotation gate built from (-c, -s) equals -1 times the gate built from
    (c, s) — a per-lane global phase that cancels in |amplitude|^2 before the
    PauliZ readout.  Accuracy ~1e-7 for |theta| up to a few thousand (single
    Cody-Waite step), far inside the 1e-5 test tolerance.
    """
    h = 0.5 * theta
    q = jnp.floor(h * _TWO_OVER_PI + 0.5)          # nearest quadrant
    r = h - q * _PIO2_HI
    r = r - q * _PIO2_LO                            # |r| <= pi/4
    r2 = r * r
    # cephes f32 minimax polynomials on [-pi/4, pi/4]
    sr = r + r * r2 * ((-1.9515295891e-4 * r2 + 8.3321608736e-3) * r2
                       - 1.6666654611e-1)
    cr = 1.0 - 0.5 * r2 + r2 * r2 * ((2.443315711809948e-5 * r2
                                      - 1.388731625493765e-3) * r2
                                     + 4.166664568298827e-2)
    odd = (q.astype(jnp.int32) & 1) == 1
    c = jnp.where(odd, -sr, cr)
    s = jnp.where(odd, cr, sr)
    return c, s


# ---------------- statevector gates (unrolled at trace time) ------------------
def _apply_ry(amps, q, c, s):
    bit = _qbit(q)
    new = list(amps)
    for i0 in range(DIM):
        if i0 & bit:
            continue
        i1 = i0 | bit
        r0, m0 = amps[i0]
        r1, m1 = amps[i1]
        new[i0] = (_sub(_mul(c, r0), _mul(s, r1)), _sub(_mul(c, m0), _mul(s, m1)))
        new[i1] = (_add(_mul(s, r0), _mul(c, r1)), _add(_mul(s, m0), _mul(c, m1)))
    return new


def _apply_rz(amps, q, c, s):
    bit = _qbit(q)
    new = list(amps)
    for i in range(DIM):
        r, m = amps[i]
        if i & bit:   # multiply by exp(+i*theta/2)
            new[i] = (_sub(_mul(c, r), _mul(s, m)), _add(_mul(s, r), _mul(c, m)))
        else:         # multiply by exp(-i*theta/2)
            new[i] = (_add(_mul(c, r), _mul(s, m)), _sub(_mul(c, m), _mul(s, r)))
    return new


def _apply_cnot(amps, control, target):
    # Pure basis-state permutation: free trace-time relabeling.
    cbit = _qbit(control)
    tbit = _qbit(target)
    new = list(amps)
    for i in range(DIM):
        if (i & cbit) and not (i & tbit):
            j = i | tbit
            new[i], new[j] = amps[j], amps[i]
    return new


def _simulate_subtile(f_ref, r0, cw_pl, sw_pl):
    """Simulate the circuit for one (SUB_R, 128) sub-tile of patch instances.

    f_ref:  (L, BLOCK_R, 128) VMEM ref of angles; rows [r0, r0+SUB_R) are used.
    cw_pl, sw_pl: dicts of (SUB_R, 128) planes = splatted cos(w/2), sin(w/2).
    Returns a list of N_QUBITS (SUB_R, 128) PauliZ expectation planes.
    """
    L = f_ref.shape[0]
    n_chunks = L // N_QUBITS
    rows = pl.ds(r0, SUB_R)

    amps = [(1.0 if i == 0 else None, None) for i in range(DIM)]

    for d in range(DEPTH):
        # multi-angle data re-uploading: alternating RY / RZ per chunk.
        for c in range(n_chunks):
            for q in range(N_QUBITS):
                theta = f_ref[c * N_QUBITS + q, rows, :]
                ct, st = _sincos_half_upto_sign(theta)
                if c % 2 == 0:
                    amps = _apply_ry(amps, q, ct, st)
                else:
                    amps = _apply_rz(amps, q, ct, st)
        # variational RY layer (host-side trig, splatted once per kernel call).
        for q in range(N_QUBITS):
            amps = _apply_ry(amps, q, cw_pl[(d, q)], sw_pl[(d, q)])
        # variational RZ layer: phase-only, so on the final depth it cannot
        # change |amp|^2 before the PauliZ readout -> elide it there.
        if d != DEPTH - 1:
            for q in range(N_QUBITS):
                amps = _apply_rz(amps, q,
                                 cw_pl[(d, N_QUBITS + q)], sw_pl[(d, N_QUBITS + q)])
        # ring entanglement (free relabeling; still needed: it permutes probs).
        for q in range(N_QUBITS):
            amps = _apply_cnot(amps, q, (q + 1) % N_QUBITS)

    probs = [_add(_sq(r), _sq(m)) for (r, m) in amps]
    zs = []
    for q in range(N_QUBITS):
        bit = _qbit(q)
        z = None
        for i in range(DIM):
            z = _add(z, probs[i]) if (i & bit) == 0 else _sub(z, probs[i])
        if z is None or isinstance(z, float):       # degenerate (never for this config)
            z = jnp.full((SUB_R, 128), 1.0 if z is None else z, jnp.float32)
        zs.append(z)
    return zs


# ---------------- Pallas kernel ------------------------------------------------
def quanv_kernel(cw_ref, sw_ref, f_ref, o_ref):
    # cw_ref, sw_ref: (DEPTH*2*N_QUBITS,) in SMEM (cos(w/2), sin(w/2) scalars)
    # f_ref: (L, BLOCK_R, 128) in VMEM; o_ref: (N_QUBITS, BLOCK_R, 128) in VMEM
    block_r = f_ref.shape[1]
    n_sub = block_r // SUB_R

    # Splat the per-call-constant variational cos/sin exactly once (JAX does
    # not CSE broadcast_in_dim), hoisted out of the sub-tile loop.
    def _splat(ref, idx):
        return jnp.full((SUB_R, 128), ref[idx], jnp.float32)

    cw_pl, sw_pl = {}, {}
    for d in range(DEPTH):
        base = d * 2 * N_QUBITS
        for q in range(N_QUBITS):                               # RY layer
            cw_pl[(d, q)] = _splat(cw_ref, base + q)
            sw_pl[(d, q)] = _splat(sw_ref, base + q)
        if d != DEPTH - 1:                                      # RZ layer (elided on last depth)
            for q in range(N_QUBITS):
                cw_pl[(d, N_QUBITS + q)] = _splat(cw_ref, base + N_QUBITS + q)
                sw_pl[(d, N_QUBITS + q)] = _splat(sw_ref, base + N_QUBITS + q)

    # Real in-kernel loop over (8,128) sub-tiles: bounds live ranges (~25 vregs
    # per iteration) instead of fully unrolling block_r//8 copies of the trace.
    @pl.loop(0, n_sub)
    def _(t):
        r0 = pl.multiple_of(t * SUB_R, SUB_R)
        zs = _simulate_subtile(f_ref, r0, cw_pl, sw_pl)
        for q in range(N_QUBITS):
            o_ref[q, pl.ds(r0, SUB_R), :] = zs[q]


# ---------------- glue: patch extraction + grid/block selection ----------------
def _extract_feats(x):
    """(B, C, H, W) -> feats (L, N) matching the PyTorch loop + flatten order.

    Single transpose directly into the L-major layout (instance axis last), so
    the wrapper does one HBM pass over the patch tensor instead of two."""
    B, C, H, W = x.shape
    k = KERNEL_SIZE
    assert k == 2 and H % k == 0 and W % k == 0, "module loop assumes 2x2/stride-2 patches"
    ph, pw = H // k, W // k
    P = ph * pw
    L = C * k * k
    assert L % N_QUBITS == 0, "flattened patch length must be a multiple of n_qubits"
    # (B, C, ph, kh, pw, kw) -> (C, kh, kw, B, ph, pw):
    #   feature axis in torch.flatten (C, kh, kw) order,
    #   instance axis in (b, patch_i, patch_j) order (matches the i/j loop + cat).
    t = x.reshape(B, C, ph, k, pw, k).transpose(1, 3, 5, 0, 2, 4)
    feats = t.reshape(L, B * P).astype(jnp.float32)
    return feats, B, P, L


def _device_info():
    """(vmem_capacity_bytes, tensorcores_per_chip) — defensive trace-time query."""
    vmem = 64 * 1024 * 1024
    n_tc = 1
    try:
        info = pltpu.get_tpu_info()
        cap = int(getattr(info, "vmem_capacity_bytes", vmem))
        if cap > 0:
            vmem = cap
    except Exception:
        pass
    try:
        kind = jax.devices()[0].device_kind.lower()
        if "v7" in kind or "7x" in kind:      # two TensorCores share one Pallas grid
            n_tc = 2
    except Exception:
        pass
    return vmem, n_tc


def _pick_grid(r_needed, L, vmem_bytes, n_tc):
    """Pick (block_r, steps): rows of 128 lanes per grid step and the grid size.

    Explicit VMEM footprint (double-buffered input + output blocks) against a
    generation-aware budget; one big block on 1-TC chips, an even number of
    steps >= 2 on 2-TC chips so both cores get balanced work."""
    bytes_per_row = (L + N_QUBITS) * 128 * 4          # one 128-lane row, input + output
    budget = max(2 * 2 * bytes_per_row * SUB_R, vmem_bytes // 8)   # ~16 MiB v5e/v6e, ~8 MiB v7x
    max_block_r = (budget // (2 * bytes_per_row)) // SUB_R * SUB_R
    max_block_r = int(max(SUB_R, min(max_block_r, MAX_BLOCK_R)))

    steps = -(-r_needed // max_block_r)               # fewest steps within budget
    steps = max(steps, n_tc)                          # >= 1 step per TensorCore
    steps = -(-steps // n_tc) * n_tc                  # multiple of #TCs (no odd imbalance)

    rows_per_step = -(-r_needed // steps)
    block_r = -(-rows_per_step // SUB_R) * SUB_R      # round up to full (8,128) sub-tiles
    block_r = max(SUB_R, block_r)
    return block_r, steps


def quan2d_forward(x, weights):
    feats, B, P, L = _extract_feats(x)                # (L, N)
    N = B * P

    vmem_bytes, n_tc = _device_info()
    r_needed = -(-N // 128)
    block_r, steps = _pick_grid(r_needed, L, vmem_bytes, n_tc)
    r_total = block_r * steps
    n_pad = r_total * 128

    feats = jnp.pad(feats, ((0, 0), (0, n_pad - N)))  # padded lanes: theta=0, sliced off later
    feats3 = feats.reshape(L, r_total, 128)           # lane-dense 3-D layout

    w = weights.astype(jnp.float32).reshape(-1)       # 1-D -> no 2-D SMEM padding
    cw = jnp.cos(0.5 * w)                             # hoisted variational trig
    sw = jnp.sin(0.5 * w)

    bytes_per_row = (L + N_QUBITS) * 128 * 4
    footprint = 2 * bytes_per_row * block_r           # double-buffered in + out blocks
    vmem_limit = int(min(vmem_bytes, max(32 << 20, 2 * footprint + (4 << 20))))

    n_rot = DEPTH * (L + 2 * N_QUBITS)
    cost = pl.CostEstimate(
        flops=int((n_rot * DIM * 6 + DEPTH * L * 20) * n_pad),
        transcendentals=0,                            # trig is in-kernel polynomial now
        bytes_accessed=int((L + N_QUBITS) * n_pad * 4),
    )

    out3 = pl.pallas_call(
        quanv_kernel,
        out_shape=jax.ShapeDtypeStruct((N_QUBITS, r_total, 128), jnp.float32),
        grid=(steps,),
        in_specs=[
            pl.BlockSpec(memory_space=pltpu.MemorySpace.SMEM),          # cos(w/2)
            pl.BlockSpec(memory_space=pltpu.MemorySpace.SMEM),          # sin(w/2)
            pl.BlockSpec((L, block_r, 128), lambda i: (0, i, 0)),       # patch feats
        ],
        out_specs=pl.BlockSpec((N_QUBITS, block_r, 128), lambda i: (0, i, 0)),
        compiler_params=pltpu.CompilerParams(
            dimension_semantics=("parallel",),
            vmem_limit_bytes=vmem_limit,
        ),
        cost_estimate=cost,
    )(cw, sw, feats3)

    out = out3.reshape(N_QUBITS, n_pad)[:, :N]        # (N_QUBITS, N)
    return out.T.reshape(B, P * N_QUBITS)


# ---------------- pure-JAX reference (dense, full gate set, exact trig) --------
def _ref_ry(amps, q, theta):
    c = jnp.cos(0.5 * theta)
    s = jnp.sin(0.5 * theta)
    bit = _qbit(q)
    new = list(amps)
    for i0 in range(DIM):
        if i0 & bit:
            continue
        i1 = i0 | bit
        r0, m0 = amps[i0]
        r1, m1 = amps[i1]
        new[i0] = (c * r0 - s * r1, c * m0 - s * m1)
        new[i1] = (s * r0 + c * r1, s * m0 + c * m1)
    return new


def _ref_rz(amps, q, theta):
    c = jnp.cos(0.5 * theta)
    s = jnp.sin(0.5 * theta)
    bit = _qbit(q)
    new = list(amps)
    for i in range(DIM):
        r, m = amps[i]
        if i & bit:
            new[i] = (c * r - s * m, s * r + c * m)
        else:
            new[i] = (c * r + s * m, c * m - s * r)
    return new


def quan2d_reference(x, weights):
    """Independent plain-JAX reference: full gate set (incl. the final RZ the
    kernel elides), exact per-gate trig, dense planes — validates the kernel's
    algebraic shortcuts (sign-free sincos, RZ elision, CNOT relabeling) and
    all the layout plumbing."""
    feats, B, P, L = _extract_feats(x)                # (L, N)
    n = feats.shape[1]
    zero = jnp.zeros((n,), jnp.float32)
    one = jnp.ones((n,), jnp.float32)
    amps = [((one if i == 0 else zero), zero) for i in range(DIM)]
    n_chunks = L // N_QUBITS
    w = weights.astype(jnp.float32)
    for d in range(DEPTH):
        for c in range(n_chunks):
            for q in range(N_QUBITS):
                theta = feats[c * N_QUBITS + q]
                amps = _ref_ry(amps, q, theta) if c % 2 == 0 else _ref_rz(amps, q, theta)
        for q in range(N_QUBITS):
            amps = _ref_ry(amps, q, zero + w[d, q])
        for q in range(N_QUBITS):
            amps = _ref_rz(amps, q, zero + w[d, N_QUBITS + q])
        for q in range(N_QUBITS):
            amps = _apply_cnot(amps, q, (q + 1) % N_QUBITS)
    probs = [r * r + m * m for (r, m) in amps]
    rows = []
    for q in range(N_QUBITS):
        bit = _qbit(q)
        z = zero
        for i in range(DIM):
            z = (z + probs[i]) if (i & bit) == 0 else (z - probs[i])
        rows.append(z)
    out = jnp.stack(rows, axis=0)                     # (N_QUBITS, N)
    return out.T.reshape(B, P * N_QUBITS)


# ---------------- main ----------------------------------------------------------
if __name__ == "__main__":
    key = jax.random.PRNGKey(0)
    kx, kw = jax.random.split(key)

    B, C, H, W = 2, 4, 16, 16
    x = jax.random.normal(kx, (B, C, H, W), dtype=jnp.float32)
    # TorchLayer default init: uniform [0, 2*pi)
    weights = jax.random.uniform(kw, (DEPTH, 2 * N_QUBITS),
                                 dtype=jnp.float32, minval=0.0, maxval=2.0 * jnp.pi)

    y = jax.block_until_ready(quan2d_forward(x, weights))
    y_ref = jax.block_until_ready(quan2d_reference(x, weights))

    expected_shape = (B, (H // 2) * (W // 2) * N_QUBITS)
    assert y.shape == expected_shape, (y.shape, expected_shape)
    assert jnp.allclose(y, y_ref, atol=1e-5, rtol=1e-5), "Pallas output mismatch vs JAX reference"

    print("KERNEL_OK")
</pallas_src>

<mosaic_0001>
module attributes {stable_mosaic.version = 11 : i64} {
  func.func @quanv_kernel(%arg0: i32, %arg1: memref<4xf32, #tpu.memory_space<smem>>, %arg2: memref<4xf32, #tpu.memory_space<smem>>, %arg3: memref<16x8x128xf32, #tpu.memory_space<vmem>>, %arg4: memref<2x8x128xf32, #tpu.memory_space<vmem>>) attributes {dimension_semantics = [#tpu.dimension_semantics<parallel>], iteration_bounds = array<i64: 1>, scalar_prefetch = 0 : i64, scratch_operands = 0 : i64, tpu.core_type = #tpu.core_type<tc>, window_params = [{transform_indices = @transform_0, window_bounds = array<i64: 4>}, {transform_indices = @transform_1, window_bounds = array<i64: 4>}, {transform_indices = @transform_2, window_bounds = array<i64: 16, 8, 128>}, {transform_indices = @transform_3, window_bounds = array<i64: 2, 8, 128>}]} {
    %c0 = arith.constant 0 : index
    %0 = memref.load %arg1[%c0] : memref<4xf32, #tpu.memory_space<smem>>
    %1 = vector.broadcast %0 : f32 to vector<8x128xf32>
    %c0_0 = arith.constant 0 : index
    %2 = memref.load %arg2[%c0_0] : memref<4xf32, #tpu.memory_space<smem>>
    %3 = vector.broadcast %2 : f32 to vector<8x128xf32>
    %c1 = arith.constant 1 : index
    %4 = memref.load %arg1[%c1] : memref<4xf32, #tpu.memory_space<smem>>
    %5 = vector.broadcast %4 : f32 to vector<8x128xf32>
    %c1_1 = arith.constant 1 : index
    %6 = memref.load %arg2[%c1_1] : memref<4xf32, #tpu.memory_space<smem>>
    %7 = vector.broadcast %6 : f32 to vector<8x128xf32>
    %c0_i32 = arith.constant 0 : i32
    %c1_i32 = arith.constant 1 : i32
    %8 = arith.muli %c0_i32, %c1_i32 : i32
    %c0_i32_2 = arith.constant 0 : i32
    %9 = arith.addi %c0_i32_2, %8 : i32
    %c8_i32 = arith.constant 8 : i32
    %10 = arith.muli %9, %c8_i32 : i32
    %11 = tpu.assume_multiple %10, 8 : i32
    %c0_3 = arith.constant 0 : index
    %12 = arith.index_cast %11 : i32 to index
    %c0_4 = arith.constant 0 : index
    %13 = vector.load %arg3[%c0_3, %12, %c0_4] : memref<16x8x128xf32, #tpu.memory_space<vmem>>, vector<1x8x128xf32>
    %14 = vector.shape_cast %13 : vector<1x8x128xf32> to vector<8x128xf32>
    %cst = arith.constant 5.000000e-01 : f32
    %15 = vector.broadcast %cst : f32 to vector<8x128xf32>
    %16 = arith.mulf %15, %14 : vector<8x128xf32>
    %cst_5 = arith.constant 0.636619746 : f32
    %17 = vector.broadcast %cst_5 : f32 to vector<8x128xf32>
    %18 = arith.mulf %16, %17 : vector<8x128xf32>
    %cst_6 = arith.constant 5.000000e-01 : f32
    %19 = vector.broadcast %cst_6 : f32 to vector<8x128xf32>
    %20 = arith.addf %18, %19 : vector<8x128xf32>
    %21 = math.floor %20 : vector<8x128xf32>
    %cst_7 = arith.constant 1.57079637 : f32
    %22 = vector.broadcast %cst_7 : f32 to vector<8x128xf32>
    %23 = arith.mulf %21, %22 : vector<8x128xf32>
    %24 = arith.subf %16, %23 : vector<8x128xf32>
    %cst_8 = arith.constant -4.37113883E-8 : f32
    %25 = vector.broadcast %cst_8 : f32 to vector<8x128xf32>
    %26 = arith.mulf %21, %25 : vector<8x128xf32>
    %27 = arith.subf %24, %26 : vector<8x128xf32>
    %28 = arith.mulf %27, %27 : vector<8x128xf32>
    %29 = arith.mulf %27, %28 : vector<8x128xf32>
    %cst_9 = arith.constant -1.95152956E-4 : f32
    %30 = vector.broadcast %cst_9 : f32 to vector<8x128xf32>
    %31 = arith.mulf %30, %28 : vector<8x128xf32>
    %cst_10 = arith.constant 0.00833216123 : f32
    %32 = vector.broadcast %cst_10 : f32 to vector<8x128xf32>
    %33 = arith.addf %31, %32 : vector<8x128xf32>
    %34 = arith.mulf %33, %28 : vector<8x128xf32>
    %cst_11 = arith.constant 0.166666552 : f32
    %35 = vector.broadcast %cst_11 : f32 to vector<8x128xf32>
    %36 = arith.subf %34, %35 : vector<8x128xf32>
    %37 = arith.mulf %29, %36 : vector<8x128xf32>
    %38 = arith.addf %27, %37 : vector<8x128xf32>
    %cst_12 = arith.constant 5.000000e-01 : f32
    %39 = vector.broadcast %cst_12 : f32 to vector<8x128xf32>
    %40 = arith.mulf %39, %28 : vector<8x128xf32>
    %cst_13 = arith.constant 1.000000e+00 : f32
    %41 = vector.broadcast %cst_13 : f32 to vector<8x128xf32>
    %42 = arith.subf %41, %40 : vector<8x128xf32>
    %43 = arith.mulf %28, %28 : vector<8x128xf32>
    %cst_14 = arith.constant 2.44331568E-5 : f32
    %44 = vector.broadcast %cst_14 : f32 to vector<8x128xf32>
    %45 = arith.mulf %44, %28 : vector<8x128xf32>
    %cst_15 = arith.constant 0.00138873165 : f32
    %46 = vector.broadcast %cst_15 : f32 to vector<8x128xf32>
    %47 = arith.subf %45, %46 : vector<8x128xf32>
    %48 = arith.mulf %47, %28 : vector<8x128xf32>
    %cst_16 = arith.constant 0.0416666456 : f32
    %49 = vector.broadcast %cst_16 : f32 to vector<8x128xf32>
    %50 = arith.addf %48, %49 : vector<8x128xf32>
    %51 = arith.mulf %43, %50 : vector<8x128xf32>
    %52 = arith.addf %42, %51 : vector<8x128xf32>
    %53 = arith.fptosi %21 : vector<8x128xf32> to vector<8x128xi32>
    %c1_i32_17 = arith.constant 1 : i32
    %54 = vector.broadcast %c1_i32_17 : i32 to vector<8x128xi32>
    %55 = arith.andi %53, %54 : vector<8x128xi32>
    %c1_i32_18 = arith.constant 1 : i32
    %56 = vector.broadcast %c1_i32_18 : i32 to vector<8x128xi32>
    %57 = arith.cmpi eq, %55, %56 : vector<8x128xi32>
    %cst_19 = arith.constant 0.000000e+00 : f32
    %58 = vector.broadcast %cst_19 : f32 to vector<8x128xf32>
    %59 = arith.subf %58, %38 : vector<8x128xf32>
    %60 = arith.select %57, %59, %52 : vector<8x128xi1>, vector<8x128xf32>
    %61 = arith.select %57, %52, %38 : vector<8x128xi1>, vector<8x128xf32>
    %c1_20 = arith.constant 1 : index
    %62 = arith.index_cast %11 : i32 to index
    %c0_21 = arith.constant 0 : index
    %63 = vector.load %arg3[%c1_20, %62, %c0_21] : memref<16x8x128xf32, #tpu.memory_space<vmem>>, vector<1x8x128xf32>
    %64 = vector.shape_cast %63 : vector<1x8x128xf32> to vector<8x128xf32>
    %cst_22 = arith.constant 5.000000e-01 : f32
    %65 = vector.broadcast %cst_22 : f32 to vector<8x128xf32>
    %66 = arith.mulf %65, %64 : vector<8x128xf32>
    %cst_23 = arith.constant 0.636619746 : f32
    %67 = vector.broadcast %cst_23 : f32 to vector<8x128xf32>
    %68 = arith.mulf %66, %67 : vector<8x128xf32>
    %cst_24 = arith.constant 5.000000e-01 : f32
    %69 = vector.broadcast %cst_24 : f32 to vector<8x128xf32>
    %70 = arith.addf %68, %69 : vector<8x128xf32>
    %71 = math.floor %70 : vector<8x128xf32>
    %cst_25 = arith.constant 1.57079637 : f32
    %72 = vector.broadcast %cst_25 : f32 to vector<8x128xf32>
    %73 = arith.mulf %71, %72 : vector<8x128xf32>
    %74 = arith.subf %66, %73 : vector<8x128xf32>
    %cst_26 = arith.constant -4.37113883E-8 : f32
    %75 = vector.broadcast %cst_26 : f32 to vector<8x128xf32>
    %76 = arith.mulf %71, %75 : vector<8x128xf32>
    %77 = arith.subf %74, %76 : vector<8x128xf32>
    %78 = arith.mulf %77, %77 : vector<8x128xf32>
    %79 = arith.mulf %77, %78 : vector<8x128xf32>
    %cst_27 = arith.constant -1.95152956E-4 : f32
    %80 = vector.broadcast %cst_27 : f32 to vector<8x128xf32>
    %81 = arith.mulf %80, %78 : vector<8x128xf32>
    %cst_28 = arith.constant 0.00833216123 : f32
    %82 = vector.broadcast %cst_28 : f32 to vector<8x128xf32>
    %83 = arith.addf %81, %82 : vector<8x128xf32>
    %84 = arith.mulf %83, %78 : vector<8x128xf32>
    %cst_29 = arith.constant 0.166666552 : f32
    %85 = vector.broadcast %cst_29 : f32 to vector<8x128xf32>
    %86 = arith.subf %84, %85 : vector<8x128xf32>
    %87 = arith.mulf %79, %86 : vector<8x128xf32>
    %88 = arith.addf %77, %87 : vector<8x128xf32>
    %cst_30 = arith.constant 5.000000e-01 : f32
    %89 = vector.broadcast %cst_30 : f32 to vector<8x128xf32>
    %90 = arith.mulf %89, %78 : vector<8x128xf32>
    %cst_31 = arith.constant 1.000000e+00 : f32
    %91 = vector.broadcast %cst_31 : f32 to vector<8x128xf32>
    %92 = arith.subf %91, %90 : vector<8x128xf32>
    %93 = arith.mulf %78, %78 : vector<8x128xf32>
    %cst_32 = arith.constant 2.44331568E-5 : f32
    %94 = vector.broadcast %cst_32 : f32 to vector<8x128xf32>
    %95 = arith.mulf %94, %78 : vector<8x128xf32>
    %cst_33 = arith.constant 0.00138873165 : f32
    %96 = vector.broadcast %cst_33 : f32 to vector<8x128xf32>
    %97 = arith.subf %95, %96 : vector<8x128xf32>
    %98 = arith.mulf %97, %78 : vector<8x128xf32>
    %cst_34 = arith.constant 0.0416666456 : f32
    %99 = vector.broadcast %cst_34 : f32 to vector<8x128xf32>
    %100 = arith.addf %98, %99 : vector<8x128xf32>
    %101 = arith.mulf %93, %100 : vector<8x128xf32>
    %102 = arith.addf %92, %101 : vector<8x128xf32>
    %103 = arith.fptosi %71 : vector<8x128xf32> to vector<8x128xi32>
    %c1_i32_35 = arith.constant 1 : i32
    %104 = vector.broadcast %c1_i32_35 : i32 to vector<8x128xi32>
    %105 = arith.andi %103, %104 : vector<8x128xi32>
    %c1_i32_36 = arith.constant 1 : i32
    %106 = vector.broadcast %c1_i32_36 : i32 to vector<8x128xi32>
    %107 = arith.cmpi eq, %105, %106 : vector<8x128xi32>
    %cst_37 = arith.constant 0.000000e+00 : f32
    %108 = vector.broadcast %cst_37 : f32 to vector<8x128xf32>
    %109 = arith.subf %108, %88 : vector<8x128xf32>
    %110 = arith.select %107, %109, %102 : vector<8x128xi1>, vector<8x128xf32>
    %111 = arith.select %107, %102, %88 : vector<8x128xi1>, vector<8x128xf32>
    %112 = arith.mulf %110, %60 : vector<8x128xf32>
    %113 = arith.mulf %111, %60 : vector<8x128xf32>
    %114 = arith.mulf %110, %61 : vector<8x128xf32>
    %115 = arith.mulf %111, %61 : vector<8x128xf32>
    %c2 = arith.constant 2 : index
    %116 = arith.index_cast %11 : i32 to index
    %c0_38 = arith.constant 0 : index
    %117 = vector.load %arg3[%c2, %116, %c0_38] : memref<16x8x128xf32, #tpu.memory_space<vmem>>, vector<1x8x128xf32>
    %118 = vector.shape_cast %117 : vector<1x8x128xf32> to vector<8x128xf32>
    %cst_39 = arith.constant 5.000000e-01 : f32
    %119 = vector.broadcast %cst_39 : f32 to vector<8x128xf32>
    %120 = arith.mulf %119, %118 : vector<8x128xf32>
    %cst_40 = arith.constant 0.636619746 : f32
    %121 = vector.broadcast %cst_40 : f32 to vector<8x128xf32>
    %122 = arith.mulf %120, %121 : vector<8x128xf32>
    %cst_41 = arith.constant 5.000000e-01 : f32
    %123 = vector.broadcast %cst_41 : f32 to vector<8x128xf32>
    %124 = arith.addf %122, %123 : vector<8x128xf32>
    %125 = math.floor %124 : vector<8x128xf32>
    %cst_42 = arith.constant 1.57079637 : f32
    %126 = vector.broadcast %cst_42 : f32 to vector<8x128xf32>
    %127 = arith.mulf %125, %126 : vector<8x128xf32>
    %128 = arith.subf %120, %127 : vector<8x128xf32>
    %cst_43 = arith.constant -4.37113883E-8 : f32
    %129 = vector.broadcast %cst_43 : f32 to vector<8x128xf32>
    %130 = arith.mulf %125, %129 : vector<8x128xf32>
    %131 = arith.subf %128, %130 : vector<8x128xf32>
    %132 = arith.mulf %131, %131 : vector<8x128xf32>
    %133 = arith.mulf %131, %132 : vector<8x128xf32>
    %cst_44 = arith.constant -1.95152956E-4 : f32
    %134 = vector.broadcast %cst_44 : f32 to vector<8x128xf32>
    %135 = arith.mulf %134, %132 : vector<8x128xf32>
    %cst_45 = arith.constant 0.00833216123 : f32
    %136 = vector.broadcast %cst_45 : f32 to vector<8x128xf32>
    %137 = arith.addf %135, %136 : vector<8x128xf32>
    %138 = arith.mulf %137, %132 : vector<8x128xf32>
    %cst_46 = arith.constant 0.166666552 : f32
    %139 = vector.broadcast %cst_46 : f32 to vector<8x128xf32>
    %140 = arith.subf %138, %139 : vector<8x128xf32>
    %141 = arith.mulf %133, %140 : vector<8x128xf32>
    %142 = arith.addf %131, %141 : vector<8x128xf32>
    %cst_47 = arith.constant 5.000000e-01 : f32
    %143 = vector.broadcast %cst_47 : f32 to vector<8x128xf32>
    %144 = arith.mulf %143, %132 : vector<8x128xf32>
    %cst_48 = arith.constant 1.000000e+00 : f32
    %145 = vector.broadcast %cst_48 : f32 to vector<8x128xf32>
    %146 = arith.subf %145, %144 : vector<8x128xf32>
    %147 = arith.mulf %132, %132 : vector<8x128xf32>
    %cst_49 = arith.constant 2.44331568E-5 : f32
    %148 = vector.broadcast %cst_49 : f32 to vector<8x128xf32>
    %149 = arith.mulf %148, %132 : vector<8x128xf32>
    %cst_50 = arith.constant 0.00138873165 : f32
    %150 = vector.broadcast %cst_50 : f32 to vector<8x128xf32>
    %151 = arith.subf %149, %150 : vector<8x128xf32>
    %152 = arith.mulf %151, %132 : vector<8x128xf32>
    %cst_51 = arith.constant 0.0416666456 : f32
    %153 = vector.broadcast %cst_51 : f32 to vector<8x128xf32>
    %154 = arith.addf %152, %153 : vector<8x128xf32>
    %155 = arith.mulf %147, %154 : vector<8x128xf32>
    %156 = arith.addf %146, %155 : vector<8x128xf32>
    %157 = arith.fptosi %125 : vector<8x128xf32> to vector<8x128xi32>
    %c1_i32_52 = arith.constant 1 : i32
    %158 = vector.broadcast %c1_i32_52 : i32 to vector<8x128xi32>
    %159 = arith.andi %157, %158 : vector<8x128xi32>
    %c1_i32_53 = arith.constant 1 : i32
    %160 = vector.broadcast %c1_i32_53 : i32 to vector<8x128xi32>
    %161 = arith.cmpi eq, %159, %160 : vector<8x128xi32>
    %cst_54 = arith.constant 0.000000e+00 : f32
    %162 = vector.broadcast %cst_54 : f32 to vector<8x128xf32>
    %163 = arith.subf %162, %142 : vector<8x128xf32>
    %164 = arith.select %161, %163, %156 : vector<8x128xi1>, vector<8x128xf32>
    %165 = arith.select %161, %156, %142 : vector<8x128xi1>, vector<8x128xf32>
    %166 = arith.mulf %164, %112 : vector<8x128xf32>
    %167 = arith.mulf %165, %112 : vector<8x128xf32>
    %cst_55 = arith.constant 0.000000e+00 : f32
    %168 = vector.broadcast %cst_55 : f32 to vector<8x128xf32>
    %169 = arith.subf %168, %167 : vector<8x128xf32>
    %170 = arith.mulf %164, %113 : vector<8x128xf32>
    %171 = arith.mulf %165, %113 : vector<8x128xf32>
    %cst_56 = arith.constant 0.000000e+00 : f32
    %172 = vector.broadcast %cst_56 : f32 to vector<8x128xf32>
    %173 = arith.subf %172, %171 : vector<8x128xf32>
    %174 = arith.mulf %164, %114 : vector<8x128xf32>
    %175 = arith.mulf %165, %114 : vector<8x128xf32>
    %176 = arith.mulf %164, %115 : vector<8x128xf32>
    %177 = arith.mulf %165, %115 : vector<8x128xf32>
    %c3 = arith.constant 3 : index
    %178 = arith.index_cast %11 : i32 to index
    %c0_57 = arith.constant 0 : index
    %179 = vector.load %arg3[%c3, %178, %c0_57] : memref<16x8x128xf32, #tpu.memory_space<vmem>>, vector<1x8x128xf32>
    %180 = vector.shape_cast %179 : vector<1x8x128xf32> to vector<8x128xf32>
    %cst_58 = arith.constant 5.000000e-01 : f32
    %181 = vector.broadcast %cst_58 : f32 to vector<8x128xf32>
    %182 = arith.mulf %181, %180 : vector<8x128xf32>
    %cst_59 = arith.constant 0.636619746 : f32
    %183 = vector.broadcast %cst_59 : f32 to vector<8x128xf32>
    %184 = arith.mulf %182, %183 : vector<8x128xf32>
    %cst_60 = arith.constant 5.000000e-01 : f32
    %185 = vector.broadcast %cst_60 : f32 to vector<8x128xf32>
    %186 = arith.addf %184, %185 : vector<8x128xf32>
    %187 = math.floor %186 : vector<8x128xf32>
    %cst_61 = arith.constant 1.57079637 : f32
    %188 = vector.broadcast %cst_61 : f32 to vector<8x128xf32>
    %189 = arith.mulf %187, %188 : vector<8x128xf32>
    %190 = arith.subf %182, %189 : vector<8x128xf32>
    %cst_62 = arith.constant -4.37113883E-8 : f32
    %191 = vector.broadcast %cst_62 : f32 to vector<8x128xf32>
    %192 = arith.mulf %187, %191 : vector<8x128xf32>
    %193 = arith.subf %190, %192 : vector<8x128xf32>
    %194 = arith.mulf %193, %193 : vector<8x128xf32>
    %195 = arith.mulf %193, %194 : vector<8x128xf32>
    %cst_63 = arith.constant -1.95152956E-4 : f32
    %196 = vector.broadcast %cst_63 : f32 to vector<8x128xf32>
    %197 = arith.mulf %196, %194 : vector<8x128xf32>
    %cst_64 = arith.constant 0.00833216123 : f32
    %198 = vector.broadcast %cst_64 : f32 to vector<8x128xf32>
    %199 = arith.addf %197, %198 : vector<8x128xf32>
    %200 = arith.mulf %199, %194 : vector<8x128xf32>
    %cst_65 = arith.constant 0.166666552 : f32
    %201 = vector.broadcast %cst_65 : f32 to vector<8x128xf32>
    %202 = arith.subf %200, %201 : vector<8x128xf32>
    %203 = arith.mulf %195, %202 : vector<8x128xf32>
    %204 = arith.addf %193, %203 : vector<8x128xf32>
    %cst_66 = arith.constant 5.000000e-01 : f32
    %205 = vector.broadcast %cst_66 : f32 to vector<8x128xf32>
    %206 = arith.mulf %205, %194 : vector<8x128xf32>
    %cst_67 = arith.constant 1.000000e+00 : f32
    %207 = vector.broadcast %cst_67 : f32 to vector<8x128xf32>
    %208 = arith.subf %207, %206 : vector<8x128xf32>
    %209 = arith.mulf %194, %194 : vector<8x128xf32>
    %cst_68 = arith.constant 2.44331568E-5 : f32
    %210 = vector.broadcast %cst_68 : f32 to vector<8x128xf32>
    %211 = arith.mulf %210, %194 : vector<8x128xf32>
    %cst_69 = arith.constant 0.00138873165 : f32
    %212 = vector.broadcast %cst_69 : f32 to vector<8x128xf32>
    %213 = arith.subf %211, %212 : vector<8x128xf32>
    %214 = arith.mulf %213, %194 : vector<8x128xf32>
    %cst_70 = arith.constant 0.0416666456 : f32
    %215 = vector.broadcast %cst_70 : f32 to vector<8x128xf32>
    %216 = arith.addf %214, %215 : vector<8x128xf32>
    %217 = arith.mulf %209, %216 : vector<8x128xf32>
    %218 = arith.addf %208, %217 : vector<8x128xf32>
    %219 = arith.fptosi %187 : vector<8x128xf32> to vector<8x128xi32>
    %c1_i32_71 = arith.constant 1 : i32
    %220 = vector.broadcast %c1_i32_71 : i32 to vector<8x128xi32>
    %221 = arith.andi %219, %220 : vector<8x128xi32>
    %c1_i32_72 = arith.constant 1 : i32
    %222 = vector.broadcast %c1_i32_72 : i32 to vector<8x128xi32>
    %223 = arith.cmpi eq, %221, %222 : vector<8x128xi32>
    %cst_73 = arith.constant 0.000000e+00 : f32
    %224 = vector.broadcast %cst_73 : f32 to vector<8x128xf32>
    %225 = arith.subf %224, %204 : vector<8x128xf32>
    %226 = arith.select %223, %225, %218 : vector<8x128xi1>, vector<8x128xf32>
    %227 = arith.select %223, %218, %204 : vector<8x128xi1>, vector<8x128xf32>
    %228 = arith.mulf %226, %166 : vector<8x128xf32>
    %229 = arith.mulf %227, %169 : vector<8x128xf32>
    %230 = arith.addf %228, %229 : vector<8x128xf32>
    %231 = arith.mulf %226, %169 : vector<8x128xf32>
    %232 = arith.mulf %227, %166 : vector<8x128xf32>
    %233 = arith.subf %231, %232 : vector<8x128xf32>
    %234 = arith.mulf %226, %170 : vector<8x128xf32>
    %235 = arith.mulf %227, %173 : vector<8x128xf32>
    %236 = arith.subf %234, %235 : vector<8x128xf32>
    %237 = arith.mulf %227, %170 : vector<8x128xf32>
    %238 = arith.mulf %226, %173 : vector<8x128xf32>
    %239 = arith.addf %237, %238 : vector<8x128xf32>
    %240 = arith.mulf %226, %174 : vector<8x128xf32>
    %241 = arith.mulf %227, %175 : vector<8x128xf32>
    %242 = arith.addf %240, %241 : vector<8x128xf32>
    %243 = arith.mulf %226, %175 : vector<8x128xf32>
    %244 = arith.mulf %227, %174 : vector<8x128xf32>
    %245 = arith.subf %243, %244 : vector<8x128xf32>
    %246 = arith.mulf %226, %176 : vector<8x128xf32>
    %247 = arith.mulf %227, %177 : vector<8x128xf32>
    %248 = arith.subf %246, %247 : vector<8x128xf32>
    %249 = arith.mulf %227, %176 : vector<8x128xf32>
    %250 = arith.mulf %226, %177 : vector<8x128xf32>
    %251 = arith.addf %249, %250 : vector<8x128xf32>
    %c4 = arith.constant 4 : index
    %252 = arith.index_cast %11 : i32 to index
    %c0_74 = arith.constant 0 : index
    %253 = vector.load %arg3[%c4, %252, %c0_74] : memref<16x8x128xf32, #tpu.memory_space<vmem>>, vector<1x8x128xf32>
    %254 = vector.shape_cast %253 : vector<1x8x128xf32> to vector<8x128xf32>
    %cst_75 = arith.constant 5.000000e-01 : f32
    %255 = vector.broadcast %cst_75 : f32 to vector<8x128xf32>
    %256 = arith.mulf %255, %254 : vector<8x128xf32>
    %cst_76 = arith.constant 0.636619746 : f32
    %257 = vector.broadcast %cst_76 : f32 to vector<8x128xf32>
    %258 = arith.mulf %256, %257 : vector<8x128xf32>
    %cst_77 = arith.constant 5.000000e-01 : f32
    %259 = vector.broadcast %cst_77 : f32 to vector<8x128xf32>
    %260 = arith.addf %258, %259 : vector<8x128xf32>
    %261 = math.floor %260 : vector<8x128xf32>
    %cst_78 = arith.constant 1.57079637 : f32
    %262 = vector.broadcast %cst_78 : f32 to vector<8x128xf32>
    %263 = arith.mulf %261, %262 : vector<8x128xf32>
    %264 = arith.subf %256, %263 : vector<8x128xf32>
    %cst_79 = arith.constant -4.37113883E-8 : f32
    %265 = vector.broadcast %cst_79 : f32 to vector<8x128xf32>
    %266 = arith.mulf %261, %265 : vector<8x128xf32>
    %267 = arith.subf %264, %266 : vector<8x128xf32>
    %268 = arith.mulf %267, %267 : vector<8x128xf32>
    %269 = arith.mulf %267, %268 : vector<8x128xf32>
    %cst_80 = arith.constant -1.95152956E-4 : f32
    %270 = vector.broadcast %cst_80 : f32 to vector<8x128xf32>
    %271 = arith.mulf %270, %268 : vector<8x128xf32>
    %cst_81 = arith.constant 0.00833216123 : f32
    %272 = vector.broadcast %cst_81 : f32 to vector<8x128xf32>
    %273 = arith.addf %271, %272 : vector<8x128xf32>
    %274 = arith.mulf %273, %268 : vector<8x128xf32>
    %cst_82 = arith.constant 0.166666552 : f32
    %275 = vector.broadcast %cst_82 : f32 to vector<8x128xf32>
    %276 = arith.subf %274, %275 : vector<8x128xf32>
    %277 = arith.mulf %269, %276 : vector<8x128xf32>
    %278 = arith.addf %267, %277 : vector<8x128xf32>
    %cst_83 = arith.constant 5.000000e-01 : f32
    %279 = vector.broadcast %cst_83 : f32 to vector<8x128xf32>
    %280 = arith.mulf %279, %268 : vector<8x128xf32>
    %cst_84 = arith.constant 1.000000e+00 : f32
    %281 = vector.broadcast %cst_84 : f32 to vector<8x128xf32>
    %282 = arith.subf %281, %280 : vector<8x128xf32>
    %283 = arith.mulf %268, %268 : vector<8x128xf32>
    %cst_85 = arith.constant 2.44331568E-5 : f32
    %284 = vector.broadcast %cst_85 : f32 to vector<8x128xf32>
    %285 = arith.mulf %284, %268 : vector<8x128xf32>
    %cst_86 = arith.constant 0.00138873165 : f32
    %286 = vector.broadcast %cst_86 : f32 to vector<8x128xf32>
    %287 = arith.subf %285, %286 : vector<8x128xf32>
    %288 = arith.mulf %287, %268 : vector<8x128xf32>
    %cst_87 = arith.constant 0.0416666456 : f32
    %289 = vector.broadcast %cst_87 : f32 to vector<8x128xf32>
    %290 = arith.addf %288, %289 : vector<8x128xf32>
    %291 = arith.mulf %283, %290 : vector<8x128xf32>
    %292 = arith.addf %282, %291 : vector<8x128xf32>
    %293 = arith.fptosi %261 : vector<8x128xf32> to vector<8x128xi32>
    %c1_i32_88 = arith.constant 1 : i32
    %294 = vector.broadcast %c1_i32_88 : i32 to vector<8x128xi32>
    %295 = arith.andi %293, %294 : vector<8x128xi32>
    %c1_i32_89 = arith.constant 1 : i32
    %296 = vector.broadcast %c1_i32_89 : i32 to vector<8x128xi32>
    %297 = arith.cmpi eq, %295, %296 : vector<8x128xi32>
    %cst_90 = arith.constant 0.000000e+00 : f32
    %298 = vector.broadcast %cst_90 : f32 to vector<8x128xf32>
    %299 = arith.subf %298, %278 : vector<8x128xf32>
    %300 = arith.select %297, %299, %292 : vector<8x128xi1>, vector<8x128xf32>
    %301 = arith.select %297, %292, %278 : vector<8x128xi1>, vector<8x128xf32>
    %302 = arith.mulf %300, %230 : vector<8x128xf32>
    %303 = arith.mulf %301, %242 : vector<8x128xf32>
    %304 = arith.subf %302, %303 : vector<8x128xf32>
    %305 = arith.mulf %300, %233 : vector<8x128xf32>
    %306 = arith.mulf %301, %245 : vector<8x128xf32>
    %307 = arith.subf %305, %306 : vector<8x128xf32>
    %308 = arith.mulf %301, %230 : vector<8x128xf32>
    %309 = arith.mulf %300, %242 : vector<8x128xf32>
    %310 = arith.addf %308, %309 : vector<8x128xf32>
    %311 = arith.mulf %301, %233 : vector<8x128xf32>
    %312 = arith.mulf %300, %245 : vector<8x128xf32>
    %313 = arith.addf %311, %312 : vector<8x128xf32>
    %314 = arith.mulf %300, %236 : vector<8x128xf32>
    %315 = arith.mulf %301, %248 : vector<8x128xf32>
    %316 = arith.subf %314, %315 : vector<8x128xf32>
    %317 = arith.mulf %300, %239 : vector<8x128xf32>
    %318 = arith.mulf %301, %251 : vector<8x128xf32>
    %319 = arith.subf %317, %318 : vector<8x128xf32>
    %320 = arith.mulf %301, %236 : vector<8x128xf32>
    %321 = arith.mulf %300, %248 : vector<8x128xf32>
    %322 = arith.addf %320, %321 : vector<8x128xf32>
    %323 = arith.mulf %301, %239 : vector<8x128xf32>
    %324 = arith.mulf %300, %251 : vector<8x128xf32>
    %325 = arith.addf %323, %324 : vector<8x128xf32>
    %c5 = arith.constant 5 : index
    %326 = arith.index_cast %11 : i32 to index
    %c0_91 = arith.constant 0 : index
    %327 = vector.load %arg3[%c5, %326, %c0_91] : memref<16x8x128xf32, #tpu.memory_space<vmem>>, vector<1x8x128xf32>
    %328 = vector.shape_cast %327 : vector<1x8x128xf32> to vector<8x128xf32>
    %cst_92 = arith.constant 5.000000e-01 : f32
    %329 = vector.broadcast %cst_92 : f32 to vector<8x128xf32>
    %330 = arith.mulf %329, %328 : vector<8x128xf32>
    %cst_93 = arith.constant 0.636619746 : f32
    %331 = vector.broadcast %cst_93 : f32 to vector<8x128xf32>
    %332 = arith.mulf %330, %331 : vector<8x128xf32>
    %cst_94 = arith.constant 5.000000e-01 : f32
    %333 = vector.broadcast %cst_94 : f32 to vector<8x128xf32>
    %334 = arith.addf %332, %333 : vector<8x128xf32>
    %335 = math.floor %334 : vector<8x128xf32>
    %cst_95 = arith.constant 1.57079637 : f32
    %336 = vector.broadcast %cst_95 : f32 to vector<8x128xf32>
    %337 = arith.mulf %335, %336 : vector<8x128xf32>
    %338 = arith.subf %330, %337 : vector<8x128xf32>
    %cst_96 = arith.constant -4.37113883E-8 : f32
    %339 = vector.broadcast %cst_96 : f32 to vector<8x128xf32>
    %340 = arith.mulf %335, %339 : vector<8x128xf32>
    %341 = arith.subf %338, %340 : vector<8x128xf32>
    %342 = arith.mulf %341, %341 : vector<8x128xf32>
    %343 = arith.mulf %341, %342 : vector<8x128xf32>
    %cst_97 = arith.constant -1.95152956E-4 : f32
    %344 = vector.broadcast %cst_97 : f32 to vector<8x128xf32>
    %345 = arith.mulf %344, %342 : vector<8x128xf32>
    %cst_98 = arith.constant 0.00833216123 : f32
    %346 = vector.broadcast %cst_98 : f32 to vector<8x128xf32>
    %347 = arith.addf %345, %346 : vector<8x128xf32>
    %348 = arith.mulf %347, %342 : vector<8x128xf32>
    %cst_99 = arith.constant 0.166666552 : f32
    %349 = vector.broadcast %cst_99 : f32 to vector<8x128xf32>
    %350 = arith.subf %348, %349 : vector<8x128xf32>
    %351 = arith.mulf %343, %350 : vector<8x128xf32>
    %352 = arith.addf %341, %351 : vector<8x128xf32>
    %cst_100 = arith.constant 5.000000e-01 : f32
    %353 = vector.broadcast %cst_100 : f32 to vector<8x128xf32>
    %354 = arith.mulf %353, %342 : vector<8x128xf32>
    %cst_101 = arith.constant 1.000000e+00 : f32
    %355 = vector.broadcast %cst_101 : f32 to vector<8x128xf32>
    %356 = arith.subf %355, %354 : vector<8x128xf32>
    %357 = arith.mulf %342, %342 : vector<8x128xf32>
    %cst_102 = arith.constant 2.44331568E-5 : f32
    %358 = vector.broadcast %cst_102 : f32 to vector<8x128xf32>
    %359 = arith.mulf %358, %342 : vector<8x128xf32>
    %cst_103 = arith.constant 0.00138873165 : f32
    %360 = vector.broadcast %cst_103 : f32 to vector<8x128xf32>
    %361 = arith.subf %359, %360 : vector<8x128xf32>
    %362 = arith.mulf %361, %342 : vector<8x128xf32>
    %cst_104 = arith.constant 0.0416666456 : f32
    %363 = vector.broadcast %cst_104 : f32 to vector<8x128xf32>
    %364 = arith.addf %362, %363 : vector<8x128xf32>
    %365 = arith.mulf %357, %364 : vector<8x128xf32>
    %366 = arith.addf %356, %365 : vector<8x128xf32>
    %367 = arith.fptosi %335 : vector<8x128xf32> to vector<8x128xi32>
    %c1_i32_105 = arith.constant 1 : i32
    %368 = vector.broadcast %c1_i32_105 : i32 to vector<8x128xi32>
    %369 = arith.andi %367, %368 : vector<8x128xi32>
    %c1_i32_106 = arith.constant 1 : i32
    %370 = vector.broadcast %c1_i32_106 : i32 to vector<8x128xi32>
    %371 = arith.cmpi eq, %369, %370 : vector<8x128xi32>
    %cst_107 = arith.constant 0.000000e+00 : f32
    %372 = vector.broadcast %cst_107 : f32 to vector<8x128xf32>
    %373 = arith.subf %372, %352 : vector<8x128xf32>
    %374 = arith.select %371, %373, %366 : vector<8x128xi1>, vector<8x128xf32>
    %375 = arith.select %371, %366, %352 : vector<8x128xi1>, vector<8x128xf32>
    %376 = arith.mulf %374, %304 : vector<8x128xf32>
    %377 = arith.mulf %375, %316 : vector<8x128xf32>
    %378 = arith.subf %376, %377 : vector<8x128xf32>
    %379 = arith.mulf %374, %307 : vector<8x128xf32>
    %380 = arith.mulf %375, %319 : vector<8x128xf32>
    %381 = arith.subf %379, %380 : vector<8x128xf32>
    %382 = arith.mulf %375, %304 : vector<8x128xf32>
    %383 = arith.mulf %374, %316 : vector<8x128xf32>
    %384 = arith.addf %382, %383 : vector<8x128xf32>
    %385 = arith.mulf %375, %307 : vector<8x128xf32>
    %386 = arith.mulf %374, %319 : vector<8x128xf32>
    %387 = arith.addf %385, %386 : vector<8x128xf32>
    %388 = arith.mulf %374, %310 : vector<8x128xf32>
    %389 = arith.mulf %375, %322 : vector<8x128xf32>
    %390 = arith.subf %388, %389 : vector<8x128xf32>
    %391 = arith.mulf %374, %313 : vector<8x128xf32>
    %392 = arith.mulf %375, %325 : vector<8x128xf32>
    %393 = arith.subf %391, %392 : vector<8x128xf32>
    %394 = arith.mulf %375, %310 : vector<8x128xf32>
    %395 = arith.mulf %374, %322 : vector<8x128xf32>
    %396 = arith.addf %394, %395 : vector<8x128xf32>
    %397 = arith.mulf %375, %313 : vector<8x128xf32>
    %398 = arith.mulf %374, %325 : vector<8x128xf32>
    %399 = arith.addf %397, %398 : vector<8x128xf32>
    %c6 = arith.constant 6 : index
    %400 = arith.index_cast %11 : i32 to index
    %c0_108 = arith.constant 0 : index
    %401 = vector.load %arg3[%c6, %400, %c0_108] : memref<16x8x128xf32, #tpu.memory_space<vmem>>, vector<1x8x128xf32>
    %402 = vector.shape_cast %401 : vector<1x8x128xf32> to vector<8x128xf32>
    %cst_109 = arith.constant 5.000000e-01 : f32
    %403 = vector.broadcast %cst_109 : f32 to vector<8x128xf32>
    %404 = arith.mulf %403, %402 : vector<8x128xf32>
    %cst_110 = arith.constant 0.636619746 : f32
    %405 = vector.broadcast %cst_110 : f32 to vector<8x128xf32>
    %406 = arith.mulf %404, %405 : vector<8x128xf32>
    %cst_111 = arith.constant 5.000000e-01 : f32
    %407 = vector.broadcast %cst_111 : f32 to vector<8x128xf32>
    %408 = arith.addf %406, %407 : vector<8x128xf32>
    %409 = math.floor %408 : vector<8x128xf32>
    %cst_112 = arith.constant 1.57079637 : f32
    %410 = vector.broadcast %cst_112 : f32 to vector<8x128xf32>
    %411 = arith.mulf %409, %410 : vector<8x128xf32>
    %412 = arith.subf %404, %411 : vector<8x128xf32>
    %cst_113 = arith.constant -4.37113883E-8 : f32
    %413 = vector.broadcast %cst_113 : f32 to vector<8x128xf32>
    %414 = arith.mulf %409, %413 : vector<8x128xf32>
    %415 = arith.subf %412, %414 : vector<8x128xf32>
    %416 = arith.mulf %415, %415 : vector<8x128xf32>
    %417 = arith.mulf %415, %416 : vector<8x128xf32>
    %cst_114 = arith.constant -1.95152956E-4 : f32
    %418 = vector.broadcast %cst_114 : f32 to vector<8x128xf32>
    %419 = arith.mulf %418, %416 : vector<8x128xf32>
    %cst_115 = arith.constant 0.00833216123 : f32
    %420 = vector.broadcast %cst_115 : f32 to vector<8x128xf32>
    %421 = arith.addf %419, %420 : vector<8x128xf32>
    %422 = arith.mulf %421, %416 : vector<8x128xf32>
    %cst_116 = arith.constant 0.166666552 : f32
    %423 = vector.broadcast %cst_116 : f32 to vector<8x128xf32>
    %424 = arith.subf %422, %423 : vector<8x128xf32>
    %425 = arith.mulf %417, %424 : vector<8x128xf32>
    %426 = arith.addf %415, %425 : vector<8x128xf32>
    %cst_117 = arith.constant 5.000000e-01 : f32
    %427 = vector.broadcast %cst_117 : f32 to vector<8x128xf32>
    %428 = arith.mulf %427, %416 : vector<8x128xf32>
    %cst_118 = arith.constant 1.000000e+00 : f32
    %429 = vector.broadcast %cst_118 : f32 to vector<8x128xf32>
    %430 = arith.subf %429, %428 : vector<8x128xf32>
    %431 = arith.mulf %416, %416 : vector<8x128xf32>
    %cst_119 = arith.constant 2.44331568E-5 : f32
    %432 = vector.broadcast %cst_119 : f32 to vector<8x128xf32>
    %433 = arith.mulf %432, %416 : vector<8x128xf32>
    %cst_120 = arith.constant 0.00138873165 : f32
    %434 = vector.broadcast %cst_120 : f32 to vector<8x128xf32>
    %435 = arith.subf %433, %434 : vector<8x128xf32>
    %436 = arith.mulf %435, %416 : vector<8x128xf32>
    %cst_121 = arith.constant 0.0416666456 : f32
    %437 = vector.broadcast %cst_121 : f32 to vector<8x128xf32>
    %438 = arith.addf %436, %437 : vector<8x128xf32>
    %439 = arith.mulf %431, %438 : vector<8x128xf32>
    %440 = arith.addf %430, %439 : vector<8x128xf32>
    %441 = arith.fptosi %409 : vector<8x128xf32> to vector<8x128xi32>
    %c1_i32_122 = arith.constant 1 : i32
    %442 = vector.broadcast %c1_i32_122 : i32 to vector<8x128xi32>
    %443 = arith.andi %441, %442 : vector<8x128xi32>
    %c1_i32_123 = arith.constant 1 : i32
    %444 = vector.broadcast %c1_i32_123 : i32 to vector<8x128xi32>
    %445 = arith.cmpi eq, %443, %444 : vector<8x128xi32>
    %cst_124 = arith.constant 0.000000e+00 : f32
    %446 = vector.broadcast %cst_124 : f32 to vector<8x128xf32>
    %447 = arith.subf %446, %426 : vector<8x128xf32>
    %448 = arith.select %445, %447, %440 : vector<8x128xi1>, vector<8x128xf32>
    %449 = arith.select %445, %440, %426 : vector<8x128xi1>, vector<8x128xf32>
    %450 = arith.mulf %448, %378 : vector<8x128xf32>
    %451 = arith.mulf %449, %381 : vector<8x128xf32>
    %452 = arith.addf %450, %451 : vector<8x128xf32>
    %453 = arith.mulf %448, %381 : vector<8x128xf32>
    %454 = arith.mulf %449, %378 : vector<8x128xf32>
    %455 = arith.subf %453, %454 : vector<8x128xf32>
    %456 = arith.mulf %448, %384 : vector<8x128xf32>
    %457 = arith.mulf %449, %387 : vector<8x128xf32>
    %458 = arith.addf %456, %457 : vector<8x128xf32>
    %459 = arith.mulf %448, %387 : vector<8x128xf32>
    %460 = arith.mulf %449, %384 : vector<8x128xf32>
    %461 = arith.subf %459, %460 : vector<8x128xf32>
    %462 = arith.mulf %448, %390 : vector<8x128xf32>
    %463 = arith.mulf %449, %393 : vector<8x128xf32>
    %464 = arith.subf %462, %463 : vector<8x128xf32>
    %465 = arith.mulf %449, %390 : vector<8x128xf32>
    %466 = arith.mulf %448, %393 : vector<8x128xf32>
    %467 = arith.addf %465, %466 : vector<8x128xf32>
    %468 = arith.mulf %448, %396 : vector<8x128xf32>
    %469 = arith.mulf %449, %399 : vector<8x128xf32>
    %470 = arith.subf %468, %469 : vector<8x128xf32>
    %471 = arith.mulf %449, %396 : vector<8x128xf32>
    %472 = arith.mulf %448, %399 : vector<8x128xf32>
    %473 = arith.addf %471, %472 : vector<8x128xf32>
    %c7 = arith.constant 7 : index
    %474 = arith.index_cast %11 : i32 to index
    %c0_125 = arith.constant 0 : index
    %475 = vector.load %arg3[%c7, %474, %c0_125] : memref<16x8x128xf32, #tpu.memory_space<vmem>>, vector<1x8x128xf32>
    %476 = vector.shape_cast %475 : vector<1x8x128xf32> to vector<8x128xf32>
    %cst_126 = arith.constant 5.000000e-01 : f32
    %477 = vector.broadcast %cst_126 : f32 to vector<8x128xf32>
    %478 = arith.mulf %477, %476 : vector<8x128xf32>
    %cst_127 = arith.constant 0.636619746 : f32
    %479 = vector.broadcast %cst_127 : f32 to vector<8x128xf32>
    %480 = arith.mulf %478, %479 : vector<8x128xf32>
    %cst_128 = arith.constant 5.000000e-01 : f32
    %481 = vector.broadcast %cst_128 : f32 to vector<8x128xf32>
    %482 = arith.addf %480, %481 : vector<8x128xf32>
    %483 = math.floor %482 : vector<8x128xf32>
    %cst_129 = arith.constant 1.57079637 : f32
    %484 = vector.broadcast %cst_129 : f32 to vector<8x128xf32>
    %485 = arith.mulf %483, %484 : vector<8x128xf32>
    %486 = arith.subf %478, %485 : vector<8x128xf32>
    %cst_130 = arith.constant -4.37113883E-8 : f32
    %487 = vector.broadcast %cst_130 : f32 to vector<8x128xf32>
    %488 = arith.mulf %483, %487 : vector<8x128xf32>
    %489 = arith.subf %486, %488 : vector<8x128xf32>
    %490 = arith.mulf %489, %489 : vector<8x128xf32>
    %491 = arith.mulf %489, %490 : vector<8x128xf32>
    %cst_131 = arith.constant -1.95152956E-4 : f32
    %492 = vector.broadcast %cst_131 : f32 to vector<8x128xf32>
    %493 = arith.mulf %492, %490 : vector<8x128xf32>
    %cst_132 = arith.constant 0.00833216123 : f32
    %494 = vector.broadcast %cst_132 : f32 to vector<8x128xf32>
    %495 = arith.addf %493, %494 : vector<8x128xf32>
    %496 = arith.mulf %495, %490 : vector<8x128xf32>
    %cst_133 = arith.constant 0.166666552 : f32
    %497 = vector.broadcast %cst_133 : f32 to vector<8x128xf32>
    %498 = arith.subf %496, %497 : vector<8x128xf32>
    %499 = arith.mulf %491, %498 : vector<8x128xf32>
    %500 = arith.addf %489, %499 : vector<8x128xf32>
    %cst_134 = arith.constant 5.000000e-01 : f32
    %501 = vector.broadcast %cst_134 : f32 to vector<8x128xf32>
    %502 = arith.mulf %501, %490 : vector<8x128xf32>
    %cst_135 = arith.constant 1.000000e+00 : f32
    %503 = vector.broadcast %cst_135 : f32 to vector<8x128xf32>
    %504 = arith.subf %503, %502 : vector<8x128xf32>
    %505 = arith.mulf %490, %490 : vector<8x128xf32>
    %cst_136 = arith.constant 2.44331568E-5 : f32
    %506 = vector.broadcast %cst_136 : f32 to vector<8x128xf32>
    %507 = arith.mulf %506, %490 : vector<8x128xf32>
    %cst_137 = arith.constant 0.00138873165 : f32
    %508 = vector.broadcast %cst_137 : f32 to vector<8x128xf32>
    %509 = arith.subf %507, %508 : vector<8x128xf32>
    %510 = arith.mulf %509, %490 : vector<8x128xf32>
    %cst_138 = arith.constant 0.0416666456 : f32
    %511 = vector.broadcast %cst_138 : f32 to vector<8x128xf32>
    %512 = arith.addf %510, %511 : vector<8x128xf32>
    %513 = arith.mulf %505, %512 : vector<8x128xf32>
    %514 = arith.addf %504, %513 : vector<8x128xf32>
    %515 = arith.fptosi %483 : vector<8x128xf32> to vector<8x128xi32>
    %c1_i32_139 = arith.constant 1 : i32
    %516 = vector.broadcast %c1_i32_139 : i32 to vector<8x128xi32>
    %517 = arith.andi %515, %516 : vector<8x128xi32>
    %c1_i32_140 = arith.constant 1 : i32
    %518 = vector.broadcast %c1_i32_140 : i32 to vector<8x128xi32>
    %519 = arith.cmpi eq, %517, %518 : vector<8x128xi32>
    %cst_141 = arith.constant 0.000000e+00 : f32
    %520 = vector.broadcast %cst_141 : f32 to vector<8x128xf32>
    %521 = arith.subf %520, %500 : vector<8x128xf32>
    %522 = arith.select %519, %521, %514 : vector<8x128xi1>, vector<8x128xf32>
    %523 = arith.select %519, %514, %500 : vector<8x128xi1>, vector<8x128xf32>
    %524 = arith.mulf %522, %452 : vector<8x128xf32>
    %525 = arith.mulf %523, %455 : vector<8x128xf32>
    %526 = arith.addf %524, %525 : vector<8x128xf32>
    %527 = arith.mulf %522, %455 : vector<8x128xf32>
    %528 = arith.mulf %523, %452 : vector<8x128xf32>
    %529 = arith.subf %527, %528 : vector<8x128xf32>
    %530 = arith.mulf %522, %458 : vector<8x128xf32>
    %531 = arith.mulf %523, %461 : vector<8x128xf32>
    %532 = arith.subf %530, %531 : vector<8x128xf32>
    %533 = arith.mulf %523, %458 : vector<8x128xf32>
    %534 = arith.mulf %522, %461 : vector<8x128xf32>
    %535 = arith.addf %533, %534 : vector<8x128xf32>
    %536 = arith.mulf %522, %464 : vector<8x128xf32>
    %537 = arith.mulf %523, %467 : vector<8x128xf32>
    %538 = arith.addf %536, %537 : vector<8x128xf32>
    %539 = arith.mulf %522, %467 : vector<8x128xf32>
    %540 = arith.mulf %523, %464 : vector<8x128xf32>
    %541 = arith.subf %539, %540 : vector<8x128xf32>
    %542 = arith.mulf %522, %470 : vector<8x128xf32>
    %543 = arith.mulf %523, %473 : vector<8x128xf32>
    %544 = arith.subf %542, %543 : vector<8x128xf32>
    %545 = arith.mulf %523, %470 : vector<8x128xf32>
    %546 = arith.mulf %522, %473 : vector<8x128xf32>
    %547 = arith.addf %545, %546 : vector<8x128xf32>
    %c8 = arith.constant 8 : index
    %548 = arith.index_cast %11 : i32 to index
    %c0_142 = arith.constant 0 : index
    %549 = vector.load %arg3[%c8, %548, %c0_142] : memref<16x8x128xf32, #tpu.memory_space<vmem>>, vector<1x8x128xf32>
    %550 = vector.shape_cast %549 : vector<1x8x128xf32> to vector<8x128xf32>
    %cst_143 = arith.constant 5.000000e-01 : f32
    %551 = vector.broadcast %cst_143 : f32 to vector<8x128xf32>
    %552 = arith.mulf %551, %550 : vector<8x128xf32>
    %cst_144 = arith.constant 0.636619746 : f32
    %553 = vector.broadcast %cst_144 : f32 to vector<8x128xf32>
    %554 = arith.mulf %552, %553 : vector<8x128xf32>
    %cst_145 = arith.constant 5.000000e-01 : f32
    %555 = vector.broadcast %cst_145 : f32 to vector<8x128xf32>
    %556 = arith.addf %554, %555 : vector<8x128xf32>
    %557 = math.floor %556 : vector<8x128xf32>
    %cst_146 = arith.constant 1.57079637 : f32
    %558 = vector.broadcast %cst_146 : f32 to vector<8x128xf32>
    %559 = arith.mulf %557, %558 : vector<8x128xf32>
    %560 = arith.subf %552, %559 : vector<8x128xf32>
    %cst_147 = arith.constant -4.37113883E-8 : f32
    %561 = vector.broadcast %cst_147 : f32 to vector<8x128xf32>
    %562 = arith.mulf %557, %561 : vector<8x128xf32>
    %563 = arith.subf %560, %562 : vector<8x128xf32>
    %564 = arith.mulf %563, %563 : vector<8x128xf32>
    %565 = arith.mulf %563, %564 : vector<8x128xf32>
    %cst_148 = arith.constant -1.95152956E-4 : f32
    %566 = vector.broadcast %cst_148 : f32 to vector<8x128xf32>
    %567 = arith.mulf %566, %564 : vector<8x128xf32>
    %cst_149 = arith.constant 0.00833216123 : f32
    %568 = vector.broadcast %cst_149 : f32 to vector<8x128xf32>
    %569 = arith.addf %567, %568 : vector<8x128xf32>
    %570 = arith.mulf %569, %564 : vector<8x128xf32>
    %cst_150 = arith.constant 0.166666552 : f32
    %571 = vector.broadcast %cst_150 : f32 to vector<8x128xf32>
    %572 = arith.subf %570, %571 : vector<8x128xf32>
    %573 = arith.mulf %565, %572 : vector<8x128xf32>
    %574 = arith.addf %563, %573 : vector<8x128xf32>
    %cst_151 = arith.constant 5.000000e-01 : f32
    %575 = vector.broadcast %cst_151 : f32 to vector<8x128xf32>
    %576 = arith.mulf %575, %564 : vector<8x128xf32>
    %cst_152 = arith.constant 1.000000e+00 : f32
    %577 = vector.broadcast %cst_152 : f32 to vector<8x128xf32>
    %578 = arith.subf %577, %576 : vector<8x128xf32>
    %579 = arith.mulf %564, %564 : vector<8x128xf32>
    %cst_153 = arith.constant 2.44331568E-5 : f32
    %580 = vector.broadcast %cst_153 : f32 to vector<8x128xf32>
    %581 = arith.mulf %580, %564 : vector<8x128xf32>
    %cst_154 = arith.constant 0.00138873165 : f32
    %582 = vector.broadcast %cst_154 : f32 to vector<8x128xf32>
    %583 = arith.subf %581, %582 : vector<8x128xf32>
    %584 = arith.mulf %583, %564 : vector<8x128xf32>
    %cst_155 = arith.constant 0.0416666456 : f32
    %585 = vector.broadcast %cst_155 : f32 to vector<8x128xf32>
    %586 = arith.addf %584, %585 : vector<8x128xf32>
    %587 = arith.mulf %579, %586 : vector<8x128xf32>
    %588 = arith.addf %578, %587 : vector<8x128xf32>
    %589 = arith.fptosi %557 : vector<8x128xf32> to vector<8x128xi32>
    %c1_i32_156 = arith.constant 1 : i32
    %590 = vector.broadcast %c1_i32_156 : i32 to vector<8x128xi32>
    %591 = arith.andi %589, %590 : vector<8x128xi32>
    %c1_i32_157 = arith.constant 1 : i32
    %592 = vector.broadcast %c1_i32_157 : i32 to vector<8x128xi32>
    %593 = arith.cmpi eq, %591, %592 : vector<8x128xi32>
    %cst_158 = arith.constant 0.000000e+00 : f32
    %594 = vector.broadcast %cst_158 : f32 to vector<8x128xf32>
    %595 = arith.subf %594, %574 : vector<8x128xf32>
    %596 = arith.select %593, %595, %588 : vector<8x128xi1>, vector<8x128xf32>
    %597 = arith.select %593, %588, %574 : vector<8x128xi1>, vector<8x128xf32>
    %598 = arith.mulf %596, %526 : vector<8x128xf32>
    %599 = arith.mulf %597, %538 : vector<8x128xf32>
    %600 = arith.subf %598, %599 : vector<8x128xf32>
    %601 = arith.mulf %596, %529 : vector<8x128xf32>
    %602 = arith.mulf %597, %541 : vector<8x128xf32>
    %603 = arith.subf %601, %602 : vector<8x128xf32>
    %604 = arith.mulf %597, %526 : vector<8x128xf32>
    %605 = arith.mulf %596, %538 : vector<8x128xf32>
    %606 = arith.addf %604, %605 : vector<8x128xf32>
    %607 = arith.mulf %597, %529 : vector<8x128xf32>
    %608 = arith.mulf %596, %541 : vector<8x128xf32>
    %609 = arith.addf %607, %608 : vector<8x128xf32>
    %610 = arith.mulf %596, %532 : vector<8x128xf32>
    %611 = arith.mulf %597, %544 : vector<8x128xf32>
    %612 = arith.subf %610, %611 : vector<8x128xf32>
    %613 = arith.mulf %596, %535 : vector<8x128xf32>
    %614 = arith.mulf %597, %547 : vector<8x128xf32>
    %615 = arith.subf %613, %614 : vector<8x128xf32>
    %616 = arith.mulf %597, %532 : vector<8x128xf32>
    %617 = arith.mulf %596, %544 : vector<8x128xf32>
    %618 = arith.addf %616, %617 : vector<8x128xf32>
    %619 = arith.mulf %597, %535 : vector<8x128xf32>
    %620 = arith.mulf %596, %547 : vector<8x128xf32>
    %621 = arith.addf %619, %620 : vector<8x128xf32>
    %c9 = arith.constant 9 : index
    %622 = arith.index_cast %11 : i32 to index
    %c0_159 = arith.constant 0 : index
    %623 = vector.load %arg3[%c9, %622, %c0_159] : memref<16x8x128xf32, #tpu.memory_space<vmem>>, vector<1x8x128xf32>
    %624 = vector.shape_cast %623 : vector<1x8x128xf32> to vector<8x128xf32>
    %cst_160 = arith.constant 5.000000e-01 : f32
    %625 = vector.broadcast %cst_160 : f32 to vector<8x128xf32>
    %626 = arith.mulf %625, %624 : vector<8x128xf32>
    %cst_161 = arith.constant 0.636619746 : f32
    %627 = vector.broadcast %cst_161 : f32 to vector<8x128xf32>
    %628 = arith.mulf %626, %627 : vector<8x128xf32>
    %cst_162 = arith.constant 5.000000e-01 : f32
    %629 = vector.broadcast %cst_162 : f32 to vector<8x128xf32>
    %630 = arith.addf %628, %629 : vector<8x128xf32>
    %631 = math.floor %630 : vector<8x128xf32>
    %cst_163 = arith.constant 1.57079637 : f32
    %632 = vector.broadcast %cst_163 : f32 to vector<8x128xf32>
    %633 = arith.mulf %631, %632 : vector<8x128xf32>
    %634 = arith.subf %626, %633 : vector<8x128xf32>
    %cst_164 = arith.constant -4.37113883E-8 : f32
    %635 = vector.broadcast %cst_164 : f32 to vector<8x128xf32>
    %636 = arith.mulf %631, %635 : vector<8x128xf32>
    %637 = arith.subf %634, %636 : vector<8x128xf32>
    %638 = arith.mulf %637, %637 : vector<8x128xf32>
    %639 = arith.mulf %637, %638 : vector<8x128xf32>
    %cst_165 = arith.constant -1.95152956E-4 : f32
    %640 = vector.broadcast %cst_165 : f32 to vector<8x128xf32>
    %641 = arith.mulf %640, %638 : vector<8x128xf32>
    %cst_166 = arith.constant 0.00833216123 : f32
    %642 = vector.broadcast %cst_166 : f32 to vector<8x128xf32>
    %643 = arith.addf %641, %642 : vector<8x128xf32>
    %644 = arith.mulf %643, %638 : vector<8x128xf32>
    %cst_167 = arith.constant 0.166666552 : f32
    %645 = vector.broadcast %cst_167 : f32 to vector<8x128xf32>
    %646 = arith.subf %644, %645 : vector<8x128xf32>
    %647 = arith.mulf %639, %646 : vector<8x128xf32>
    %648 = arith.addf %637, %647 : vector<8x128xf32>
    %cst_168 = arith.constant 5.000000e-01 : f32
    %649 = vector.broadcast %cst_168 : f32 to vector<8x128xf32>
    %650 = arith.mulf %649, %638 : vector<8x128xf32>
    %cst_169 = arith.constant 1.000000e+00 : f32
    %651 = vector.broadcast %cst_169 : f32 to vector<8x128xf32>
    %652 = arith.subf %651, %650 : vector<8x128xf32>
    %653 = arith.mulf %638, %638 : vector<8x128xf32>
    %cst_170 = arith.constant 2.44331568E-5 : f32
    %654 = vector.broadcast %cst_170 : f32 to vector<8x128xf32>
    %655 = arith.mulf %654, %638 : vector<8x128xf32>
    %cst_171 = arith.constant 0.00138873165 : f32
    %656 = vector.broadcast %cst_171 : f32 to vector<8x128xf32>
    %657 = arith.subf %655, %656 : vector<8x128xf32>
    %658 = arith.mulf %657, %638 : vector<8x128xf32>
    %cst_172 = arith.constant 0.0416666456 : f32
    %659 = vector.broadcast %cst_172 : f32 to vector<8x128xf32>
    %660 = arith.addf %658, %659 : vector<8x128xf32>
    %661 = arith.mulf %653, %660 : vector<8x128xf32>
    %662 = arith.addf %652, %661 : vector<8x128xf32>
    %663 = arith.fptosi %631 : vector<8x128xf32> to vector<8x128xi32>
    %c1_i32_173 = arith.constant 1 : i32
    %664 = vector.broadcast %c1_i32_173 : i32 to vector<8x128xi32>
    %665 = arith.andi %663, %664 : vector<8x128xi32>
    %c1_i32_174 = arith.constant 1 : i32
    %666 = vector.broadcast %c1_i32_174 : i32 to vector<8x128xi32>
    %667 = arith.cmpi eq, %665, %666 : vector<8x128xi32>
    %cst_175 = arith.constant 0.000000e+00 : f32
    %668 = vector.broadcast %cst_175 : f32 to vector<8x128xf32>
    %669 = arith.subf %668, %648 : vector<8x128xf32>
    %670 = arith.select %667, %669, %662 : vector<8x128xi1>, vector<8x128xf32>
    %671 = arith.select %667, %662, %648 : vector<8x128xi1>, vector<8x128xf32>
    %672 = arith.mulf %670, %600 : vector<8x128xf32>
    %673 = arith.mulf %671, %612 : vector<8x128xf32>
    %674 = arith.subf %672, %673 : vector<8x128xf32>
    %675 = arith.mulf %670, %603 : vector<8x128xf32>
    %676 = arith.mulf %671, %615 : vector<8x128xf32>
    %677 = arith.subf %675, %676 : vector<8x128xf32>
    %678 = arith.mulf %671, %600 : vector<8x128xf32>
    %679 = arith.mulf %670, %612 : vector<8x128xf32>
    %680 = arith.addf %678, %679 : vector<8x128xf32>
    %681 = arith.mulf %671, %603 : vector<8x128xf32>
    %682 = arith.mulf %670, %615 : vector<8x128xf32>
    %683 = arith.addf %681, %682 : vector<8x128xf32>
    %684 = arith.mulf %670, %606 : vector<8x128xf32>
    %685 = arith.mulf %671, %618 : vector<8x128xf32>
    %686 = arith.subf %684, %685 : vector<8x128xf32>
    %687 = arith.mulf %670, %609 : vector<8x128xf32>
    %688 = arith.mulf %671, %621 : vector<8x128xf32>
    %689 = arith.subf %687, %688 : vector<8x128xf32>
    %690 = arith.mulf %671, %606 : vector<8x128xf32>
    %691 = arith.mulf %670, %618 : vector<8x128xf32>
    %692 = arith.addf %690, %691 : vector<8x128xf32>
    %693 = arith.mulf %671, %609 : vector<8x128xf32>
    %694 = arith.mulf %670, %621 : vector<8x128xf32>
    %695 = arith.addf %693, %694 : vector<8x128xf32>
    %c10 = arith.constant 10 : index
    %696 = arith.index_cast %11 : i32 to index
    %c0_176 = arith.constant 0 : index
    %697 = vector.load %arg3[%c10, %696, %c0_176] : memref<16x8x128xf32, #tpu.memory_space<vmem>>, vector<1x8x128xf32>
    %698 = vector.shape_cast %697 : vector<1x8x128xf32> to vector<8x128xf32>
    %cst_177 = arith.constant 5.000000e-01 : f32
    %699 = vector.broadcast %cst_177 : f32 to vector<8x128xf32>
    %700 = arith.mulf %699, %698 : vector<8x128xf32>
    %cst_178 = arith.constant 0.636619746 : f32
    %701 = vector.broadcast %cst_178 : f32 to vector<8x128xf32>
    %702 = arith.mulf %700, %701 : vector<8x128xf32>
    %cst_179 = arith.constant 5.000000e-01 : f32
    %703 = vector.broadcast %cst_179 : f32 to vector<8x128xf32>
    %704 = arith.addf %702, %703 : vector<8x128xf32>
    %705 = math.floor %704 : vector<8x128xf32>
    %cst_180 = arith.constant 1.57079637 : f32
    %706 = vector.broadcast %cst_180 : f32 to vector<8x128xf32>
    %707 = arith.mulf %705, %706 : vector<8x128xf32>
    %708 = arith.subf %700, %707 : vector<8x128xf32>
    %cst_181 = arith.constant -4.37113883E-8 : f32
    %709 = vector.broadcast %cst_181 : f32 to vector<8x128xf32>
    %710 = arith.mulf %705, %709 : vector<8x128xf32>
    %711 = arith.subf %708, %710 : vector<8x128xf32>
    %712 = arith.mulf %711, %711 : vector<8x128xf32>
    %713 = arith.mulf %711, %712 : vector<8x128xf32>
    %cst_182 = arith.constant -1.95152956E-4 : f32
    %714 = vector.broadcast %cst_182 : f32 to vector<8x128xf32>
    %715 = arith.mulf %714, %712 : vector<8x128xf32>
    %cst_183 = arith.constant 0.00833216123 : f32
    %716 = vector.broadcast %cst_183 : f32 to vector<8x128xf32>
    %717 = arith.addf %715, %716 : vector<8x128xf32>
    %718 = arith.mulf %717, %712 : vector<8x128xf32>
    %cst_184 = arith.constant 0.166666552 : f32
    %719 = vector.broadcast %cst_184 : f32 to vector<8x128xf32>
    %720 = arith.subf %718, %719 : vector<8x128xf32>
    %721 = arith.mulf %713, %720 : vector<8x128xf32>
    %722 = arith.addf %711, %721 : vector<8x128xf32>
    %cst_185 = arith.constant 5.000000e-01 : f32
    %723 = vector.broadcast %cst_185 : f32 to vector<8x128xf32>
    %724 = arith.mulf %723, %712 : vector<8x128xf32>
    %cst_186 = arith.constant 1.000000e+00 : f32
    %725 = vector.broadcast %cst_186 : f32 to vector<8x128xf32>
    %726 = arith.subf %725, %724 : vector<8x128xf32>
    %727 = arith.mulf %712, %712 : vector<8x128xf32>
    %cst_187 = arith.constant 2.44331568E-5 : f32
    %728 = vector.broadcast %cst_187 : f32 to vector<8x128xf32>
    %729 = arith.mulf %728, %712 : vector<8x128xf32>
    %cst_188 = arith.constant 0.00138873165 : f32
    %730 = vector.broadcast %cst_188 : f32 to vector<8x128xf32>
    %731 = arith.subf %729, %730 : vector<8x128xf32>
    %732 = arith.mulf %731, %712 : vector<8x128xf32>
    %cst_189 = arith.constant 0.0416666456 : f32
    %733 = vector.broadcast %cst_189 : f32 to vector<8x128xf32>
    %734 = arith.addf %732, %733 : vector<8x128xf32>
    %735 = arith.mulf %727, %734 : vector<8x128xf32>
    %736 = arith.addf %726, %735 : vector<8x128xf32>
    %737 = arith.fptosi %705 : vector<8x128xf32> to vector<8x128xi32>
    %c1_i32_190 = arith.constant 1 : i32
    %738 = vector.broadcast %c1_i32_190 : i32 to vector<8x128xi32>
    %739 = arith.andi %737, %738 : vector<8x128xi32>
    %c1_i32_191 = arith.constant 1 : i32
    %740 = vector.broadcast %c1_i32_191 : i32 to vector<8x128xi32>
    %741 = arith.cmpi eq, %739, %740 : vector<8x128xi32>
    %cst_192 = arith.constant 0.000000e+00 : f32
    %742 = vector.broadcast %cst_192 : f32 to vector<8x128xf32>
    %743 = arith.subf %742, %722 : vector<8x128xf32>
    %744 = arith.select %741, %743, %736 : vector<8x128xi1>, vector<8x128xf32>
    %745 = arith.select %741, %736, %722 : vector<8x128xi1>, vector<8x128xf32>
    %746 = arith.mulf %744, %674 : vector<8x128xf32>
    %747 = arith.mulf %745, %677 : vector<8x128xf32>
    %748 = arith.addf %746, %747 : vector<8x128xf32>
    %749 = arith.mulf %744, %677 : vector<8x128xf32>
    %750 = arith.mulf %745, %674 : vector<8x128xf32>
    %751 = arith.subf %749, %750 : vector<8x128xf32>
    %752 = arith.mulf %744, %680 : vector<8x128xf32>
    %753 = arith.mulf %745, %683 : vector<8x128xf32>
    %754 = arith.addf %752, %753 : vector<8x128xf32>
    %755 = arith.mulf %744, %683 : vector<8x128xf32>
    %756 = arith.mulf %745, %680 : vector<8x128xf32>
    %757 = arith.subf %755, %756 : vector<8x128xf32>
    %758 = arith.mulf %744, %686 : vector<8x128xf32>
    %759 = arith.mulf %745, %689 : vector<8x128xf32>
    %760 = arith.subf %758, %759 : vector<8x128xf32>
    %761 = arith.mulf %745, %686 : vector<8x128xf32>
    %762 = arith.mulf %744, %689 : vector<8x128xf32>
    %763 = arith.addf %761, %762 : vector<8x128xf32>
    %764 = arith.mulf %744, %692 : vector<8x128xf32>
    %765 = arith.mulf %745, %695 : vector<8x128xf32>
    %766 = arith.subf %764, %765 : vector<8x128xf32>
    %767 = arith.mulf %745, %692 : vector<8x128xf32>
    %768 = arith.mulf %744, %695 : vector<8x128xf32>
    %769 = arith.addf %767, %768 : vector<8x128xf32>
    %c11 = arith.constant 11 : index
    %770 = arith.index_cast %11 : i32 to index
    %c0_193 = arith.constant 0 : index
    %771 = vector.load %arg3[%c11, %770, %c0_193] : memref<16x8x128xf32, #tpu.memory_space<vmem>>, vector<1x8x128xf32>
    %772 = vector.shape_cast %771 : vector<1x8x128xf32> to vector<8x128xf32>
    %cst_194 = arith.constant 5.000000e-01 : f32
    %773 = vector.broadcast %cst_194 : f32 to vector<8x128xf32>
    %774 = arith.mulf %773, %772 : vector<8x128xf32>
    %cst_195 = arith.constant 0.636619746 : f32
    %775 = vector.broadcast %cst_195 : f32 to vector<8x128xf32>
    %776 = arith.mulf %774, %775 : vector<8x128xf32>
    %cst_196 = arith.constant 5.000000e-01 : f32
    %777 = vector.broadcast %cst_196 : f32 to vector<8x128xf32>
    %778 = arith.addf %776, %777 : vector<8x128xf32>
    %779 = math.floor %778 : vector<8x128xf32>
    %cst_197 = arith.constant 1.57079637 : f32
    %780 = vector.broadcast %cst_197 : f32 to vector<8x128xf32>
    %781 = arith.mulf %779, %780 : vector<8x128xf32>
    %782 = arith.subf %774, %781 : vector<8x128xf32>
    %cst_198 = arith.constant -4.37113883E-8 : f32
    %783 = vector.broadcast %cst_198 : f32 to vector<8x128xf32>
    %784 = arith.mulf %779, %783 : vector<8x128xf32>
    %785 = arith.subf %782, %784 : vector<8x128xf32>
    %786 = arith.mulf %785, %785 : vector<8x128xf32>
    %787 = arith.mulf %785, %786 : vector<8x128xf32>
    %cst_199 = arith.constant -1.95152956E-4 : f32
    %788 = vector.broadcast %cst_199 : f32 to vector<8x128xf32>
    %789 = arith.mulf %788, %786 : vector<8x128xf32>
    %cst_200 = arith.constant 0.00833216123 : f32
    %790 = vector.broadcast %cst_200 : f32 to vector<8x128xf32>
    %791 = arith.addf %789, %790 : vector<8x128xf32>
    %792 = arith.mulf %791, %786 : vector<8x128xf32>
    %cst_201 = arith.constant 0.166666552 : f32
    %793 = vector.broadcast %cst_201 : f32 to vector<8x128xf32>
    %794 = arith.subf %792, %793 : vector<8x128xf32>
    %795 = arith.mulf %787, %794 : vector<8x128xf32>
    %796 = arith.addf %785, %795 : vector<8x128xf32>
    %cst_202 = arith.constant 5.000000e-01 : f32
    %797 = vector.broadcast %cst_202 : f32 to vector<8x128xf32>
    %798 = arith.mulf %797, %786 : vector<8x128xf32>
    %cst_203 = arith.constant 1.000000e+00 : f32
    %799 = vector.broadcast %cst_203 : f32 to vector<8x128xf32>
    %800 = arith.subf %799, %798 : vector<8x128xf32>
    %801 = arith.mulf %786, %786 : vector<8x128xf32>
    %cst_204 = arith.constant 2.44331568E-5 : f32
    %802 = vector.broadcast %cst_204 : f32 to vector<8x128xf32>
    %803 = arith.mulf %802, %786 : vector<8x128xf32>
    %cst_205 = arith.constant 0.00138873165 : f32
    %804 = vector.broadcast %cst_205 : f32 to vector<8x128xf32>
    %805 = arith.subf %803, %804 : vector<8x128xf32>
    %806 = arith.mulf %805, %786 : vector<8x128xf32>
    %cst_206 = arith.constant 0.0416666456 : f32
    %807 = vector.broadcast %cst_206 : f32 to vector<8x128xf32>
    %808 = arith.addf %806, %807 : vector<8x128xf32>
    %809 = arith.mulf %801, %808 : vector<8x128xf32>
    %810 = arith.addf %800, %809 : vector<8x128xf32>
    %811 = arith.fptosi %779 : vector<8x128xf32> to vector<8x128xi32>
    %c1_i32_207 = arith.constant 1 : i32
    %812 = vector.broadcast %c1_i32_207 : i32 to vector<8x128xi32>
    %813 = arith.andi %811, %812 : vector<8x128xi32>
    %c1_i32_208 = arith.constant 1 : i32
    %814 = vector.broadcast %c1_i32_208 : i32 to vector<8x128xi32>
    %815 = arith.cmpi eq, %813, %814 : vector<8x128xi32>
    %cst_209 = arith.constant 0.000000e+00 : f32
    %816 = vector.broadcast %cst_209 : f32 to vector<8x128xf32>
    %817 = arith.subf %816, %796 : vector<8x128xf32>
    %818 = arith.select %815, %817, %810 : vector<8x128xi1>, vector<8x128xf32>
    %819 = arith.select %815, %810, %796 : vector<8x128xi1>, vector<8x128xf32>
    %820 = arith.mulf %818, %748 : vector<8x128xf32>
    %821 = arith.mulf %819, %751 : vector<8x128xf32>
    %822 = arith.addf %820, %821 : vector<8x128xf32>
    %823 = arith.mulf %818, %751 : vector<8x128xf32>
    %824 = arith.mulf %819, %748 : vector<8x128xf32>
    %825 = arith.subf %823, %824 : vector<8x128xf32>
    %826 = arith.mulf %818, %754 : vector<8x128xf32>
    %827 = arith.mulf %819, %757 : vector<8x128xf32>
    %828 = arith.subf %826, %827 : vector<8x128xf32>
    %829 = arith.mulf %819, %754 : vector<8x128xf32>
    %830 = arith.mulf %818, %757 : vector<8x128xf32>
    %831 = arith.addf %829, %830 : vector<8x128xf32>
    %832 = arith.mulf %818, %760 : vector<8x128xf32>
    %833 = arith.mulf %819, %763 : vector<8x128xf32>
    %834 = arith.addf %832, %833 : vector<8x128xf32>
    %835 = arith.mulf %818, %763 : vector<8x128xf32>
    %836 = arith.mulf %819, %760 : vector<8x128xf32>
    %837 = arith.subf %835, %836 : vector<8x128xf32>
    %838 = arith.mulf %818, %766 : vector<8x128xf32>
    %839 = arith.mulf %819, %769 : vector<8x128xf32>
    %840 = arith.subf %838, %839 : vector<8x128xf32>
    %841 = arith.mulf %819, %766 : vector<8x128xf32>
    %842 = arith.mulf %818, %769 : vector<8x128xf32>
    %843 = arith.addf %841, %842 : vector<8x128xf32>
    %c12 = arith.constant 12 : index
    %844 = arith.index_cast %11 : i32 to index
    %c0_210 = arith.constant 0 : index
    %845 = vector.load %arg3[%c12, %844, %c0_210] : memref<16x8x128xf32, #tpu.memory_space<vmem>>, vector<1x8x128xf32>
    %846 = vector.shape_cast %845 : vector<1x8x128xf32> to vector<8x128xf32>
    %cst_211 = arith.constant 5.000000e-01 : f32
    %847 = vector.broadcast %cst_211 : f32 to vector<8x128xf32>
    %848 = arith.mulf %847, %846 : vector<8x128xf32>
    %cst_212 = arith.constant 0.636619746 : f32
    %849 = vector.broadcast %cst_212 : f32 to vector<8x128xf32>
    %850 = arith.mulf %848, %849 : vector<8x128xf32>
    %cst_213 = arith.constant 5.000000e-01 : f32
    %851 = vector.broadcast %cst_213 : f32 to vector<8x128xf32>
    %852 = arith.addf %850, %851 : vector<8x128xf32>
    %853 = math.floor %852 : vector<8x128xf32>
    %cst_214 = arith.constant 1.57079637 : f32
    %854 = vector.broadcast %cst_214 : f32 to vector<8x128xf32>
    %855 = arith.mulf %853, %854 : vector<8x128xf32>
    %856 = arith.subf %848, %855 : vector<8x128xf32>
    %cst_215 = arith.constant -4.37113883E-8 : f32
    %857 = vector.broadcast %cst_215 : f32 to vector<8x128xf32>
    %858 = arith.mulf %853, %857 : vector<8x128xf32>
    %859 = arith.subf %856, %858 : vector<8x128xf32>
    %860 = arith.mulf %859, %859 : vector<8x128xf32>
    %861 = arith.mulf %859, %860 : vector<8x128xf32>
    %cst_216 = arith.constant -1.95152956E-4 : f32
    %862 = vector.broadcast %cst_216 : f32 to vector<8x128xf32>
    %863 = arith.mulf %862, %860 : vector<8x128xf32>
    %cst_217 = arith.constant 0.00833216123 : f32
    %864 = vector.broadcast %cst_217 : f32 to vector<8x128xf32>
    %865 = arith.addf %863, %864 : vector<8x128xf32>
    %866 = arith.mulf %865, %860 : vector<8x128xf32>
    %cst_218 = arith.constant 0.166666552 : f32
    %867 = vector.broadcast %cst_218 : f32 to vector<8x128xf32>
    %868 = arith.subf %866, %867 : vector<8x128xf32>
    %869 = arith.mulf %861, %868 : vector<8x128xf32>
    %870 = arith.addf %859, %869 : vector<8x128xf32>
    %cst_219 = arith.constant 5.000000e-01 : f32
    %871 = vector.broadcast %cst_219 : f32 to vector<8x128xf32>
    %872 = arith.mulf %871, %860 : vector<8x128xf32>
    %cst_220 = arith.constant 1.000000e+00 : f32
    %873 = vector.broadcast %cst_220 : f32 to vector<8x128xf32>
    %874 = arith.subf %873, %872 : vector<8x128xf32>
    %875 = arith.mulf %860, %860 : vector<8x128xf32>
    %cst_221 = arith.constant 2.44331568E-5 : f32
    %876 = vector.broadcast %cst_221 : f32 to vector<8x128xf32>
    %877 = arith.mulf %876, %860 : vector<8x128xf32>
    %cst_222 = arith.constant 0.00138873165 : f32
    %878 = vector.broadcast %cst_222 : f32 to vector<8x128xf32>
    %879 = arith.subf %877, %878 : vector<8x128xf32>
    %880 = arith.mulf %879, %860 : vector<8x128xf32>
    %cst_223 = arith.constant 0.0416666456 : f32
    %881 = vector.broadcast %cst_223 : f32 to vector<8x128xf32>
    %882 = arith.addf %880, %881 : vector<8x128xf32>
    %883 = arith.mulf %875, %882 : vector<8x128xf32>
    %884 = arith.addf %874, %883 : vector<8x128xf32>
    %885 = arith.fptosi %853 : vector<8x128xf32> to vector<8x128xi32>
    %c1_i32_224 = arith.constant 1 : i32
    %886 = vector.broadcast %c1_i32_224 : i32 to vector<8x128xi32>
    %887 = arith.andi %885, %886 : vector<8x128xi32>
    %c1_i32_225 = arith.constant 1 : i32
    %888 = vector.broadcast %c1_i32_225 : i32 to vector<8x128xi32>
    %889 = arith.cmpi eq, %887, %888 : vector<8x128xi32>
    %cst_226 = arith.constant 0.000000e+00 : f32
    %890 = vector.broadcast %cst_226 : f32 to vector<8x128xf32>
    %891 = arith.subf %890, %870 : vector<8x128xf32>
    %892 = arith.select %889, %891, %884 : vector<8x128xi1>, vector<8x128xf32>
    %893 = arith.select %889, %884, %870 : vector<8x128xi1>, vector<8x128xf32>
    %894 = arith.mulf %892, %822 : vector<8x128xf32>
    %895 = arith.mulf %893, %834 : vector<8x128xf32>
    %896 = arith.subf %894, %895 : vector<8x128xf32>
    %897 = arith.mulf %892, %825 : vector<8x128xf32>
    %898 = arith.mulf %893, %837 : vector<8x128xf32>
    %899 = arith.subf %897, %898 : vector<8x128xf32>
    %900 = arith.mulf %893, %822 : vector<8x128xf32>
    %901 = arith.mulf %892, %834 : vector<8x128xf32>
    %902 = arith.addf %900, %901 : vector<8x128xf32>
    %903 = arith.mulf %893, %825 : vector<8x128xf32>
    %904 = arith.mulf %892, %837 : vector<8x128xf32>
    %905 = arith.addf %903, %904 : vector<8x128xf32>
    %906 = arith.mulf %892, %828 : vector<8x128xf32>
    %907 = arith.mulf %893, %840 : vector<8x128xf32>
    %908 = arith.subf %906, %907 : vector<8x128xf32>
    %909 = arith.mulf %892, %831 : vector<8x128xf32>
    %910 = arith.mulf %893, %843 : vector<8x128xf32>
    %911 = arith.subf %909, %910 : vector<8x128xf32>
    %912 = arith.mulf %893, %828 : vector<8x128xf32>
    %913 = arith.mulf %892, %840 : vector<8x128xf32>
    %914 = arith.addf %912, %913 : vector<8x128xf32>
    %915 = arith.mulf %893, %831 : vector<8x128xf32>
    %916 = arith.mulf %892, %843 : vector<8x128xf32>
    %917 = arith.addf %915, %916 : vector<8x128xf32>
    %c13 = arith.constant 13 : index
    %918 = arith.index_cast %11 : i32 to index
    %c0_227 = arith.constant 0 : index
    %919 = vector.load %arg3[%c13, %918, %c0_227] : memref<16x8x128xf32, #tpu.memory_space<vmem>>, vector<1x8x128xf32>
    %920 = vector.shape_cast %919 : vector<1x8x128xf32> to vector<8x128xf32>
    %cst_228 = arith.constant 5.000000e-01 : f32
    %921 = vector.broadcast %cst_228 : f32 to vector<8x128xf32>
    %922 = arith.mulf %921, %920 : vector<8x128xf32>
    %cst_229 = arith.constant 0.636619746 : f32
    %923 = vector.broadcast %cst_229 : f32 to vector<8x128xf32>
    %924 = arith.mulf %922, %923 : vector<8x128xf32>
    %cst_230 = arith.constant 5.000000e-01 : f32
    %925 = vector.broadcast %cst_230 : f32 to vector<8x128xf32>
    %926 = arith.addf %924, %925 : vector<8x128xf32>
    %927 = math.floor %926 : vector<8x128xf32>
    %cst_231 = arith.constant 1.57079637 : f32
    %928 = vector.broadcast %cst_231 : f32 to vector<8x128xf32>
    %929 = arith.mulf %927, %928 : vector<8x128xf32>
    %930 = arith.subf %922, %929 : vector<8x128xf32>
    %cst_232 = arith.constant -4.37113883E-8 : f32
    %931 = vector.broadcast %cst_232 : f32 to vector<8x128xf32>
    %932 = arith.mulf %927, %931 : vector<8x128xf32>
    %933 = arith.subf %930, %932 : vector<8x128xf32>
    %934 = arith.mulf %933, %933 : vector<8x128xf32>
    %935 = arith.mulf %933, %934 : vector<8x128xf32>
    %cst_233 = arith.constant -1.95152956E-4 : f32
    %936 = vector.broadcast %cst_233 : f32 to vector<8x128xf32>
    %937 = arith.mulf %936, %934 : vector<8x128xf32>
    %cst_234 = arith.constant 0.00833216123 : f32
    %938 = vector.broadcast %cst_234 : f32 to vector<8x128xf32>
    %939 = arith.addf %937, %938 : vector<8x128xf32>
    %940 = arith.mulf %939, %934 : vector<8x128xf32>
    %cst_235 = arith.constant 0.166666552 : f32
    %941 = vector.broadcast %cst_235 : f32 to vector<8x128xf32>
    %942 = arith.subf %940, %941 : vector<8x128xf32>
    %943 = arith.mulf %935, %942 : vector<8x128xf32>
    %944 = arith.addf %933, %943 : vector<8x128xf32>
    %cst_236 = arith.constant 5.000000e-01 : f32
    %945 = vector.broadcast %cst_236 : f32 to vector<8x128xf32>
    %946 = arith.mulf %945, %934 : vector<8x128xf32>
    %cst_237 = arith.constant 1.000000e+00 : f32
    %947 = vector.broadcast %cst_237 : f32 to vector<8x128xf32>
    %948 = arith.subf %947, %946 : vector<8x128xf32>
    %949 = arith.mulf %934, %934 : vector<8x128xf32>
    %cst_238 = arith.constant 2.44331568E-5 : f32
    %950 = vector.broadcast %cst_238 : f32 to vector<8x128xf32>
    %951 = arith.mulf %950, %934 : vector<8x128xf32>
    %cst_239 = arith.constant 0.00138873165 : f32
    %952 = vector.broadcast %cst_239 : f32 to vector<8x128xf32>
    %953 = arith.subf %951, %952 : vector<8x128xf32>
    %954 = arith.mulf %953, %934 : vector<8x128xf32>
    %cst_240 = arith.constant 0.0416666456 : f32
    %955 = vector.broadcast %cst_240 : f32 to vector<8x128xf32>
    %956 = arith.addf %954, %955 : vector<8x128xf32>
    %957 = arith.mulf %949, %956 : vector<8x128xf32>
    %958 = arith.addf %948, %957 : vector<8x128xf32>
    %959 = arith.fptosi %927 : vector<8x128xf32> to vector<8x128xi32>
    %c1_i32_241 = arith.constant 1 : i32
    %960 = vector.broadcast %c1_i32_241 : i32 to vector<8x128xi32>
    %961 = arith.andi %959, %960 : vector<8x128xi32>
    %c1_i32_242 = arith.constant 1 : i32
    %962 = vector.broadcast %c1_i32_242 : i32 to vector<8x128xi32>
    %963 = arith.cmpi eq, %961, %962 : vector<8x128xi32>
    %cst_243 = arith.constant 0.000000e+00 : f32
    %964 = vector.broadcast %cst_243 : f32 to vector<8x128xf32>
    %965 = arith.subf %964, %944 : vector<8x128xf32>
    %966 = arith.select %963, %965, %958 : vector<8x128xi1>, vector<8x128xf32>
    %967 = arith.select %963, %958, %944 : vector<8x128xi1>, vector<8x128xf32>
    %968 = arith.mulf %966, %896 : vector<8x128xf32>
    %969 = arith.mulf %967, %908 : vector<8x128xf32>
    %970 = arith.subf %968, %969 : vector<8x128xf32>
    %971 = arith.mulf %966, %899 : vector<8x128xf32>
    %972 = arith.mulf %967, %911 : vector<8x128xf32>
    %973 = arith.subf %971, %972 : vector<8x128xf32>
    %974 = arith.mulf %967, %896 : vector<8x128xf32>
    %975 = arith.mulf %966, %908 : vector<8x128xf32>
    %976 = arith.addf %974, %975 : vector<8x128xf32>
    %977 = arith.mulf %967, %899 : vector<8x128xf32>
    %978 = arith.mulf %966, %911 : vector<8x128xf32>
    %979 = arith.addf %977, %978 : vector<8x128xf32>
    %980 = arith.mulf %966, %902 : vector<8x128xf32>
    %981 = arith.mulf %967, %914 : vector<8x128xf32>
    %982 = arith.subf %980, %981 : vector<8x128xf32>
    %983 = arith.mulf %966, %905 : vector<8x128xf32>
    %984 = arith.mulf %967, %917 : vector<8x128xf32>
    %985 = arith.subf %983, %984 : vector<8x128xf32>
    %986 = arith.mulf %967, %902 : vector<8x128xf32>
    %987 = arith.mulf %966, %914 : vector<8x128xf32>
    %988 = arith.addf %986, %987 : vector<8x128xf32>
    %989 = arith.mulf %967, %905 : vector<8x128xf32>
    %990 = arith.mulf %966, %917 : vector<8x128xf32>
    %991 = arith.addf %989, %990 : vector<8x128xf32>
    %c14 = arith.constant 14 : index
    %992 = arith.index_cast %11 : i32 to index
    %c0_244 = arith.constant 0 : index
    %993 = vector.load %arg3[%c14, %992, %c0_244] : memref<16x8x128xf32, #tpu.memory_space<vmem>>, vector<1x8x128xf32>
    %994 = vector.shape_cast %993 : vector<1x8x128xf32> to vector<8x128xf32>
    %cst_245 = arith.constant 5.000000e-01 : f32
    %995 = vector.broadcast %cst_245 : f32 to vector<8x128xf32>
    %996 = arith.mulf %995, %994 : vector<8x128xf32>
    %cst_246 = arith.constant 0.636619746 : f32
    %997 = vector.broadcast %cst_246 : f32 to vector<8x128xf32>
    %998 = arith.mulf %996, %997 : vector<8x128xf32>
    %cst_247 = arith.constant 5.000000e-01 : f32
    %999 = vector.broadcast %cst_247 : f32 to vector<8x128xf32>
    %1000 = arith.addf %998, %999 : vector<8x128xf32>
    %1001 = math.floor %1000 : vector<8x128xf32>
    %cst_248 = arith.constant 1.57079637 : f32
    %1002 = vector.broadcast %cst_248 : f32 to vector<8x128xf32>
    %1003 = arith.mulf %1001, %1002 : vector<8x128xf32>
    %1004 = arith.subf %996, %1003 : vector<8x128xf32>
    %cst_249 = arith.constant -4.37113883E-8 : f32
    %1005 = vector.broadcast %cst_249 : f32 to vector<8x128xf32>
    %1006 = arith.mulf %1001, %1005 : vector<8x128xf32>
    %1007 = arith.subf %1004, %1006 : vector<8x128xf32>
    %1008 = arith.mulf %1007, %1007 : vector<8x128xf32>
    %1009 = arith.mulf %1007, %1008 : vector<8x128xf32>
    %cst_250 = arith.constant -1.95152956E-4 : f32
    %1010 = vector.broadcast %cst_250 : f32 to vector<8x128xf32>
    %1011 = arith.mulf %1010, %1008 : vector<8x128xf32>
    %cst_251 = arith.constant 0.00833216123 : f32
    %1012 = vector.broadcast %cst_251 : f32 to vector<8x128xf32>
    %1013 = arith.addf %1011, %1012 : vector<8x128xf32>
    %1014 = arith.mulf %1013, %1008 : vector<8x128xf32>
    %cst_252 = arith.constant 0.166666552 : f32
    %1015 = vector.broadcast %cst_252 : f32 to vector<8x128xf32>
    %1016 = arith.subf %1014, %1015 : vector<8x128xf32>
    %1017 = arith.mulf %1009, %1016 : vector<8x128xf32>
    %1018 = arith.addf %1007, %1017 : vector<8x128xf32>
    %cst_253 = arith.constant 5.000000e-01 : f32
    %1019 = vector.broadcast %cst_253 : f32 to vector<8x128xf32>
    %1020 = arith.mulf %1019, %1008 : vector<8x128xf32>
    %cst_254 = arith.constant 1.000000e+00 : f32
    %1021 = vector.broadcast %cst_254 : f32 to vector<8x128xf32>
    %1022 = arith.subf %1021, %1020 : vector<8x128xf32>
    %1023 = arith.mulf %1008, %1008 : vector<8x128xf32>
    %cst_255 = arith.constant 2.44331568E-5 : f32
    %1024 = vector.broadcast %cst_255 : f32 to vector<8x128xf32>
    %1025 = arith.mulf %1024, %1008 : vector<8x128xf32>
    %cst_256 = arith.constant 0.00138873165 : f32
    %1026 = vector.broadcast %cst_256 : f32 to vector<8x128xf32>
    %1027 = arith.subf %1025, %1026 : vector<8x128xf32>
    %1028 = arith.mulf %1027, %1008 : vector<8x128xf32>
    %cst_257 = arith.constant 0.0416666456 : f32
    %1029 = vector.broadcast %cst_257 : f32 to vector<8x128xf32>
    %1030 = arith.addf %1028, %1029 : vector<8x128xf32>
    %1031 = arith.mulf %1023, %1030 : vector<8x128xf32>
    %1032 = arith.addf %1022, %1031 : vector<8x128xf32>
    %1033 = arith.fptosi %1001 : vector<8x128xf32> to vector<8x128xi32>
    %c1_i32_258 = arith.constant 1 : i32
    %1034 = vector.broadcast %c1_i32_258 : i32 to vector<8x128xi32>
    %1035 = arith.andi %1033, %1034 : vector<8x128xi32>
    %c1_i32_259 = arith.constant 1 : i32
    %1036 = vector.broadcast %c1_i32_259 : i32 to vector<8x128xi32>
    %1037 = arith.cmpi eq, %1035, %1036 : vector<8x128xi32>
    %cst_260 = arith.constant 0.000000e+00 : f32
    %1038 = vector.broadcast %cst_260 : f32 to vector<8x128xf32>
    %1039 = arith.subf %1038, %1018 : vector<8x128xf32>
    %1040 = arith.select %1037, %1039, %1032 : vector<8x128xi1>, vector<8x128xf32>
    %1041 = arith.select %1037, %1032, %1018 : vector<8x128xi1>, vector<8x128xf32>
    %1042 = arith.mulf %1040, %970 : vector<8x128xf32>
    %1043 = arith.mulf %1041, %973 : vector<8x128xf32>
    %1044 = arith.addf %1042, %1043 : vector<8x128xf32>
    %1045 = arith.mulf %1040, %973 : vector<8x128xf32>
    %1046 = arith.mulf %1041, %970 : vector<8x128xf32>
    %1047 = arith.subf %1045, %1046 : vector<8x128xf32>
    %1048 = arith.mulf %1040, %976 : vector<8x128xf32>
    %1049 = arith.mulf %1041, %979 : vector<8x128xf32>
    %1050 = arith.addf %1048, %1049 : vector<8x128xf32>
    %1051 = arith.mulf %1040, %979 : vector<8x128xf32>
    %1052 = arith.mulf %1041, %976 : vector<8x128xf32>
    %1053 = arith.subf %1051, %1052 : vector<8x128xf32>
    %1054 = arith.mulf %1040, %982 : vector<8x128xf32>
    %1055 = arith.mulf %1041, %985 : vector<8x128xf32>
    %1056 = arith.subf %1054, %1055 : vector<8x128xf32>
    %1057 = arith.mulf %1041, %982 : vector<8x128xf32>
    %1058 = arith.mulf %1040, %985 : vector<8x128xf32>
    %1059 = arith.addf %1057, %1058 : vector<8x128xf32>
    %1060 = arith.mulf %1040, %988 : vector<8x128xf32>
    %1061 = arith.mulf %1041, %991 : vector<8x128xf32>
    %1062 = arith.subf %1060, %1061 : vector<8x128xf32>
    %1063 = arith.mulf %1041, %988 : vector<8x128xf32>
    %1064 = arith.mulf %1040, %991 : vector<8x128xf32>
    %1065 = arith.addf %1063, %1064 : vector<8x128xf32>
    %c15 = arith.constant 15 : index
    %1066 = arith.index_cast %11 : i32 to index
    %c0_261 = arith.constant 0 : index
    %1067 = vector.load %arg3[%c15, %1066, %c0_261] : memref<16x8x128xf32, #tpu.memory_space<vmem>>, vector<1x8x128xf32>
    %1068 = vector.shape_cast %1067 : vector<1x8x128xf32> to vector<8x128xf32>
    %cst_262 = arith.constant 5.000000e-01 : f32
    %1069 = vector.broadcast %cst_262 : f32 to vector<8x128xf32>
    %1070 = arith.mulf %1069, %1068 : vector<8x128xf32>
    %cst_263 = arith.constant 0.636619746 : f32
    %1071 = vector.broadcast %cst_263 : f32 to vector<8x128xf32>
    %1072 = arith.mulf %1070, %1071 : vector<8x128xf32>
    %cst_264 = arith.constant 5.000000e-01 : f32
    %1073 = vector.broadcast %cst_264 : f32 to vector<8x128xf32>
    %1074 = arith.addf %1072, %1073 : vector<8x128xf32>
    %1075 = math.floor %1074 : vector<8x128xf32>
    %cst_265 = arith.constant 1.57079637 : f32
    %1076 = vector.broadcast %cst_265 : f32 to vector<8x128xf32>
    %1077 = arith.mulf %1075, %1076 : vector<8x128xf32>
    %1078 = arith.subf %1070, %1077 : vector<8x128xf32>
    %cst_266 = arith.constant -4.37113883E-8 : f32
    %1079 = vector.broadcast %cst_266 : f32 to vector<8x128xf32>
    %1080 = arith.mulf %1075, %1079 : vector<8x128xf32>
    %1081 = arith.subf %1078, %1080 : vector<8x128xf32>
    %1082 = arith.mulf %1081, %1081 : vector<8x128xf32>
    %1083 = arith.mulf %1081, %1082 : vector<8x128xf32>
    %cst_267 = arith.constant -1.95152956E-4 : f32
    %1084 = vector.broadcast %cst_267 : f32 to vector<8x128xf32>
    %1085 = arith.mulf %1084, %1082 : vector<8x128xf32>
    %cst_268 = arith.constant 0.00833216123 : f32
    %1086 = vector.broadcast %cst_268 : f32 to vector<8x128xf32>
    %1087 = arith.addf %1085, %1086 : vector<8x128xf32>
    %1088 = arith.mulf %1087, %1082 : vector<8x128xf32>
    %cst_269 = arith.constant 0.166666552 : f32
    %1089 = vector.broadcast %cst_269 : f32 to vector<8x128xf32>
    %1090 = arith.subf %1088, %1089 : vector<8x128xf32>
    %1091 = arith.mulf %1083, %1090 : vector<8x128xf32>
    %1092 = arith.addf %1081, %1091 : vector<8x128xf32>
    %cst_270 = arith.constant 5.000000e-01 : f32
    %1093 = vector.broadcast %cst_270 : f32 to vector<8x128xf32>
    %1094 = arith.mulf %1093, %1082 : vector<8x128xf32>
    %cst_271 = arith.constant 1.000000e+00 : f32
    %1095 = vector.broadcast %cst_271 : f32 to vector<8x128xf32>
    %1096 = arith.subf %1095, %1094 : vector<8x128xf32>
    %1097 = arith.mulf %1082, %1082 : vector<8x128xf32>
    %cst_272 = arith.constant 2.44331568E-5 : f32
    %1098 = vector.broadcast %cst_272 : f32 to vector<8x128xf32>
    %1099 = arith.mulf %1098, %1082 : vector<8x128xf32>
    %cst_273 = arith.constant 0.00138873165 : f32
    %1100 = vector.broadcast %cst_273 : f32 to vector<8x128xf32>
    %1101 = arith.subf %1099, %1100 : vector<8x128xf32>
    %1102 = arith.mulf %1101, %1082 : vector<8x128xf32>
    %cst_274 = arith.constant 0.0416666456 : f32
    %1103 = vector.broadcast %cst_274 : f32 to vector<8x128xf32>
    %1104 = arith.addf %1102, %1103 : vector<8x128xf32>
    %1105 = arith.mulf %1097, %1104 : vector<8x128xf32>
    %1106 = arith.addf %1096, %1105 : vector<8x128xf32>
    %1107 = arith.fptosi %1075 : vector<8x128xf32> to vector<8x128xi32>
    %c1_i32_275 = arith.constant 1 : i32
    %1108 = vector.broadcast %c1_i32_275 : i32 to vector<8x128xi32>
    %1109 = arith.andi %1107, %1108 : vector<8x128xi32>
    %c1_i32_276 = arith.constant 1 : i32
    %1110 = vector.broadcast %c1_i32_276 : i32 to vector<8x128xi32>
    %1111 = arith.cmpi eq, %1109, %1110 : vector<8x128xi32>
    %cst_277 = arith.constant 0.000000e+00 : f32
    %1112 = vector.broadcast %cst_277 : f32 to vector<8x128xf32>
    %1113 = arith.subf %1112, %1092 : vector<8x128xf32>
    %1114 = arith.select %1111, %1113, %1106 : vector<8x128xi1>, vector<8x128xf32>
    %1115 = arith.select %1111, %1106, %1092 : vector<8x128xi1>, vector<8x128xf32>
    %1116 = arith.mulf %1114, %1044 : vector<8x128xf32>
    %1117 = arith.mulf %1115, %1047 : vector<8x128xf32>
    %1118 = arith.addf %1116, %1117 : vector<8x128xf32>
    %1119 = arith.mulf %1114, %1047 : vector<8x128xf32>
    %1120 = arith.mulf %1115, %1044 : vector<8x128xf32>
    %1121 = arith.subf %1119, %1120 : vector<8x128xf32>
    %1122 = arith.mulf %1114, %1050 : vector<8x128xf32>
    %1123 = arith.mulf %1115, %1053 : vector<8x128xf32>
    %1124 = arith.subf %1122, %1123 : vector<8x128xf32>
    %1125 = arith.mulf %1115, %1050 : vector<8x128xf32>
    %1126 = arith.mulf %1114, %1053 : vector<8x128xf32>
    %1127 = arith.addf %1125, %1126 : vector<8x128xf32>
    %1128 = arith.mulf %1114, %1056 : vector<8x128xf32>
    %1129 = arith.mulf %1115, %1059 : vector<8x128xf32>
    %1130 = arith.addf %1128, %1129 : vector<8x128xf32>
    %1131 = arith.mulf %1114, %1059 : vector<8x128xf32>
    %1132 = arith.mulf %1115, %1056 : vector<8x128xf32>
    %1133 = arith.subf %1131, %1132 : vector<8x128xf32>
    %1134 = arith.mulf %1114, %1062 : vector<8x128xf32>
    %1135 = arith.mulf %1115, %1065 : vector<8x128xf32>
    %1136 = arith.subf %1134, %1135 : vector<8x128xf32>
    %1137 = arith.mulf %1115, %1062 : vector<8x128xf32>
    %1138 = arith.mulf %1114, %1065 : vector<8x128xf32>
    %1139 = arith.addf %1137, %1138 : vector<8x128xf32>
    %1140 = arith.mulf %1, %1118 : vector<8x128xf32>
    %1141 = arith.mulf %3, %1130 : vector<8x128xf32>
    %1142 = arith.subf %1140, %1141 : vector<8x128xf32>
    %1143 = arith.mulf %1, %1121 : vector<8x128xf32>
    %1144 = arith.mulf %3, %1133 : vector<8x128xf32>
    %1145 = arith.subf %1143, %1144 : vector<8x128xf32>
    %1146 = arith.mulf %3, %1118 : vector<8x128xf32>
    %1147 = arith.mulf %1, %1130 : vector<8x128xf32>
    %1148 = arith.addf %1146, %1147 : vector<8x128xf32>
    %1149 = arith.mulf %3, %1121 : vector<8x128xf32>
    %1150 = arith.mulf %1, %1133 : vector<8x128xf32>
    %1151 = arith.addf %1149, %1150 : vector<8x128xf32>
    %1152 = arith.mulf %1, %1124 : vector<8x128xf32>
    %1153 = arith.mulf %3, %1136 : vector<8x128xf32>
    %1154 = arith.subf %1152, %1153 : vector<8x128xf32>
    %1155 = arith.mulf %1, %1127 : vector<8x128xf32>
    %1156 = arith.mulf %3, %1139 : vector<8x128xf32>
    %1157 = arith.subf %1155, %1156 : vector<8x128xf32>
    %1158 = arith.mulf %3, %1124 : vector<8x128xf32>
    %1159 = arith.mulf %1, %1136 : vector<8x128xf32>
    %1160 = arith.addf %1158, %1159 : vector<8x128xf32>
    %1161 = arith.mulf %3, %1127 : vector<8x128xf32>
    %1162 = arith.mulf %1, %1139 : vector<8x128xf32>
    %1163 = arith.addf %1161, %1162 : vector<8x128xf32>
    %1164 = arith.mulf %5, %1142 : vector<8x128xf32>
    %1165 = arith.mulf %7, %1154 : vector<8x128xf32>
    %1166 = arith.subf %1164, %1165 : vector<8x128xf32>
    %1167 = arith.mulf %5, %1145 : vector<8x128xf32>
    %1168 = arith.mulf %7, %1157 : vector<8x128xf32>
    %1169 = arith.subf %1167, %1168 : vector<8x128xf32>
    %1170 = arith.mulf %7, %1142 : vector<8x128xf32>
    %1171 = arith.mulf %5, %1154 : vector<8x128xf32>
    %1172 = arith.addf %1170, %1171 : vector<8x128xf32>
    %1173 = arith.mulf %7, %1145 : vector<8x128xf32>
    %1174 = arith.mulf %5, %1157 : vector<8x128xf32>
    %1175 = arith.addf %1173, %1174 : vector<8x128xf32>
    %1176 = arith.mulf %5, %1148 : vector<8x128xf32>
    %1177 = arith.mulf %7, %1160 : vector<8x128xf32>
    %1178 = arith.subf %1176, %1177 : vector<8x128xf32>
    %1179 = arith.mulf %5, %1151 : vector<8x128xf32>
    %1180 = arith.mulf %7, %1163 : vector<8x128xf32>
    %1181 = arith.subf %1179, %1180 : vector<8x128xf32>
    %1182 = arith.mulf %7, %1148 : vector<8x128xf32>
    %1183 = arith.mulf %5, %1160 : vector<8x128xf32>
    %1184 = arith.addf %1182, %1183 : vector<8x128xf32>
    %1185 = arith.mulf %7, %1151 : vector<8x128xf32>
    %1186 = arith.mulf %5, %1163 : vector<8x128xf32>
    %1187 = arith.addf %1185, %1186 : vector<8x128xf32>
    %1188 = arith.mulf %1166, %1166 : vector<8x128xf32>
    %1189 = arith.mulf %1169, %1169 : vector<8x128xf32>
    %1190 = arith.addf %1188, %1189 : vector<8x128xf32>
    %1191 = arith.mulf %1178, %1178 : vector<8x128xf32>
    %1192 = arith.mulf %1181, %1181 : vector<8x128xf32>
    %1193 = arith.addf %1191, %1192 : vector<8x128xf32>
    %1194 = arith.mulf %1184, %1184 : vector<8x128xf32>
    %1195 = arith.mulf %1187, %1187 : vector<8x128xf32>
    %1196 = arith.addf %1194, %1195 : vector<8x128xf32>
    %1197 = arith.mulf %1172, %1172 : vector<8x128xf32>
    %1198 = arith.mulf %1175, %1175 : vector<8x128xf32>
    %1199 = arith.addf %1197, %1198 : vector<8x128xf32>
    %1200 = arith.addf %1190, %1193 : vector<8x128xf32>
    %1201 = arith.subf %1200, %1196 : vector<8x128xf32>
    %1202 = arith.subf %1201, %1199 : vector<8x128xf32>
    %1203 = arith.subf %1190, %1193 : vector<8x128xf32>
    %1204 = arith.addf %1203, %1196 : vector<8x128xf32>
    %1205 = arith.subf %1204, %1199 : vector<8x128xf32>
    %c0_278 = arith.constant 0 : index
    %1206 = arith.index_cast %11 : i32 to index
    %c0_279 = arith.constant 0 : index
    %1207 = vector.load %arg4[%c0_278, %1206, %c0_279] : memref<2x8x128xf32, #tpu.memory_space<vmem>>, vector<1x8x128xf32>
    %1208 = vector.shape_cast %1207 : vector<1x8x128xf32> to vector<8x128xf32>
    %1209 = vector.shape_cast %1202 : vector<8x128xf32> to vector<1x8x128xf32>
    tpu.vector_store %arg4[%c0_278, %1206, %c0_279], %1209 {strides = array<i32>} : memref<2x8x128xf32, #tpu.memory_space<vmem>>, vector<1x8x128xf32>,
    %c1_280 = arith.constant 1 : index
    %1210 = arith.index_cast %11 : i32 to index
    %c0_281 = arith.constant 0 : index
    %1211 = vector.load %arg4[%c1_280, %1210, %c0_281] : memref<2x8x128xf32, #tpu.memory_space<vmem>>, vector<1x8x128xf32>
    %1212 = vector.shape_cast %1211 : vector<1x8x128xf32> to vector<8x128xf32>
    %1213 = vector.shape_cast %1205 : vector<8x128xf32> to vector<1x8x128xf32>
    tpu.vector_store %arg4[%c1_280, %1210, %c0_281], %1213 {strides = array<i32>} : memref<2x8x128xf32, #tpu.memory_space<vmem>>, vector<1x8x128xf32>,
    %c1_i32_282 = arith.constant 1 : i32
    return
  }
  func.func @transform_0(%arg0: i32) -> i32 {
    %c0_i32 = arith.constant 0 : i32
    %c0_i32_0 = arith.constant 0 : i32
    return %c0_i32 : i32
  }
  func.func @transform_1(%arg0: i32) -> i32 {
    %c0_i32 = arith.constant 0 : i32
    %c0_i32_0 = arith.constant 0 : i32
    return %c0_i32 : i32
  }
  func.func @transform_2(%arg0: i32) -> (i32, i32, i32) {
    %c0_i32 = arith.constant 0 : i32
    %c0_i32_0 = arith.constant 0 : i32
    %c0_i32_1 = arith.constant 0 : i32
    return %c0_i32, %arg0, %c0_i32_0 : i32, i32, i32
  }
  func.func @transform_3(%arg0: i32) -> (i32, i32, i32) {
    %c0_i32 = arith.constant 0 : i32
    %c0_i32_0 = arith.constant 0 : i32
    %c0_i32_1 = arith.constant 0 : i32
    return %c0_i32, %arg0, %c0_i32_0 : i32, i32, i32
  }
}

</mosaic_0001>

<bundles_post_ra>
// kernel: tpu_custom_call.1
= control target key start
LH: loop header
LB: loop body
LE: loop exit
PB: predicated region body
PF: predicated region fallthrough
CT: control target
= control target key end

     0   :  { %8 = vsyncpa [#allocation5], 0  ;;  %s1588_s0 = inlined_call_operand.hbm [shape: f32[4], index: 0, kind: input, shape index: {}]   ;;  %s1589_s1 = inlined_call_operand.hbm [shape: f32[4], index: 1, kind: input, shape index: {}]   ;;  %s1590_s2 = inlined_call_operand.hbm [shape: f32[16,8,128], index: 2, kind: input, shape index: {}]   ;;  %s1591_s3 = inlined_call_operand.hbm [shape: f32[2,8,128], index: 3, kind: output, shape index: {}]  }
   0x1   :  { %9 = vsyncpa [#allocation7], 0 }
   0x2   :  { %10 = vsyncpa [#allocation3], 0 }
   0x3   :  { %11 = vsyncpa [#allocation4], 0  ;;  %s17_s14 = sshll.u32 %s1588_s0, 4  ;;  %s26_s17 = sshll.u32 %s1589_s1, 4  ;;  %s18_s14 = int_to_ptr.hbm [resolvable:$true] %s17_s14  ;;  %s27_s17 = int_to_ptr.hbm [resolvable:$true] %s26_s17 }
   0x4   :  { %s1190_s18 = smov [#allocation2]   ;;  %s1191_s19 = smov [#allocation6]  }
   0x5   :  { %20 = dma.hbm_to_smem %s18_s14, 16, %s1190_s18, [#allocation5]  }
   0x6   :  { %29 = dma.hbm_to_smem %s27_s17, 16, %s1191_s19, [#allocation7]  }
   0x7   :  { %s34_s22 = sshll.u32 %s1590_s2, 4  ;;  %s1192_s23 = smov [#allocation8]   ;;  %s35_s22 = int_to_ptr.hbm [resolvable:$true] %s34_s22 }
   0x8   :  { %s36_s24 = sshll.u32 %s1192_s23, 4  ;;  %s1193_s25 = smov 128   ;;  %s37_s24 = int_to_ptr.vmem [resolvable:$true] %s36_s24 }
   0x9   :  { %s1194_s0 = smov 8  }
   0xa   :  { %42 = dma.hbm_to_vmem [thread:$0]  %s35_s22, 2048, %s37_s24, [#allocation3], %s1193_s25, %s1193_s25, %s1194_s0  }
   0xb   :  { %1182 = dma.done.wait [#allocation5], 16  }
   0xc   :  { %1183 = vsyncadd [#allocation5], 4294967280 }
   0xd   :  { %1184 = dma.done.wait [#allocation7], 16  }
   0xe   :  { %1185 = vsyncadd [#allocation7], 4294967280 }
   0xf   :  { %1186 = dma.done.wait [#allocation3], 2048  }
  0x10   :  { %1187 = vsyncadd [#allocation3], 4294965248 }
  0x11   :  { %55 = sfence }
  0x12   :  { %v64_v0 = vld [vmem:[#allocation8] sm:$0xff]  ;;  %v98_v1 = vld [vmem:[#allocation8 + $0x8] sm:$0xff]  ;;  %v136_v2 = vld [vmem:[#allocation8 + $0x10] sm:$0xff]  ;;  %s1546_s1 = sld [smem:[#allocation2]]  ;;  %s1195_s28 = smov [#allocation9]  }
  0x13   :  { %v65_v3 = vmul.f32 0.5, %v64_v0  ;;  %v99_v4 = vmul.f32 0.5, %v98_v1  ;;  %v137_v5 = vmul.f32 0.5, %v136_v2  ;;  %v180_v6 = vld [vmem:[#allocation8 + $0x18] sm:$0xff]  ;;  %v238_v43 = vld [vmem:[#allocation8 + $0x20] sm:$0xff]  ;;  %s1549_s2 = sld [smem:[#allocation6]] }
  0x14   :  { %v181_v7 = vmul.f32 0.5, %v180_v6  ;;  %v1246_v52 = vmul.f32 0.5, %v238_v43  ;;  %s1551_s26 = sld [smem:[#allocation2 + $0x1]]  ;;  %s1005_s29 = sshll.u32 %s1195_s28, 4  ;;  %s1006_s29 = int_to_ptr.vmem [resolvable:$true] %s1005_s29 }
  0x15   :  { %v66_v8 = vmul.f32 0.63661975, %v65_v3  ;;  %v100_v9 = vmul.f32 0.63661975, %v99_v4  ;;  %v138_v10 = vmul.f32 0.63661975, %v137_v5 }
  0x16   :  { %v182_v11 = vmul.f32 0.63661975, %v181_v7  ;;  %v240_v63 = vmul.f32 0.63661975, %v1246_v52  ;;  %s1553_s27 = sld [smem:[#allocation6 + $0x1]]  ;;  %s1007_s5 = sshll.u32 %s1591_s3, 4  ;;  %s1008_s5 = int_to_ptr.hbm [resolvable:$true] %s1007_s5 }
  0x17   :  { %v67_v12 = vadd.f32 0.5, %v66_v8  ;;  %v101_v13 = vadd.f32 0.5, %v100_v9  ;;  %v139_v14 = vadd.f32 0.5, %v138_v10 }
  0x18   :  { %v183_v15 = vadd.f32 0.5, %v182_v11 }
  0x19   :  { %v68_v16 = vfloor.f32 %v67_v12  ;;  %v1228_v17 = vfloor.f32 %v101_v13  ;;  %v1230_v18 = vfloor.f32 %v139_v14  ;;  %v241_v13 = vadd.f32 0.5, %v240_v63 }
  0x1a   :  { %v1232_v21 = vfloor.f32 %v183_v15 }
  0x1b   :  { %v69_v19 = vmul.f32 1.5707964, %v68_v16  ;;  %v71_v20 = vmul.f32 -4.371139e-08, %v68_v16  ;;  %v103_v22 = vmul.f32 1.5707964, %v1228_v17  ;;  %v1073_v61 = vcvt.f32.s32 %v68_v16 }
  0x1c   :  { %v105_v23 = vmul.f32 -4.371139e-08, %v1228_v17  ;;  %v141_v24 = vmul.f32 1.5707964, %v1230_v18  ;;  %v143_v26 = vmul.f32 -4.371139e-08, %v1230_v18  ;;  %v1075_v2 = vcvt.f32.s32 %v1228_v17 }
  0x1d   :  { %v70_v25 = vsub.f32 %v65_v3, %v69_v19  ;;  %v104_v27 = vsub.f32 %v99_v4, %v103_v22  ;;  %v185_v30 = vmul.f32 1.5707964, %v1232_v21  ;;  %v187_v38 = vmul.f32 -4.371139e-08, %v1232_v21 }
  0x1e   :  { %v142_v28 = vsub.f32 %v137_v5, %v141_v24  ;;  %v91_v11 = vand.u32 1, %v1073_v61  ;;  %v125_v16 = vand.u32 1, %v1075_v2  ;;  %v1077_v19 = vcvt.f32.s32 %v1230_v18  ;;  %v296_v24 = vld [vmem:[#allocation8 + $0x28] sm:$0xff] }
  0x1f   :  { %v72_v29 = vsub.f32 %v70_v25, %v71_v20  ;;  %v106_v31 = vsub.f32 %v104_v27, %v105_v23  ;;  %v186_v37 = vsub.f32 %v181_v7, %v185_v30 }
  0x20   :  { %v1239_v32 = vsub.f32 %v142_v28, %v143_v26  ;;  %vm92_vm0 = vcmp.eq.s32.totalorder %v91_v11, 1  ;;  %vm126_vm1 = vcmp.eq.s32.totalorder %v125_v16, 1  ;;  %v412_v11 = vld [vmem:[#allocation8 + $0x38] sm:$0xff] }
  0x21   :  { %v73_v33 = vmul.f32 %v72_v29, %v72_v29  ;;  %v107_v34 = vmul.f32 %v106_v31, %v106_v31  ;;  %v1244_v49 = vsub.f32 %v186_v37, %v187_v38  ;;  %v163_v37 = vand.u32 1, %v1077_v19 }
  0x22   :  { %v145_v36 = vmul.f32 %v1239_v32, %v1239_v32  ;;  %v1260_v38 = vmul.f32 0.5, %v296_v24 }
  0x23   :  { %v75_v35 = vmul.f32 -0.00019515296, %v73_v33  ;;  %v84_v39 = vmul.f32 2.4433157e-05, %v73_v33  ;;  %v109_v40 = vmul.f32 -0.00019515296, %v107_v34  ;;  %v74_v53 = vmul.f32 %v73_v33, %v72_v29 }
  0x24   :  { %v118_v42 = vmul.f32 2.4433157e-05, %v107_v34  ;;  %v147_v48 = vmul.f32 -0.00019515296, %v145_v36  ;;  %v156_v51 = vmul.f32 2.4433157e-05, %v145_v36  ;;  %v108_v57 = vmul.f32 %v107_v34, %v106_v31 }
  0x25   :  { %v76_v41 = vadd.f32 0.008332161, %v75_v35  ;;  %v1041_v44 = vadd.f32 -0.0013887316, %v84_v39  ;;  %v110_v45 = vadd.f32 0.008332161, %v109_v40  ;;  %v1250_v60 = vmul.f32 %v1244_v49, %v1244_v49 }
  0x26   :  { %v1043_v47 = vadd.f32 -0.0013887316, %v118_v42  ;;  %v148_v56 = vadd.f32 0.008332161, %v147_v48  ;;  %v1045_v62 = vadd.f32 -0.0013887316, %v156_v51  ;;  %v83_v4 = vmul.f32 %v73_v33, %v73_v33 }
  0x27   :  { %v77_v46 = vmul.f32 %v76_v41, %v73_v33  ;;  %v111_v50 = vmul.f32 %v110_v45, %v107_v34  ;;  %v86_v55 = vmul.f32 %v1041_v44, %v73_v33  ;;  %v81_v0 = vmul.f32 0.5, %v73_v33  ;;  %v354_v40 = vld [vmem:[#allocation8 + $0x30] sm:$0xff] }
  0x28   :  { %v120_v59 = vmul.f32 %v1043_v47, %v107_v34  ;;  %v115_v1 = vmul.f32 0.5, %v107_v34  ;;  %v149_v6 = vmul.f32 %v148_v56, %v145_v36  ;;  %v117_v8 = vmul.f32 %v107_v34, %v107_v34 }
  0x29   :  { %v1040_v54 = vadd.f32 -0.16666655, %v77_v46  ;;  %v1042_v58 = vadd.f32 -0.16666655, %v111_v50  ;;  %v87_v5 = vadd.f32 0.041666646, %v86_v55  ;;  %v158_v12 = vmul.f32 %v1045_v62, %v145_v36 }
  0x2a   :  { %v121_v9 = vadd.f32 0.041666646, %v120_v59  ;;  %v191_v10 = vmul.f32 -0.00019515296, %v1250_v60  ;;  %v82_v14 = vsub.f32 1.0, %v81_v0  ;;  %v116_v15 = vsub.f32 1.0, %v115_v1 }
  0x2b   :  { %v79_v3 = vmul.f32 %v1040_v54, %v74_v53  ;;  %v113_v7 = vmul.f32 %v1042_v58, %v108_v57  ;;  %v88_v22 = vmul.f32 %v87_v5, %v83_v4  ;;  %v146_v17 = vmul.f32 %v145_v36, %v1239_v32 }
  0x2c   :  { %v1044_v23 = vadd.f32 -0.16666655, %v149_v6  ;;  %v122_v26 = vmul.f32 %v121_v9, %v117_v8  ;;  %v153_v27 = vmul.f32 0.5, %v145_v36  ;;  %v192_v28 = vadd.f32 0.008332161, %v191_v10 }
  0x2d   :  { %v80_v20 = vadd.f32 %v79_v3, %v72_v29  ;;  %v114_v25 = vadd.f32 %v113_v7, %v106_v31  ;;  %v155_v30 = vmul.f32 %v145_v36, %v145_v36  ;;  %v159_v33 = vadd.f32 0.041666646, %v158_v12 }
  0x2e   :  { %v200_v34 = vmul.f32 2.4433157e-05, %v1250_v60  ;;  %v1258_v35 = vfloor.f32 %v241_v13  ;;  %v89_v18 = vadd.f32 %v88_v22, %v82_v14  ;;  %v151_v39 = vmul.f32 %v1044_v23, %v146_v17 }
  0x2f   :  { %v93_v29 = vsub.f32 0.0, %v80_v20  ;;  %v123_v41 = vadd.f32 %v122_v26, %v116_v15  ;;  %v127_v31 = vsub.f32 0.0, %v114_v25  ;;  %v154_v42 = vsub.f32 1.0, %v153_v27 }
  0x30   :  { %v193_v43 = vmul.f32 %v192_v28, %v1250_v60  ;;  %v160_v36 = vmul.f32 %v159_v33, %v155_v30  ;;  %v1047_v44 = vadd.f32 -0.0013887316, %v200_v34  ;;  %v243_v45 = vmul.f32 1.5707964, %v1258_v35 }
  0x31   :  { %v245_v46 = vmul.f32 -4.371139e-08, %v1258_v35  ;;  %v1079_v47 = vcvt.f32.s32 %v1232_v21  ;;  %v298_v48 = vmul.f32 0.63661975, %v1260_v38  ;;  %v1267_v50 = vmul.f32 0.5, %v354_v40 }
  0x32   :  { %v94_v51 = vsel %vm92_vm0, %v93_v29, %v89_v18  ;;  %v152_v53 = vadd.f32 %v151_v39, %v1239_v32  ;;  %v190_v54 = vmul.f32 %v1250_v60, %v1244_v49  ;;  %v244_v55 = vsub.f32 %v1246_v52, %v243_v45 }
  0x33   :  { %v128_v56 = vsel %vm126_vm1, %v127_v31, %v123_v41  ;;  %v1046_v57 = vadd.f32 -0.16666655, %v193_v43  ;;  %v202_v58 = vmul.f32 %v1047_v44, %v1250_v60  ;;  %v299_v59 = vadd.f32 0.5, %v298_v48 }
  0x34   :  { %v161_v21 = vadd.f32 %v160_v36, %v154_v42  ;;  %vm164_vm2 = vcmp.eq.s32.totalorder %v163_v37, 1  ;;  %v1276_v61 = vsub.f32 %v244_v55, %v245_v46  ;;  %v129_v62 = vsel %vm126_vm1, %v123_v41, %v114_v25 }
  0x35   :  { %v207_v63 = vand.u32 1, %v1079_v47  ;;  %v300_v0 = vfloor.f32 %v299_v59  ;;  %v356_v32 = vmul.f32 0.63661975, %v1267_v50  ;;  %v95_v1 = vsel %vm92_vm0, %v89_v18, %v80_v20 }
  0x36   :  { %v130_v2 = vmul.f32 %v128_v56, %v94_v51  ;;  %v197_v52 = vmul.f32 0.5, %v1250_v60  ;;  %v247_v3 = vmul.f32 %v1276_v61, %v1276_v61  ;;  %v165_v4 = vsub.f32 0.0, %v152_v53 }
  0x37   :  { %v195_v5 = vmul.f32 %v1046_v57, %v190_v54  ;;  %v199_v6 = vmul.f32 %v1250_v60, %v1250_v60  ;;  %v203_v7 = vadd.f32 0.041666646, %v202_v58  ;;  %v131_v8 = vmul.f32 %v129_v62, %v94_v51 }
  0x38   :  { %v167_v9 = vsel %vm164_vm2, %v161_v21, %v152_v53  ;;  %v249_v10 = vmul.f32 -0.00019515296, %v247_v3  ;;  %v301_v12 = vmul.f32 1.5707964, %v300_v0  ;;  %v357_v13 = vadd.f32 0.5, %v356_v32 }
  0x39   :  { %v132_v14 = vmul.f32 %v128_v56, %v95_v1  ;;  %v133_v15 = vmul.f32 %v129_v62, %v95_v1  ;;  %v198_v16 = vsub.f32 1.0, %v197_v52  ;;  %vm208_vm3 = vcmp.eq.s32.totalorder %v207_v63, 1 }
  0x3a   :  { %v166_v19 = vsel %vm164_vm2, %v165_v4, %v161_v21  ;;  %v169_v20 = vmul.f32 %v167_v9, %v130_v2  ;;  %v196_v22 = vadd.f32 %v195_v5, %v1244_v49  ;;  %v204_v17 = vmul.f32 %v203_v7, %v199_v6 }
  0x3b   :  { %v172_v23 = vmul.f32 %v167_v9, %v131_v8  ;;  %v250_v60 = vadd.f32 0.008332161, %v249_v10  ;;  %v258_v24 = vmul.f32 2.4433157e-05, %v247_v3  ;;  %v1289_v25 = vmul.f32 0.5, %v412_v11 }
  0x3c   :  { %v1081_v26 = vcvt.f32.s32 %v1258_v35  ;;  %v302_v27 = vsub.f32 %v1260_v38, %v301_v12  ;;  %v303_v28 = vmul.f32 -4.371139e-08, %v300_v0  ;;  %v1293_v30 = vfloor.f32 %v357_v13 }
  0x3d   :  { %v168_v33 = vmul.f32 %v166_v19, %v130_v2  ;;  %v171_v34 = vmul.f32 %v166_v19, %v131_v8  ;;  %v174_v37 = vmul.f32 %v166_v19, %v132_v14  ;;  %v175_v18 = vmul.f32 %v167_v9, %v132_v14 }
  0x3e   :  { %v170_v29 = vsub.f32 0.0, %v169_v20  ;;  %v176_v39 = vmul.f32 %v166_v19, %v133_v15  ;;  %v205_v49 = vadd.f32 %v204_v17, %v198_v16  ;;  %v209_v40 = vsub.f32 0.0, %v196_v22 }
  0x3f   :  { %v248_v41 = vmul.f32 %v247_v3, %v1276_v61  ;;  %v251_v31 = vmul.f32 %v250_v60, %v247_v3  ;;  %v1049_v42 = vadd.f32 -0.0013887316, %v258_v24  ;;  %v414_v43 = vmul.f32 0.63661975, %v1289_v25 }
  0x40   :  { %v1297_v35 = vand.u32 1, %v1081_v26  ;;  %v1299_v38 = vsub.f32 %v302_v27, %v303_v28  ;;  %v1083_v36 = vcvt.f32.s32 %v300_v0  ;;  %v359_v44 = vmul.f32 1.5707964, %v1293_v30 }
  0x41   :  { %v173_v45 = vsub.f32 0.0, %v172_v23  ;;  %v1048_v46 = vadd.f32 -0.16666655, %v251_v31  ;;  %v255_v47 = vmul.f32 0.5, %v247_v3  ;;  %v260_v48 = vmul.f32 %v1049_v42, %v247_v3 }
  0x42   :  { %v177_v51 = vmul.f32 %v167_v9, %v133_v15  ;;  %v210_v53 = vsel %vm208_vm3, %v209_v40, %v205_v49  ;;  %v211_v54 = vsel %vm208_vm3, %v205_v49, %v196_v22  ;;  %v305_v55 = vmul.f32 %v1299_v38, %v1299_v38 }
  0x43   :  { %v253_v56 = vmul.f32 %v1048_v46, %v248_v41  ;;  %v257_v57 = vmul.f32 %v247_v3, %v247_v3  ;;  %v261_v58 = vadd.f32 0.041666646, %v260_v48  ;;  %v415_v59 = vadd.f32 0.5, %v414_v43  ;;  %v470_v43 = vld [vmem:[#allocation8 + $0x40] sm:$0xff] }
  0x44   :  { %vm266_vm4 = vcmp.eq.s32.totalorder %v1297_v35, 1  ;;  %v307_v21 = vmul.f32 -0.00019515296, %v305_v55  ;;  %v1307_v62 = vand.u32 1, %v1083_v36  ;;  %v360_v0 = vsub.f32 %v1267_v50, %v359_v44 }
  0x45   :  { %v361_v32 = vmul.f32 -4.371139e-08, %v1293_v30  ;;  %v212_v1 = vmul.f32 %v210_v53, %v168_v33  ;;  %v213_v2 = vmul.f32 %v211_v54, %v170_v29  ;;  %v256_v63 = vsub.f32 1.0, %v255_v47 }
  0x46   :  { %v316_v52 = vmul.f32 2.4433157e-05, %v305_v55  ;;  %v215_v4 = vmul.f32 %v210_v53, %v170_v29  ;;  %v216_v5 = vmul.f32 %v211_v54, %v168_v33  ;;  %v218_v6 = vmul.f32 %v210_v53, %v171_v34 }
  0x47   :  { %v219_v7 = vmul.f32 %v211_v54, %v173_v45  ;;  %v254_v3 = vadd.f32 %v253_v56, %v1276_v61  ;;  %v262_v8 = vmul.f32 %v261_v58, %v257_v57  ;;  %v308_v9 = vadd.f32 0.008332161, %v307_v21 }
  0x48   :  { %v1312_v10 = vfloor.f32 %v415_v59  ;;  %v221_v12 = vmul.f32 %v211_v54, %v171_v34  ;;  %v222_v13 = vmul.f32 %v210_v53, %v173_v45  ;;  %v1051_v11 = vadd.f32 -0.0013887316, %v316_v52 }
  0x49   :  { %v1314_v50 = vsub.f32 %v360_v0, %v361_v32  ;;  %v224_v14 = vmul.f32 %v210_v53, %v174_v37  ;;  %v225_v15 = vmul.f32 %v211_v54, %v175_v18  ;;  %v227_v16 = vmul.f32 %v210_v53, %v175_v18 }
  0x4a   :  { %v228_v19 = vmul.f32 %v211_v54, %v174_v37  ;;  %v214_v20 = vadd.f32 %v213_v2, %v212_v1  ;;  %v217_v22 = vsub.f32 %v215_v4, %v216_v5  ;;  %v230_v17 = vmul.f32 %v210_v53, %v176_v39 }
  0x4b   :  { %v231_v23 = vmul.f32 %v211_v54, %v177_v51  ;;  %v263_v60 = vadd.f32 %v262_v8, %v256_v63  ;;  %v267_v24 = vsub.f32 0.0, %v254_v3  ;;  %v309_v61 = vmul.f32 %v308_v9, %v305_v55 }
  0x4c   :  { %v417_v26 = vmul.f32 1.5707964, %v1312_v10  ;;  %v220_v27 = vsub.f32 %v218_v6, %v219_v7  ;;  %v223_v28 = vadd.f32 %v222_v13, %v221_v12  ;;  %v318_v33 = vmul.f32 %v1051_v11, %v305_v55 }
  0x4d   :  { %v1319_v34 = vmul.f32 %v1314_v50, %v1314_v50  ;;  %v226_v29 = vadd.f32 %v225_v15, %v224_v14  ;;  %v229_v49 = vsub.f32 %v227_v16, %v228_v19  ;;  %v233_v18 = vmul.f32 %v211_v54, %v176_v39 }
  0x4e   :  { %v234_v37 = vmul.f32 %v210_v53, %v177_v51  ;;  %v232_v40 = vsub.f32 %v230_v17, %v231_v23  ;;  %v306_v41 = vmul.f32 %v305_v55, %v1299_v38  ;;  %v313_v31 = vmul.f32 0.5, %v305_v55 }
  0x4f   :  { %v1085_v42 = vcvt.f32.s32 %v1293_v30  ;;  %v268_v36 = vsel %vm266_vm4, %v267_v24, %v263_v60  ;;  %v1050_v44 = vadd.f32 -0.16666655, %v309_v61  ;;  %v315_v45 = vmul.f32 %v305_v55, %v305_v55 }
  0x50   :  { %v418_v46 = vsub.f32 %v1289_v25, %v417_v26  ;;  %v269_v47 = vsel %vm266_vm4, %v263_v60, %v254_v3  ;;  %v319_v48 = vadd.f32 0.041666646, %v318_v33  ;;  %v365_v39 = vmul.f32 -0.00019515296, %v1319_v34 }
  0x51   :  { %v419_v51 = vmul.f32 -4.371139e-08, %v1312_v10  ;;  %v235_v53 = vadd.f32 %v234_v37, %v233_v18  ;;  %vm324_vm5 = vcmp.eq.s32.totalorder %v1307_v62, 1  ;;  %v374_v30 = vmul.f32 2.4433157e-05, %v1319_v34 }
  0x52   :  { %v1332_v54 = vmul.f32 0.5, %v470_v43  ;;  %v270_v56 = vmul.f32 %v268_v36, %v214_v20  ;;  %v314_v57 = vsub.f32 1.0, %v313_v31  ;;  %v364_v25 = vmul.f32 %v1319_v34, %v1314_v50 }
  0x53   :  { %v1336_v55 = vand.u32 1, %v1085_v42  ;;  %v271_v35 = vmul.f32 %v269_v47, %v226_v29  ;;  %v273_v58 = vmul.f32 %v268_v36, %v217_v22  ;;  %v274_v59 = vmul.f32 %v269_v47, %v229_v49 }
  0x54   :  { %v311_v21 = vmul.f32 %v1050_v44, %v306_v41  ;;  %v276_v0 = vmul.f32 %v269_v47, %v214_v20  ;;  %v320_v32 = vmul.f32 %v319_v48, %v315_v45  ;;  %v366_v1 = vadd.f32 0.008332161, %v365_v39 }
  0x55   :  { %v1338_v2 = vsub.f32 %v418_v46, %v419_v51  ;;  %v277_v63 = vmul.f32 %v268_v36, %v226_v29  ;;  %v279_v52 = vmul.f32 %v269_v47, %v217_v22  ;;  %v280_v4 = vmul.f32 %v268_v36, %v229_v49  ;;  %v528_v29 = vld [vmem:[#allocation8 + $0x48] sm:$0xff] }
  0x56   :  { %v1053_v5 = vadd.f32 -0.0013887316, %v374_v30  ;;  %v282_v6 = vmul.f32 %v268_v36, %v220_v27  ;;  %v283_v7 = vmul.f32 %v269_v47, %v232_v40  ;;  %v285_v3 = vmul.f32 %v268_v36, %v223_v28 }
  0x57   :  { %v286_v8 = vmul.f32 %v269_v47, %v235_v53  ;;  %v288_v9 = vmul.f32 %v269_v47, %v220_v27  ;;  %v289_v12 = vmul.f32 %v268_v36, %v232_v40  ;;  %v291_v13 = vmul.f32 %v269_v47, %v223_v28 }
  0x58   :  { %v312_v11 = vadd.f32 %v311_v21, %v1299_v38  ;;  %v292_v14 = vmul.f32 %v268_v36, %v235_v53  ;;  %v321_v15 = vadd.f32 %v320_v32, %v314_v57  ;;  %v367_v16 = vmul.f32 %v366_v1, %v1319_v34 }
  0x59   :  { %v1344_v19 = vmul.f32 %v1338_v2, %v1338_v2  ;;  %v272_v20 = vsub.f32 %v270_v56, %v271_v35  ;;  %v275_v22 = vsub.f32 %v273_v58, %v274_v59  ;;  %v376_v17 = vmul.f32 %v1053_v5, %v1319_v34 }
  0x5a   :  { %v472_v23 = vmul.f32 0.63661975, %v1332_v54  ;;  %v278_v60 = vadd.f32 %v277_v63, %v276_v0  ;;  %v281_v24 = vadd.f32 %v280_v4, %v279_v52  ;;  %v371_v61 = vmul.f32 0.5, %v1319_v34 }
  0x5b   :  { %v1087_v38 = vcvt.f32.s32 %v1312_v10  ;;  %v284_v26 = vsub.f32 %v282_v6, %v283_v7  ;;  %v287_v27 = vsub.f32 %v285_v3, %v286_v8  ;;  %v290_v28 = vadd.f32 %v289_v12, %v288_v9  ;;  %v586_v12 = vld [vmem:[#allocation8 + $0x50] sm:$0xff] }
  0x5c   :  { %v325_v33 = vsub.f32 0.0, %v312_v11  ;;  %v293_v49 = vadd.f32 %v292_v14, %v291_v13  ;;  %v327_v18 = vsel %vm324_vm5, %v321_v15, %v312_v11  ;;  %v1052_v37 = vadd.f32 -0.16666655, %v367_v16 }
  0x5d   :  { %v423_v40 = vmul.f32 -0.00019515296, %v1344_v19  ;;  %v373_v41 = vmul.f32 %v1319_v34, %v1319_v34  ;;  %v377_v31 = vadd.f32 0.041666646, %v376_v17  ;;  %v432_v42 = vmul.f32 2.4433157e-05, %v1344_v19 }
  0x5e   :  { %v473_v43 = vadd.f32 0.5, %v472_v23  ;;  %v372_v10 = vsub.f32 1.0, %v371_v61  ;;  %vm382_vm6 = vcmp.eq.s32.totalorder %v1336_v55, 1  ;;  %v1357_v44 = vand.u32 1, %v1087_v38 }
  0x5f   :  { %v424_v36 = vadd.f32 0.008332161, %v423_v40  ;;  %v1359_v45 = vmul.f32 0.5, %v528_v29  ;;  %v326_v46 = vsel %vm324_vm5, %v325_v33, %v321_v15  ;;  %v329_v47 = vmul.f32 %v327_v18, %v284_v26 }
  0x60   :  { %v332_v48 = vmul.f32 %v327_v18, %v287_v27  ;;  %v334_v39 = vmul.f32 %v327_v18, %v272_v20  ;;  %v337_v51 = vmul.f32 %v327_v18, %v275_v22  ;;  %v341_v34 = vmul.f32 %v327_v18, %v290_v28 }
  0x61   :  { %v344_v53 = vmul.f32 %v327_v18, %v293_v49  ;;  %v369_v30 = vmul.f32 %v1052_v37, %v364_v25  ;;  %v378_v56 = vmul.f32 %v377_v31, %v373_v41  ;;  %v425_v57 = vmul.f32 %v424_v36, %v1344_v19 }
  0x62   :  { %v1055_v35 = vadd.f32 -0.0013887316, %v432_v42  ;;  %v1364_v58 = vfloor.f32 %v473_v43  ;;  %v328_v59 = vmul.f32 %v326_v46, %v272_v20  ;;  %v331_v21 = vmul.f32 %v326_v46, %v275_v22 }
  0x63   :  { %v346_v0 = vmul.f32 %v327_v18, %v278_v60  ;;  %v530_v32 = vmul.f32 0.63661975, %v1359_v45  ;;  %v335_v62 = vmul.f32 %v326_v46, %v284_v26  ;;  %v338_v1 = vmul.f32 %v326_v46, %v287_v27 }
  0x64   :  { %v340_v63 = vmul.f32 %v326_v46, %v278_v60  ;;  %v343_v52 = vmul.f32 %v326_v46, %v281_v24  ;;  %v347_v4 = vmul.f32 %v326_v46, %v290_v28  ;;  %v349_v5 = vmul.f32 %v327_v18, %v281_v24 }
  0x65   :  { %v370_v6 = vadd.f32 %v369_v30, %v1314_v50  ;;  %v422_v25 = vmul.f32 %v1344_v19, %v1338_v2  ;;  %v379_v7 = vadd.f32 %v378_v56, %v372_v10  ;;  %v1054_v3 = vadd.f32 -0.16666655, %v425_v57 }
  0x66   :  { %v434_v8 = vmul.f32 %v1055_v35, %v1344_v19  ;;  %v475_v9 = vmul.f32 1.5707964, %v1364_v58  ;;  %v330_v13 = vsub.f32 %v328_v59, %v329_v47  ;;  %v333_v11 = vsub.f32 %v331_v21, %v332_v48 }
  0x67   :  { %v350_v14 = vmul.f32 %v326_v46, %v293_v49  ;;  %v531_v15 = vadd.f32 0.5, %v530_v32  ;;  %v336_v16 = vadd.f32 %v335_v62, %v334_v39  ;;  %v339_v20 = vadd.f32 %v338_v1, %v337_v51 }
  0x68   :  { %v429_v22 = vmul.f32 0.5, %v1344_v19  ;;  %v477_v50 = vmul.f32 -4.371139e-08, %v1364_v58  ;;  %v342_v17 = vsub.f32 %v340_v63, %v341_v34  ;;  %v383_v23 = vsub.f32 0.0, %v370_v6 }
  0x69   :  { %v431_v60 = vmul.f32 %v1344_v19, %v1344_v19  ;;  %v1376_v24 = vmul.f32 0.5, %v586_v12  ;;  %v385_v61 = vsel %vm382_vm6, %v379_v7, %v370_v6  ;;  %v427_v38 = vmul.f32 %v1054_v3, %v422_v25 }
  0x6a   :  { %v435_v26 = vadd.f32 0.041666646, %v434_v8  ;;  %v476_v27 = vsub.f32 %v1332_v54, %v475_v9  ;;  %v345_v28 = vsub.f32 %v343_v52, %v344_v53  ;;  %v348_v33 = vadd.f32 %v347_v4, %v346_v0 }
  0x6b   :  { %v351_v29 = vadd.f32 %v350_v14, %v349_v5  ;;  %v1381_v49 = vfloor.f32 %v531_v15  ;;  %v430_v18 = vsub.f32 1.0, %v429_v22  ;;  %vm440_vm7 = vcmp.eq.s32.totalorder %v1357_v44, 1 }
  0x6c   :  { %v1384_v37 = vsub.f32 %v476_v27, %v477_v50  ;;  %v1089_v19 = vcvt.f32.s32 %v1364_v58  ;;  %v384_v40 = vsel %vm382_vm6, %v383_v23, %v379_v7  ;;  %v387_v41 = vmul.f32 %v385_v61, %v333_v11  ;;  %v644_v58 = vld [vmem:[#allocation8 + $0x58] sm:$0xff] }
  0x6d   :  { %v390_v31 = vmul.f32 %v385_v61, %v330_v13  ;;  %v588_v42 = vmul.f32 0.63661975, %v1376_v24  ;;  %v393_v54 = vmul.f32 %v385_v61, %v339_v20  ;;  %v428_v43 = vadd.f32 %v427_v38, %v1338_v2 }
  0x6e   :  { %v436_v10 = vmul.f32 %v435_v26, %v431_v60  ;;  %v479_v36 = vmul.f32 %v1384_v37, %v1384_v37  ;;  %v396_v46 = vmul.f32 %v385_v61, %v336_v16  ;;  %v399_v47 = vmul.f32 %v385_v61, %v345_v28 }
  0x6f   :  { %v401_v48 = vmul.f32 %v385_v61, %v342_v17  ;;  %v533_v39 = vmul.f32 1.5707964, %v1381_v49  ;;  %v386_v51 = vmul.f32 %v384_v40, %v330_v13  ;;  %v389_v34 = vmul.f32 %v384_v40, %v333_v11 }
  0x70   :  { %v392_v55 = vmul.f32 %v384_v40, %v336_v16  ;;  %v405_v53 = vmul.f32 %v385_v61, %v351_v29  ;;  %v395_v30 = vmul.f32 %v384_v40, %v339_v20  ;;  %v398_v56 = vmul.f32 %v384_v40, %v342_v17 }
  0x71   :  { %v402_v57 = vmul.f32 %v384_v40, %v345_v28  ;;  %v589_v35 = vadd.f32 0.5, %v588_v42  ;;  %v404_v59 = vmul.f32 %v384_v40, %v348_v33  ;;  %v437_v2 = vadd.f32 %v436_v10, %v430_v18 }
  0x72   :  { %v441_v21 = vsub.f32 0.0, %v428_v43  ;;  %v481_v0 = vmul.f32 -0.00019515296, %v479_v36  ;;  %v407_v32 = vmul.f32 %v385_v61, %v348_v33  ;;  %v408_v62 = vmul.f32 %v384_v40, %v351_v29 }
  0x73   :  { %v534_v1 = vsub.f32 %v1359_v45, %v533_v39  ;;  %v535_v63 = vmul.f32 -4.371139e-08, %v1381_v49  ;;  %v388_v52 = vadd.f32 %v387_v41, %v386_v51  ;;  %v391_v4 = vsub.f32 %v389_v34, %v390_v31 }
  0x74   :  { %v394_v5 = vadd.f32 %v393_v54, %v392_v55  ;;  %v1396_v6 = vmul.f32 0.5, %v644_v58  ;;  %v397_v25 = vsub.f32 %v395_v30, %v396_v46  ;;  %v400_v7 = vsub.f32 %v398_v56, %v399_v47 }
  0x75   :  { %v403_v3 = vadd.f32 %v402_v57, %v401_v48  ;;  %v1398_v8 = vfloor.f32 %v589_v35  ;;  %v406_v9 = vsub.f32 %v404_v59, %v405_v53  ;;  %v442_v12 = vsel %vm440_vm7, %v441_v21, %v437_v2 }
  0x76   :  { %v482_v13 = vadd.f32 0.008332161, %v481_v0  ;;  %v1402_v11 = vand.u32 1, %v1089_v19  ;;  %v409_v45 = vadd.f32 %v408_v62, %v407_v32  ;;  %v443_v14 = vsel %vm440_vm7, %v437_v2, %v428_v43 }
  0x77   :  { %v490_v15 = vmul.f32 2.4433157e-05, %v479_v36  ;;  %v1406_v16 = vsub.f32 %v534_v1, %v535_v63  ;;  %v480_v20 = vmul.f32 %v479_v36, %v1384_v37  ;;  %v1091_v50 = vcvt.f32.s32 %v1381_v49 }
  0x78   :  { %v483_v22 = vmul.f32 %v482_v13, %v479_v36  ;;  %v646_v17 = vmul.f32 0.63661975, %v1396_v6  ;;  %v444_v23 = vmul.f32 %v442_v12, %v388_v52  ;;  %v591_v38 = vmul.f32 1.5707964, %v1398_v8 }
  0x79   :  { %v1057_v60 = vadd.f32 -0.0013887316, %v490_v15  ;;  %v537_v61 = vmul.f32 %v1406_v16, %v1406_v16  ;;  %v445_v26 = vmul.f32 %v443_v14, %v391_v4  ;;  %v447_v44 = vmul.f32 %v442_v12, %v391_v4 }
  0x7a   :  { %v448_v27 = vmul.f32 %v443_v14, %v388_v52  ;;  %v1056_v28 = vadd.f32 -0.16666655, %v483_v22  ;;  %v487_v33 = vmul.f32 0.5, %v479_v36  ;;  %v593_v19 = vmul.f32 -4.371139e-08, %v1398_v8 }
  0x7b   :  { %v492_v29 = vmul.f32 %v1057_v60, %v479_v36  ;;  %v539_v18 = vmul.f32 -0.00019515296, %v537_v61  ;;  %v489_v49 = vmul.f32 %v479_v36, %v479_v36  ;;  %v548_v41 = vmul.f32 2.4433157e-05, %v537_v61  ;;  %v702_v36 = vld [vmem:[#allocation8 + $0x60] sm:$0xff] }
  0x7c   :  { %v485_v40 = vmul.f32 %v1056_v28, %v480_v20  ;;  %v592_v31 = vsub.f32 %v1376_v24, %v591_v38  ;;  %v450_v42 = vmul.f32 %v442_v12, %v394_v5  ;;  %vm498_vm8 = vcmp.eq.s32.totalorder %v1402_v11, 1 }
  0x7d   :  { %v493_v54 = vadd.f32 0.041666646, %v492_v29  ;;  %v540_v43 = vadd.f32 0.008332161, %v539_v18  ;;  %v1417_v10 = vand.u32 1, %v1091_v50  ;;  %v451_v46 = vmul.f32 %v443_v14, %v397_v25 }
  0x7e   :  { %v453_v47 = vmul.f32 %v443_v14, %v394_v5  ;;  %v454_v48 = vmul.f32 %v442_v12, %v397_v25  ;;  %v1059_v39 = vadd.f32 -0.0013887316, %v548_v41  ;;  %v446_v51 = vadd.f32 %v445_v26, %v444_v23 }
  0x7f   :  { %v449_v34 = vsub.f32 %v447_v44, %v448_v27  ;;  %v541_v55 = vmul.f32 %v540_v43, %v537_v61  ;;  %v1419_v53 = vsub.f32 %v592_v31, %v593_v19  ;;  %v486_v30 = vadd.f32 %v485_v40, %v1384_v37 }
  0x80   :  { %v488_v24 = vsub.f32 1.0, %v487_v33  ;;  %v494_v56 = vmul.f32 %v493_v54, %v489_v49  ;;  %v647_v57 = vadd.f32 0.5, %v646_v17  ;;  %v456_v35 = vmul.f32 %v442_v12, %v400_v7 }
  0x81   :  { %v457_v58 = vmul.f32 %v443_v14, %v403_v3  ;;  %v459_v59 = vmul.f32 %v442_v12, %v403_v3  ;;  %v460_v2 = vmul.f32 %v443_v14, %v400_v7  ;;  %v538_v21 = vmul.f32 %v537_v61, %v1406_v16 }
  0x82   :  { %v1058_v0 = vadd.f32 -0.16666655, %v541_v55  ;;  %v550_v32 = vmul.f32 %v1059_v39, %v537_v61  ;;  %v1423_v62 = vmul.f32 0.5, %v702_v36  ;;  %v462_v1 = vmul.f32 %v442_v12, %v406_v9 }
  0x83   :  { %v463_v63 = vmul.f32 %v443_v14, %v409_v45  ;;  %v465_v52 = vmul.f32 %v443_v14, %v406_v9  ;;  %v1427_v4 = vmul.f32 %v1419_v53, %v1419_v53  ;;  %v466_v37 = vmul.f32 %v442_v12, %v409_v45 }
  0x84   :  { %v495_v5 = vadd.f32 %v494_v56, %v488_v24  ;;  %v499_v25 = vsub.f32 0.0, %v486_v30  ;;  %v1429_v13 = vfloor.f32 %v647_v57  ;;  %v452_v3 = vsub.f32 %v450_v42, %v451_v46 }
  0x85   :  { %v455_v7 = vadd.f32 %v454_v48, %v453_v47  ;;  %v545_v15 = vmul.f32 0.5, %v537_v61  ;;  %v1093_v20 = vcvt.f32.s32 %v1398_v8  ;;  %v543_v22 = vmul.f32 %v1058_v0, %v538_v21 }
  0x86   :  { %v547_v50 = vmul.f32 %v537_v61, %v537_v61  ;;  %v551_v17 = vadd.f32 0.041666646, %v550_v32  ;;  %v704_v23 = vmul.f32 0.63661975, %v1423_v62  ;;  %v458_v9 = vadd.f32 %v457_v58, %v456_v35 }
  0x87   :  { %v461_v14 = vsub.f32 %v459_v59, %v460_v2  ;;  %v464_v60 = vsub.f32 %v462_v1, %v463_v63  ;;  %v597_v38 = vmul.f32 -0.00019515296, %v1427_v4  ;;  %v467_v12 = vadd.f32 %v466_v37, %v465_v52  ;;  %v760_v52 = vld [vmem:[#allocation8 + $0x68] sm:$0xff] }
  0x88   :  { %v500_v45 = vsel %vm498_vm8, %v499_v25, %v495_v5  ;;  %vm556_vm9 = vcmp.eq.s32.totalorder %v1417_v10, 1  ;;  %v649_v26 = vmul.f32 1.5707964, %v1429_v13  ;;  %v501_v8 = vsel %vm498_vm8, %v495_v5, %v486_v30 }
  0x89   :  { %v546_v61 = vsub.f32 1.0, %v545_v15  ;;  %v1440_v44 = vand.u32 1, %v1093_v20  ;;  %v651_v27 = vmul.f32 -4.371139e-08, %v1429_v13  ;;  %v544_v28 = vadd.f32 %v543_v22, %v1406_v16 }
  0x8a   :  { %v552_v33 = vmul.f32 %v551_v17, %v547_v50  ;;  %v596_v29 = vmul.f32 %v1427_v4, %v1419_v53  ;;  %v705_v18 = vadd.f32 0.5, %v704_v23  ;;  %v502_v19 = vmul.f32 %v500_v45, %v446_v51 }
  0x8b   :  { %v598_v40 = vadd.f32 0.008332161, %v597_v38  ;;  %v1447_v49 = vmul.f32 0.5, %v1427_v4  ;;  %v606_v11 = vmul.f32 2.4433157e-05, %v1427_v4  ;;  %v503_v41 = vmul.f32 %v501_v8, %v458_v9 }
  0x8c   :  { %v505_v31 = vmul.f32 %v500_v45, %v449_v34  ;;  %v506_v42 = vmul.f32 %v501_v8, %v461_v14  ;;  %v650_v54 = vsub.f32 %v1396_v6, %v649_v26  ;;  %v508_v43 = vmul.f32 %v501_v8, %v446_v51 }
  0x8d   :  { %v509_v46 = vmul.f32 %v500_v45, %v458_v9  ;;  %v511_v16 = vmul.f32 %v501_v8, %v449_v34  ;;  %v512_v47 = vmul.f32 %v500_v45, %v461_v14  ;;  %v514_v48 = vmul.f32 %v500_v45, %v452_v3 }
  0x8e   :  { %v515_v39 = vmul.f32 %v501_v8, %v464_v60  ;;  %v553_v55 = vadd.f32 %v552_v33, %v546_v61  ;;  %v557_v36 = vsub.f32 0.0, %v544_v28  ;;  %v517_v30 = vmul.f32 %v500_v45, %v455_v7 }
  0x8f   :  { %v518_v24 = vmul.f32 %v501_v8, %v467_v12  ;;  %v599_v56 = vmul.f32 %v598_v40, %v1427_v4  ;;  %v1061_v57 = vadd.f32 -0.0013887316, %v606_v11  ;;  %v520_v35 = vmul.f32 %v501_v8, %v452_v3 }
  0x90   :  { %v521_v58 = vmul.f32 %v500_v45, %v464_v60  ;;  %v605_v59 = vmul.f32 %v1427_v4, %v1427_v4  ;;  %v1454_v2 = vsub.f32 %v650_v54, %v651_v27  ;;  %v504_v6 = vsub.f32 %v502_v19, %v503_v41 }
  0x91   :  { %v507_v51 = vsub.f32 %v505_v31, %v506_v42  ;;  %v510_v34 = vadd.f32 %v509_v46, %v508_v43  ;;  %v513_v21 = vadd.f32 %v512_v47, %v511_v16  ;;  %v516_v0 = vsub.f32 %v514_v48, %v515_v39 }
  0x92   :  { %v523_v32 = vmul.f32 %v501_v8, %v455_v7  ;;  %v558_v1 = vsel %vm556_vm9, %v557_v36, %v553_v55  ;;  %v1458_v63 = vfloor.f32 %v705_v18  ;;  %v519_v37 = vsub.f32 %v517_v30, %v518_v24 }
  0x93   :  { %v559_v5 = vsel %vm556_vm9, %v553_v55, %v544_v28  ;;  %v1060_v25 = vadd.f32 -0.16666655, %v599_v56  ;;  %v608_v3 = vmul.f32 %v1061_v57, %v1427_v4  ;;  %v522_v15 = vadd.f32 %v521_v58, %v520_v35 }
  0x94   :  { %v524_v20 = vmul.f32 %v500_v45, %v467_v12  ;;  %v604_v22 = vsub.f32 1.0, %v1447_v49  ;;  %v653_v7 = vmul.f32 %v1454_v2, %v1454_v2  ;;  %v560_v50 = vmul.f32 %v558_v1, %v504_v6 }
  0x95   :  { %v601_v17 = vmul.f32 %v1060_v25, %v596_v29  ;;  %v609_v23 = vadd.f32 0.041666646, %v608_v3  ;;  %vm614_vm10 = vcmp.eq.s32.totalorder %v1440_v44, 1  ;;  %v1467_v9 = vmul.f32 0.5, %v760_v52  ;;  %v818_v52 = vld [vmem:[#allocation8 + $0x70] sm:$0xff] }
  0x96   :  { %v561_v14 = vmul.f32 %v559_v5, %v516_v0  ;;  %v563_v10 = vmul.f32 %v558_v1, %v507_v51  ;;  %v655_v60 = vmul.f32 -0.00019515296, %v653_v7  ;;  %v707_v38 = vmul.f32 1.5707964, %v1458_v63 }
  0x97   :  { %v564_v4 = vmul.f32 %v559_v5, %v519_v37  ;;  %v566_v26 = vmul.f32 %v559_v5, %v504_v6  ;;  %v567_v12 = vmul.f32 %v558_v1, %v516_v0  ;;  %v664_v45 = vmul.f32 2.4433157e-05, %v653_v7 }
  0x98   :  { %v525_v8 = vadd.f32 %v524_v20, %v523_v32  ;;  %v602_v61 = vadd.f32 %v601_v17, %v1419_v53  ;;  %v610_v27 = vmul.f32 %v609_v23, %v605_v59  ;;  %v1095_v28 = vcvt.f32.s32 %v1429_v13 }
  0x99   :  { %v569_v33 = vmul.f32 %v559_v5, %v507_v51  ;;  %v570_v29 = vmul.f32 %v558_v1, %v519_v37  ;;  %v656_v18 = vadd.f32 0.008332161, %v655_v60  ;;  %v1063_v19 = vadd.f32 -0.0013887316, %v664_v45 }
  0x9a   :  { %v562_v40 = vsub.f32 %v560_v50, %v561_v14  ;;  %v708_v49 = vsub.f32 %v1423_v62, %v707_v38  ;;  %v709_v11 = vmul.f32 -4.371139e-08, %v1458_v63  ;;  %v762_v41 = vmul.f32 0.63661975, %v1467_v9 }
  0x9b   :  { %v565_v31 = vsub.f32 %v563_v10, %v564_v4  ;;  %v568_v42 = vadd.f32 %v567_v12, %v566_v26  ;;  %v572_v54 = vmul.f32 %v558_v1, %v510_v34  ;;  %v573_v43 = vmul.f32 %v559_v5, %v522_v15 }
  0x9c   :  { %v575_v46 = vmul.f32 %v558_v1, %v513_v21  ;;  %v576_v53 = vmul.f32 %v559_v5, %v525_v8  ;;  %v611_v16 = vadd.f32 %v610_v27, %v604_v22  ;;  %v615_v47 = vsub.f32 0.0, %v602_v61 }
  0x9d   :  { %v578_v13 = vmul.f32 %v559_v5, %v510_v34  ;;  %v579_v48 = vmul.f32 %v558_v1, %v522_v15  ;;  %v657_v39 = vmul.f32 %v656_v18, %v653_v7  ;;  %v666_v55 = vmul.f32 %v1063_v19, %v653_v7 }
  0x9e   :  { %v581_v36 = vmul.f32 %v559_v5, %v513_v21  ;;  %v582_v30 = vmul.f32 %v558_v1, %v525_v8  ;;  %v1475_v24 = vsub.f32 %v708_v49, %v709_v11  ;;  %v763_v62 = vadd.f32 0.5, %v762_v41 }
  0x9f   :  { %v571_v56 = vadd.f32 %v570_v29, %v569_v33  ;;  %v654_v57 = vmul.f32 %v653_v7, %v1454_v2  ;;  %v661_v35 = vmul.f32 0.5, %v653_v7  ;;  %v1478_v58 = vand.u32 1, %v1095_v28 }
  0xa0   :  { %v616_v59 = vsel %vm614_vm10, %v615_v47, %v611_v16  ;;  %v617_v6 = vsel %vm614_vm10, %v611_v16, %v602_v61  ;;  %v663_v51 = vmul.f32 %v653_v7, %v653_v7  ;;  %v1097_v34 = vcvt.f32.s32 %v1458_v63 }
  0xa1   :  { %v574_v21 = vsub.f32 %v572_v54, %v573_v43  ;;  %v577_v0 = vsub.f32 %v575_v46, %v576_v53  ;;  %v1062_v32 = vadd.f32 -0.16666655, %v657_v39  ;;  %v667_v1 = vadd.f32 0.041666646, %v666_v55 }
  0xa2   :  { %v580_v37 = vadd.f32 %v579_v48, %v578_v13  ;;  %v583_v5 = vadd.f32 %v582_v30, %v581_v36  ;;  %v711_v25 = vmul.f32 %v1475_v24, %v1475_v24  ;;  %v1487_v3 = vfloor.f32 %v763_v62 }
  0xa3   :  { %v618_v15 = vmul.f32 %v616_v59, %v562_v40  ;;  %v619_v20 = vmul.f32 %v617_v6, %v565_v31  ;;  %v662_v22 = vsub.f32 1.0, %v661_v35  ;;  %vm672_vm11 = vcmp.eq.s32.totalorder %v1478_v58, 1 }
  0xa4   :  { %v659_v44 = vmul.f32 %v1062_v32, %v654_v57  ;;  %v668_v7 = vmul.f32 %v667_v1, %v663_v51  ;;  %v1490_v63 = vand.u32 1, %v1097_v34  ;;  %v1492_v50 = vmul.f32 0.5, %v818_v52  ;;  %v876_v51 = vld [vmem:[#allocation8 + $0x78] sm:$0xff] }
  0xa5   :  { %v621_v17 = vmul.f32 %v616_v59, %v565_v31  ;;  %v622_v23 = vmul.f32 %v617_v6, %v562_v40  ;;  %v624_v14 = vmul.f32 %v616_v59, %v568_v42  ;;  %v625_v10 = vmul.f32 %v617_v6, %v571_v56 }
  0xa6   :  { %v627_v60 = vmul.f32 %v616_v59, %v571_v56  ;;  %v713_v38 = vmul.f32 -0.00019515296, %v711_v25  ;;  %v722_v4 = vmul.f32 2.4433157e-05, %v711_v25  ;;  %v765_v26 = vmul.f32 1.5707964, %v1487_v3 }
  0xa7   :  { %v620_v12 = vadd.f32 %v619_v20, %v618_v15  ;;  %v628_v45 = vmul.f32 %v617_v6, %v568_v42  ;;  %v630_v8 = vmul.f32 %v616_v59, %v574_v21  ;;  %v631_v61 = vmul.f32 %v617_v6, %v577_v0 }
  0xa8   :  { %v633_v27 = vmul.f32 %v617_v6, %v574_v21  ;;  %v634_v28 = vmul.f32 %v616_v59, %v577_v0  ;;  %v660_v33 = vadd.f32 %v659_v44, %v1454_v2  ;;  %v669_v29 = vadd.f32 %v668_v7, %v662_v22 }
  0xa9   :  { %v636_v18 = vmul.f32 %v616_v59, %v580_v37  ;;  %v637_v19 = vmul.f32 %v617_v6, %v583_v5  ;;  %v639_v49 = vmul.f32 %v617_v6, %v580_v37  ;;  %v640_v40 = vmul.f32 %v616_v59, %v583_v5 }
  0xaa   :  { %v714_v11 = vadd.f32 0.008332161, %v713_v38  ;;  %v1065_v41 = vadd.f32 -0.0013887316, %v722_v4  ;;  %v766_v31 = vsub.f32 %v1467_v9, %v765_v26  ;;  %v767_v54 = vmul.f32 -4.371139e-08, %v1487_v3 }
  0xab   :  { %v623_v43 = vsub.f32 %v621_v17, %v622_v23  ;;  %v626_v46 = vadd.f32 %v625_v10, %v624_v14  ;;  %v719_v42 = vmul.f32 0.5, %v711_v25  ;;  %v820_v53 = vmul.f32 0.63661975, %v1492_v50 }
  0xac   :  { %v629_v16 = vsub.f32 %v627_v60, %v628_v45  ;;  %v632_v47 = vsub.f32 %v630_v8, %v631_v61  ;;  %v673_v13 = vsub.f32 0.0, %v660_v33  ;;  %v675_v2 = vsel %vm672_vm11, %v669_v29, %v660_v33 }
  0xad   :  { %v635_v48 = vadd.f32 %v634_v28, %v633_v27  ;;  %v638_v39 = vsub.f32 %v636_v18, %v637_v19  ;;  %v641_v55 = vadd.f32 %v640_v40, %v639_v49  ;;  %v712_v36 = vmul.f32 %v711_v25, %v1475_v24 }
  0xae   :  { %v715_v30 = vmul.f32 %v714_v11, %v711_v25  ;;  %v721_v9 = vmul.f32 %v711_v25, %v711_v25  ;;  %v724_v62 = vmul.f32 %v1065_v41, %v711_v25  ;;  %v1502_v56 = vsub.f32 %v766_v31, %v767_v54 }
  0xaf   :  { %v677_v57 = vmul.f32 %v675_v2, %v623_v43  ;;  %v720_v35 = vsub.f32 1.0, %v719_v42  ;;  %vm730_vm12 = vcmp.eq.s32.totalorder %v1490_v63, 1  ;;  %v1099_v59 = vcvt.f32.s32 %v1487_v3 }
  0xb0   :  { %v821_v6 = vadd.f32 0.5, %v820_v53  ;;  %v674_v34 = vsel %vm672_vm11, %v673_v13, %v669_v29  ;;  %v1064_v21 = vadd.f32 -0.16666655, %v715_v30  ;;  %v725_v0 = vadd.f32 0.041666646, %v724_v62 }
  0xb1   :  { %v769_v32 = vmul.f32 %v1502_v56, %v1502_v56  ;;  %v680_v1 = vmul.f32 %v675_v2, %v620_v12  ;;  %v683_v52 = vmul.f32 %v675_v2, %v629_v16  ;;  %v685_v37 = vmul.f32 %v675_v2, %v626_v46 }
  0xb2   :  { %v1510_v5 = vfloor.f32 %v821_v6  ;;  %v717_v25 = vmul.f32 %v1064_v21, %v712_v36  ;;  %v726_v15 = vmul.f32 %v725_v0, %v721_v9  ;;  %v1512_v22 = vmul.f32 0.5, %v876_v51 }
  0xb3   :  { %v771_v20 = vmul.f32 -0.00019515296, %v769_v32  ;;  %v676_v3 = vmul.f32 %v674_v34, %v620_v12  ;;  %v679_v44 = vmul.f32 %v674_v34, %v623_v43  ;;  %v689_v7 = vmul.f32 %v675_v2, %v635_v48 }
  0xb4   :  { %v692_v58 = vmul.f32 %v675_v2, %v632_v47  ;;  %v682_v17 = vmul.f32 %v674_v34, %v626_v46  ;;  %v686_v23 = vmul.f32 %v674_v34, %v629_v16  ;;  %v688_v14 = vmul.f32 %v674_v34, %v632_v47 }
  0xb5   :  { %v695_v10 = vmul.f32 %v675_v2, %v641_v55  ;;  %v691_v60 = vmul.f32 %v674_v34, %v635_v48  ;;  %v772_v38 = vadd.f32 0.008332161, %v771_v20  ;;  %v780_v4 = vmul.f32 2.4433157e-05, %v769_v32 }
  0xb6   :  { %v823_v26 = vmul.f32 1.5707964, %v1510_v5  ;;  %v694_v45 = vmul.f32 %v674_v34, %v638_v39  ;;  %v718_v8 = vadd.f32 %v717_v25, %v1475_v24  ;;  %v727_v61 = vadd.f32 %v726_v15, %v720_v35 }
  0xb7   :  { %v878_v27 = vmul.f32 0.63661975, %v1512_v22  ;;  %v678_v28 = vadd.f32 %v677_v57, %v676_v3  ;;  %v681_v12 = vsub.f32 %v679_v44, %v680_v1  ;;  %v697_v33 = vmul.f32 %v675_v2, %v638_v39 }
  0xb8   :  { %v698_v29 = vmul.f32 %v674_v34, %v641_v55  ;;  %v684_v18 = vsub.f32 %v682_v17, %v683_v52  ;;  %v690_v19 = vadd.f32 %v689_v7, %v688_v14  ;;  %v777_v49 = vmul.f32 0.5, %v769_v32 }
  0xb9   :  { %v787_v40 = vand.u32 1, %v1099_v59  ;;  %v773_v11 = vmul.f32 %v772_v38, %v769_v32  ;;  %v1067_v41 = vadd.f32 -0.0013887316, %v780_v4  ;;  %v824_v31 = vsub.f32 %v1492_v50, %v823_v26 }
  0xba   :  { %v825_v54 = vmul.f32 -4.371139e-08, %v1510_v5  ;;  %v693_v43 = vsub.f32 %v691_v60, %v692_v58  ;;  %v731_v46 = vsub.f32 0.0, %v718_v8  ;;  %v733_v24 = vsel %vm730_vm12, %v727_v61, %v718_v8 }
  0xbb   :  { %v879_v42 = vadd.f32 0.5, %v878_v27  ;;  %v687_v53 = vadd.f32 %v686_v23, %v685_v37  ;;  %v696_v16 = vsub.f32 %v694_v45, %v695_v10  ;;  %v699_v47 = vadd.f32 %v698_v29, %v697_v33 }
  0xbc   :  { %v770_v13 = vmul.f32 %v769_v32, %v1502_v56  ;;  %v778_v2 = vsub.f32 1.0, %v777_v49  ;;  %v779_v48 = vmul.f32 %v769_v32, %v769_v32  ;;  %vm788_vm13 = vcmp.eq.s32.totalorder %v787_v40, 1 }
  0xbd   :  { %v1101_v39 = vcvt.f32.s32 %v1510_v5  ;;  %v735_v55 = vmul.f32 %v733_v24, %v690_v19  ;;  %v1066_v50 = vadd.f32 -0.16666655, %v773_v11  ;;  %v782_v36 = vmul.f32 %v1067_v41, %v769_v32 }
  0xbe   :  { %v1523_v30 = vsub.f32 %v824_v31, %v825_v54  ;;  %v732_v9 = vsel %vm730_vm12, %v731_v46, %v727_v61  ;;  %v738_v62 = vmul.f32 %v733_v24, %v693_v43  ;;  %v740_v57 = vmul.f32 %v733_v24, %v678_v28 }
  0xbf   :  { %v1527_v35 = vfloor.f32 %v879_v42  ;;  %v743_v59 = vmul.f32 %v733_v24, %v681_v12  ;;  %v775_v6 = vmul.f32 %v1066_v50, %v770_v13  ;;  %v783_v51 = vadd.f32 0.041666646, %v782_v36 }
  0xc0   :  { %v827_v34 = vmul.f32 %v1523_v30, %v1523_v30  ;;  %v747_v21 = vmul.f32 %v733_v24, %v696_v16  ;;  %v750_v0 = vmul.f32 %v733_v24, %v699_v47  ;;  %v752_v1 = vmul.f32 %v733_v24, %v684_v18 }
  0xc1   :  { %v881_v32 = vmul.f32 1.5707964, %v1527_v35  ;;  %v734_v52 = vmul.f32 %v732_v9, %v678_v28  ;;  %v776_v37 = vadd.f32 %v775_v6, %v1502_v56  ;;  %v784_v63 = vmul.f32 %v783_v51, %v779_v48 }
  0xc2   :  { %v829_v5 = vmul.f32 -0.00019515296, %v827_v34  ;;  %v737_v25 = vmul.f32 %v732_v9, %v681_v12  ;;  %v741_v15 = vmul.f32 %v732_v9, %v690_v19  ;;  %v746_v20 = vmul.f32 %v732_v9, %v684_v18 }
  0xc3   :  { %v749_v3 = vmul.f32 %v732_v9, %v687_v53  ;;  %v785_v44 = vadd.f32 %v784_v63, %v778_v2  ;;  %v789_v7 = vsub.f32 0.0, %v776_v37  ;;  %v838_v17 = vmul.f32 2.4433157e-05, %v827_v34 }
  0xc4   :  { %v830_v58 = vadd.f32 0.008332161, %v829_v5  ;;  %v744_v23 = vmul.f32 %v732_v9, %v693_v43  ;;  %v753_v14 = vmul.f32 %v732_v9, %v696_v16  ;;  %v882_v10 = vsub.f32 %v1512_v22, %v881_v32 }
  0xc5   :  { %v883_v60 = vmul.f32 -4.371139e-08, %v1527_v35  ;;  %v736_v38 = vsub.f32 %v734_v52, %v735_v55  ;;  %v755_v4 = vmul.f32 %v733_v24, %v687_v53  ;;  %v756_v26 = vmul.f32 %v732_v9, %v699_v47 }
  0xc6   :  { %v845_v56 = vand.u32 1, %v1101_v39  ;;  %v739_v45 = vsub.f32 %v737_v25, %v738_v62  ;;  %v748_v8 = vsub.f32 %v746_v20, %v747_v21  ;;  %v751_v61 = vsub.f32 %v749_v3, %v750_v0 }
  0xc7   :  { %v835_v27 = vmul.f32 0.5, %v827_v34  ;;  %v790_v28 = vsel %vm788_vm13, %v789_v7, %v785_v44  ;;  %v791_v12 = vsel %vm788_vm13, %v785_v44, %v776_v37  ;;  %v831_v33 = vmul.f32 %v830_v58, %v827_v34 }
  0xc8   :  { %v1069_v29 = vadd.f32 -0.0013887316, %v838_v17  ;;  %v742_v18 = vadd.f32 %v741_v15, %v740_v57  ;;  %v745_v19 = vadd.f32 %v744_v23, %v743_v59  ;;  %v754_v49 = vadd.f32 %v753_v14, %v752_v1 }
  0xc9   :  { %v1537_v22 = vsub.f32 %v882_v10, %v883_v60  ;;  %v757_v11 = vadd.f32 %v756_v26, %v755_v4  ;;  %v828_v41 = vmul.f32 %v827_v34, %v1523_v30  ;;  %vm846_vm14 = vcmp.eq.s32.totalorder %v845_v56, 1 }
  0xca   :  { %v1103_v31 = vcvt.f32.s32 %v1527_v35  ;;  %v792_v54 = vmul.f32 %v790_v28, %v736_v38  ;;  %v793_v43 = vmul.f32 %v791_v12, %v748_v8  ;;  %v836_v46 = vsub.f32 1.0, %v835_v27 }
  0xcb   :  { %v837_v24 = vmul.f32 %v827_v34, %v827_v34  ;;  %v795_v42 = vmul.f32 %v790_v28, %v739_v45  ;;  %v796_v40 = vmul.f32 %v791_v12, %v751_v61  ;;  %v1068_v53 = vadd.f32 -0.16666655, %v831_v33 }
  0xcc   :  { %v840_v16 = vmul.f32 %v1069_v29, %v827_v34  ;;  %v798_v47 = vmul.f32 %v791_v12, %v736_v38  ;;  %v799_v13 = vmul.f32 %v790_v28, %v748_v8  ;;  %v801_v2 = vmul.f32 %v791_v12, %v739_v45 }
  0xcd   :  { %v885_v48 = vmul.f32 %v1537_v22, %v1537_v22  ;;  %v802_v39 = vmul.f32 %v790_v28, %v751_v61  ;;  %v804_v55 = vmul.f32 %v790_v28, %v742_v18  ;;  %v833_v50 = vmul.f32 %v1068_v53, %v828_v41 }
  0xce   :  { %v841_v36 = vadd.f32 0.041666646, %v840_v16  ;;  %v805_v9 = vmul.f32 %v791_v12, %v754_v49  ;;  %v807_v62 = vmul.f32 %v790_v28, %v745_v19  ;;  %v808_v57 = vmul.f32 %v791_v12, %v757_v11 }
  0xcf   :  { %v887_v35 = vmul.f32 -0.00019515296, %v885_v48  ;;  %v810_v59 = vmul.f32 %v791_v12, %v742_v18  ;;  %v834_v6 = vadd.f32 %v833_v50, %v1523_v30  ;;  %v896_v21 = vmul.f32 2.4433157e-05, %v885_v48 }
  0xd0   :  { %v842_v51 = vmul.f32 %v841_v36, %v837_v24  ;;  %v811_v34 = vmul.f32 %v790_v28, %v754_v49  ;;  %v813_v0 = vmul.f32 %v791_v12, %v745_v19  ;;  %v814_v1 = vmul.f32 %v790_v28, %v757_v11 }
  0xd1   :  { %v893_v32 = vmul.f32 0.5, %v885_v48  ;;  %v847_v37 = vsub.f32 0.0, %v834_v6  ;;  %v888_v63 = vadd.f32 0.008332161, %v887_v35  ;;  %v1071_v5 = vadd.f32 -0.0013887316, %v896_v21 }
  0xd2   :  { %v843_v52 = vadd.f32 %v842_v51, %v836_v46  ;;  %v794_v25 = vsub.f32 %v792_v54, %v793_v43  ;;  %v797_v15 = vsub.f32 %v795_v42, %v796_v40  ;;  %v800_v20 = vadd.f32 %v799_v13, %v798_v47 }
  0xd3   :  { %v903_v3 = vand.u32 1, %v1103_v31  ;;  %v803_v44 = vadd.f32 %v802_v39, %v801_v2  ;;  %v806_v7 = vsub.f32 %v804_v55, %v805_v9  ;;  %v809_v17 = vsub.f32 %v807_v62, %v808_v57 }
  0xd4   :  { %v848_v58 = vsel %vm846_vm14, %v847_v37, %v843_v52  ;;  %v849_v30 = vsel %vm846_vm14, %v843_v52, %v834_v6  ;;  %v812_v23 = vadd.f32 %v811_v34, %v810_v59  ;;  %v815_v14 = vadd.f32 %v814_v1, %v813_v0 }
  0xd5   :  { %v886_v10 = vmul.f32 %v885_v48, %v1537_v22  ;;  %v889_v60 = vmul.f32 %v888_v63, %v885_v48  ;;  %v894_v38 = vsub.f32 1.0, %v893_v32  ;;  %v895_v4 = vmul.f32 %v885_v48, %v885_v48 }
  0xd6   :  { %v898_v26 = vmul.f32 %v1071_v5, %v885_v48  ;;  %v850_v45 = vmul.f32 %v848_v58, %v794_v25  ;;  %v851_v8 = vmul.f32 %v849_v30, %v797_v15  ;;  %v853_v61 = vmul.f32 %v848_v58, %v797_v15 }
  0xd7   :  { %v854_v56 = vmul.f32 %v849_v30, %v794_v25  ;;  %v856_v27 = vmul.f32 %v848_v58, %v800_v20  ;;  %v857_v28 = vmul.f32 %v849_v30, %v803_v44  ;;  %v859_v12 = vmul.f32 %v848_v58, %v803_v44 }
  0xd8   :  { %v860_v33 = vmul.f32 %v849_v30, %v800_v20  ;;  %v862_v29 = vmul.f32 %v848_v58, %v806_v7  ;;  %v863_v18 = vmul.f32 %v849_v30, %v809_v17  ;;  %v865_v19 = vmul.f32 %v849_v30, %v806_v7 }
  0xd9   :  { %v866_v49 = vmul.f32 %v848_v58, %v809_v17  ;;  %v871_v11 = vmul.f32 %v849_v30, %v812_v23  ;;  %v872_v41 = vmul.f32 %v848_v58, %v815_v14  ;;  %v1070_v31 = vadd.f32 -0.16666655, %v889_v60 }
  0xda   :  { %v899_v54 = vadd.f32 0.041666646, %v898_v26  ;;  %v852_v43 = vadd.f32 %v851_v8, %v850_v45  ;;  %vm904_vm15 = vcmp.eq.s32.totalorder %v903_v3, 1  ;;  %v868_v46 = vmul.f32 %v848_v58, %v812_v23 }
  0xdb   :  { %v869_v24 = vmul.f32 %v849_v30, %v815_v14  ;;  %v891_v42 = vmul.f32 %v1070_v31, %v886_v10  ;;  %v855_v53 = vsub.f32 %v853_v61, %v854_v56  ;;  %v858_v16 = vadd.f32 %v857_v28, %v856_v27 }
  0xdc   :  { %v900_v40 = vmul.f32 %v899_v54, %v895_v4  ;;  %v861_v47 = vsub.f32 %v859_v12, %v860_v33  ;;  %v864_v13 = vsub.f32 %v862_v29, %v863_v18  ;;  %v867_v2 = vadd.f32 %v866_v49, %v865_v19 }
  0xdd   :  { %v873_v48 = vadd.f32 %v872_v41, %v871_v11  ;;  %v892_v39 = vadd.f32 %v891_v42, %v1537_v22  ;;  %v57_v50 = vstv %s1546_s1  ;;  %v59_v36 = vstv %s1549_s2 }
  0xde   :  { %v901_v55 = vadd.f32 %v900_v40, %v894_v38  ;;  %v1559_v9 = vstv %s1551_s26  ;;  %v1562_v62 = vstv %s1553_s27  ;;  %v870_v57 = vsub.f32 %v868_v46, %v869_v24 }
  0xdf   :  { %v905_v35 = vsub.f32 0.0, %v892_v39 }
  0xe0   :  { %v907_v59 = vsel %vm904_vm15, %v901_v55, %v892_v39 }
  0xe1   :  { %v909_v6 = vmul.f32 %v907_v59, %v855_v53  ;;  %v912_v51 = vmul.f32 %v907_v59, %v852_v43  ;;  %v915_v21 = vmul.f32 %v907_v59, %v861_v47  ;;  %v917_v34 = vmul.f32 %v907_v59, %v858_v16 }
  0xe2   :  { %v906_v0 = vsel %vm904_vm15, %v905_v35, %v901_v55  ;;  %v921_v1 = vmul.f32 %v907_v59, %v867_v2  ;;  %v924_v32 = vmul.f32 %v907_v59, %v864_v13  ;;  %v927_v22 = vmul.f32 %v907_v59, %v873_v48 }
  0xe3   :  { %v908_v52 = vmul.f32 %v906_v0, %v852_v43  ;;  %v911_v37 = vmul.f32 %v906_v0, %v855_v53  ;;  %v914_v63 = vmul.f32 %v906_v0, %v858_v16  ;;  %v918_v5 = vmul.f32 %v906_v0, %v861_v47 }
  0xe4   :  { %v920_v25 = vmul.f32 %v906_v0, %v864_v13  ;;  %v923_v15 = vmul.f32 %v906_v0, %v867_v2  ;;  %v926_v20 = vmul.f32 %v906_v0, %v870_v57  ;;  %v929_v44 = vmul.f32 %v907_v59, %v870_v57 }
  0xe5   :  { %v910_v7 = vadd.f32 %v909_v6, %v908_v52  ;;  %v913_v58 = vsub.f32 %v911_v37, %v912_v51  ;;  %v916_v30 = vsub.f32 %v914_v63, %v915_v21  ;;  %v919_v17 = vadd.f32 %v918_v5, %v917_v34 }
  0xe6   :  { %v922_v23 = vadd.f32 %v921_v1, %v920_v25  ;;  %v925_v14 = vsub.f32 %v923_v15, %v924_v32  ;;  %v928_v10 = vsub.f32 %v926_v20, %v927_v22  ;;  %v930_v3 = vmul.f32 %v906_v0, %v873_v48 }
  0xe7   :  { %v932_v60 = vmul.f32 %v910_v7, %v57_v50  ;;  %v935_v38 = vmul.f32 %v913_v58, %v57_v50  ;;  %v938_v4 = vmul.f32 %v910_v7, %v59_v36  ;;  %v941_v26 = vmul.f32 %v913_v58, %v59_v36 }
  0xe8   :  { %v931_v45 = vadd.f32 %v930_v3, %v929_v44  ;;  %v933_v8 = vmul.f32 %v922_v23, %v59_v36  ;;  %v936_v61 = vmul.f32 %v925_v14, %v59_v36  ;;  %v939_v56 = vmul.f32 %v922_v23, %v57_v50 }
  0xe9   :  { %v942_v27 = vmul.f32 %v925_v14, %v57_v50  ;;  %v944_v28 = vmul.f32 %v916_v30, %v57_v50  ;;  %v945_v12 = vmul.f32 %v928_v10, %v59_v36  ;;  %v947_v33 = vmul.f32 %v919_v17, %v57_v50 }
  0xea   :  { %v934_v29 = vsub.f32 %v932_v60, %v933_v8  ;;  %v937_v18 = vsub.f32 %v935_v38, %v936_v61  ;;  %v940_v19 = vadd.f32 %v939_v56, %v938_v4  ;;  %v948_v49 = vmul.f32 %v931_v45, %v59_v36 }
  0xeb   :  { %v943_v11 = vadd.f32 %v942_v27, %v941_v26  ;;  %v946_v41 = vsub.f32 %v944_v28, %v945_v12  ;;  %v950_v31 = vmul.f32 %v916_v30, %v59_v36  ;;  %v951_v54 = vmul.f32 %v928_v10, %v57_v50 }
  0xec   :  { %v949_v43 = vsub.f32 %v947_v33, %v948_v49  ;;  %v953_v46 = vmul.f32 %v919_v17, %v59_v36  ;;  %v954_v24 = vmul.f32 %v931_v45, %v57_v50  ;;  %v956_v42 = vmul.f32 %v934_v29, %v1559_v9 }
  0xed   :  { %v952_v40 = vadd.f32 %v951_v54, %v950_v31  ;;  %v957_v53 = vmul.f32 %v946_v41, %v1562_v62  ;;  %v959_v16 = vmul.f32 %v937_v18, %v1559_v9  ;;  %v962_v47 = vmul.f32 %v934_v29, %v1562_v62 }
  0xee   :  { %v955_v13 = vadd.f32 %v954_v24, %v953_v46  ;;  %v960_v2 = vmul.f32 %v949_v43, %v1562_v62  ;;  %v963_v48 = vmul.f32 %v946_v41, %v1559_v9  ;;  %v965_v39 = vmul.f32 %v937_v18, %v1562_v62 }
  0xef   :  { %v958_v55 = vsub.f32 %v956_v42, %v957_v53  ;;  %v966_v36 = vmul.f32 %v949_v43, %v1559_v9  ;;  %v968_v50 = vmul.f32 %v940_v19, %v1559_v9  ;;  %v969_v57 = vmul.f32 %v952_v40, %v1562_v62 }
  0xf0   :  { %v961_v35 = vsub.f32 %v959_v16, %v960_v2  ;;  %v964_v59 = vadd.f32 %v963_v48, %v962_v47  ;;  %v971_v6 = vmul.f32 %v943_v11, %v1559_v9  ;;  %v972_v51 = vmul.f32 %v955_v13, %v1562_v62 }
  0xf1   :  { %v967_v21 = vadd.f32 %v966_v36, %v965_v39  ;;  %v970_v34 = vsub.f32 %v968_v50, %v969_v57  ;;  %v974_v0 = vmul.f32 %v940_v19, %v1562_v62  ;;  %v975_v1 = vmul.f32 %v952_v40, %v1559_v9 }
  0xf2   :  { %v973_v32 = vsub.f32 %v971_v6, %v972_v51  ;;  %v977_v22 = vmul.f32 %v943_v11, %v1562_v62  ;;  %v978_v52 = vmul.f32 %v955_v13, %v1559_v9  ;;  %v980_v37 = vmul.f32 %v958_v55, %v958_v55 }
  0xf3   :  { %v976_v63 = vadd.f32 %v975_v1, %v974_v0  ;;  %v981_v5 = vmul.f32 %v961_v35, %v961_v35  ;;  %v983_v25 = vmul.f32 %v970_v34, %v970_v34  ;;  %v989_v44 = vmul.f32 %v964_v59, %v964_v59 }
  0xf4   :  { %v979_v15 = vadd.f32 %v978_v52, %v977_v22  ;;  %v984_v20 = vmul.f32 %v973_v32, %v973_v32  ;;  %v990_v7 = vmul.f32 %v967_v21, %v967_v21 }
  0xf5   :  { %v982_v58 = vadd.f32 %v981_v5, %v980_v37  ;;  %v986_v30 = vmul.f32 %v976_v63, %v976_v63 }
  0xf6   :  { %v985_v17 = vadd.f32 %v984_v20, %v983_v25  ;;  %v987_v23 = vmul.f32 %v979_v15, %v979_v15  ;;  %v991_v10 = vadd.f32 %v990_v7, %v989_v44 }
  0xf8   :  { %v988_v14 = vadd.f32 %v987_v23, %v986_v30  ;;  %v992_v3 = vadd.f32 %v985_v17, %v982_v58  ;;  %v995_v60 = vsub.f32 %v982_v58, %v985_v17 }
  0xfa   :  { %v993_v38 = vsub.f32 %v992_v3, %v988_v14  ;;  %v996_v62 = vadd.f32 %v995_v60, %v988_v14 }
  0xfc   :  { %v994_v9 = vsub.f32 %v993_v38, %v991_v10  ;;  %v997_v4 = vsub.f32 %v996_v62, %v991_v10 }
  0xfe   :  { %998 = vst [vmem:[#allocation9] sm:$0xff] %v994_v9 }
  0xff   :  { %1000 = vst [vmem:[#allocation9 + $0x8] sm:$0xff] %v997_v4 }
 0x100   :  { %1013 = dma.vmem_to_hbm [thread:$0]  %s1006_s29, 256, %s1008_s5, [#allocation4], %s1193_s25, %s1193_s25, %s1194_s0  }
 0x101   :  { %1188 = dma.done.wait [#allocation4], 256  }
 0x102   :  { %1189 = vsyncadd [#allocation4], 4294967040 }
 0x103   :  { %1018 = vsyncpa [#allocation3], 1 }
 0x104   :  { %1019 = vsyncpa [#allocation4], 1 }
 0x105   :  { %1020 = vsyncpa [#allocation5], 1 }
 0x106   :  { %1021 = vsyncpa [#allocation7], 1 }

</bundles_post_ra>
